<compile_context>
chip_gen: v7x
topology: tpu7x:2x2x1
jax: 0.10.0
libtpu: 0.0.40
codegen_flags: <defaults>
</compile_context>

<pallas_src>
import functools

import jax
import jax.numpy as jnp
from jax import lax
from jax.experimental import pallas as pl
from jax.experimental.pallas import tpu as pltpu

EXPANSION = 4
BN_EPS = 1e-5


def _bottleneck_kernel(col_ref, row_ref, x_ref, w1_ref, b1_ref, w2_ref, b2_ref,
                       w3_ref, b3_ref, o_ref, *, H, W, fused):
    """One grid step = one batch image; spatial plane flattened to (H*W, C).

    x_ref: (1, HW, Cin) bf16.  Conv weights are bf16 with the BN scale folded
    in; b*_ref are the f32 per-channel BN shifts.  o_ref: (1, HW, Cout).
    """
    HW = H * W

    x = x_ref[0]                                     # (HW, Cin) bf16

    # ---- conv1 (1x1, BN scale pre-folded) + shift + relu -------------------
    h1 = jnp.dot(x, w1_ref[...], preferred_element_type=jnp.float32)
    h1 = jnp.maximum(h1 + b1_ref[...], 0.0)          # (HW, width) f32

    # ---- conv2 (3x3, stride=1, pad=1) --------------------------------------
    col = col_ref[...]                               # (HW, 1) i32  x coordinate
    row = row_ref[...]                               # (HW, 1) i32  y coordinate

    # kw (column) taps: ±1 flat-position shifts via pltpu.roll on the f32
    # plane (32-bit sublane rotate, non-negative shifts only), boundary select
    # and the im2col operand in bf16.
    h1b = h1.astype(jnp.bfloat16)
    c_left = jnp.where(col > 0,                       # output needs pixel x-1
                       pltpu.roll(h1, 1, axis=0).astype(jnp.bfloat16), 0.0)
    c_right = jnp.where(col < W - 1,                  # output needs pixel x+1
                        pltpu.roll(h1, HW - 1, axis=0).astype(jnp.bfloat16), 0.0)

    if fused:
        # Lane-aligned width: one fat K = 3*width dot per kh tap against the
        # pre-reshaped (3, 3*width, width) weight slab.
        g = jnp.concatenate([c_left, h1b, c_right], axis=-1)   # (HW, 3w) bf16

        def contract(kh):
            return jnp.dot(g, w2_ref[kh], preferred_element_type=jnp.float32)
    else:
        # Narrow width: a lane-misaligned concat would force relayout copies,
        # so use 9 thin K = width dots (w2_ref is (3, 3, width, width)).
        def contract(kh):
            return (
                jnp.dot(c_left, w2_ref[kh, 0], preferred_element_type=jnp.float32)
                + jnp.dot(h1b, w2_ref[kh, 1], preferred_element_type=jnp.float32)
                + jnp.dot(c_right, w2_ref[kh, 2], preferred_element_type=jnp.float32))

    # kh (row) taps: whole-row shifts commute with the per-pixel contraction,
    # so roll the *f32 dot output* (HW, width) and mask after the matmul
    # instead of building shifted/masked (HW, 3*width) operands.
    acc = contract(1)                                                  # dy = 0
    acc = acc + jnp.where(row > 0,                                     # dy = -1
                          pltpu.roll(contract(0), W, axis=0), 0.0)
    acc = acc + jnp.where(row < H - 1,                                 # dy = +1
                          pltpu.roll(contract(2), HW - W, axis=0), 0.0)

    h2 = jnp.maximum(acc + b2_ref[...], 0.0).astype(jnp.bfloat16)

    # ---- conv3 (1x1, BN scale pre-folded) + shift ---------------------------
    h3 = jnp.dot(h2, w3_ref[...], preferred_element_type=jnp.float32)
    h3 = h3 + b3_ref[...]

    # ---- residual add (identity = x) + relu ---------------------------------
    o_ref[0] = jnp.maximum(h3 + x.astype(jnp.float32), 0.0).astype(o_ref.dtype)


def bottleneck_forward_nhwc(x_nhwc, params, *, out_dtype=jnp.float32):
    """x_nhwc: (B, H, W, Cin).  Returns (B, H, W, Cout) in `out_dtype`."""
    (w1, b1, w2, b2, w3, b3) = params
    B, H, W, Cin = x_nhwc.shape
    width = w1.shape[1]
    Cout = w3.shape[1]
    assert Cin == Cout, "downsample is None -> inplanes must equal planes*4"
    HW = H * W
    # TODO(synk): validate roll/layout behaviour when H*W is not a multiple of
    # 8 sublanes (late ResNet stages such as 14x14 / 7x7).

    fused = (width % 128 == 0)
    w2k = w2.reshape(3, 3 * width, width) if fused else w2

    # bf16 activations across the boundary (halves activation DMA).
    xf = x_nhwc.astype(jnp.bfloat16).reshape(B, HW, Cin)

    # Precomputed pixel coordinates: avoids a per-step integer modulo in-kernel.
    col_ids = jnp.tile(jnp.arange(W, dtype=jnp.int32), H).reshape(HW, 1)
    row_ids = jnp.repeat(jnp.arange(H, dtype=jnp.int32), W).reshape(HW, 1)

    def rep(arr):
        zeros = (0,) * arr.ndim
        return pl.BlockSpec(arr.shape, lambda b, _z=zeros: _z)

    kernel = functools.partial(_bottleneck_kernel, H=H, W=W, fused=fused)
    out = pl.pallas_call(
        kernel,
        out_shape=jax.ShapeDtypeStruct((B, HW, Cout), out_dtype),
        grid=(B,),
        in_specs=[
            rep(col_ids), rep(row_ids),
            pl.BlockSpec((1, HW, Cin), lambda b: (b, 0, 0)),
            rep(w1), rep(b1), rep(w2k), rep(b2), rep(w3), rep(b3),
        ],
        out_specs=pl.BlockSpec((1, HW, Cout), lambda b: (b, 0, 0)),
        compiler_params=pltpu.CompilerParams(
            dimension_semantics=("parallel",),   # images independent -> megacore
            # 40 MiB leaves headroom on v7x (64 MiB physical VMEM) for weight
            # double-buffering + internal scratch; fine on v5e/v6e (128 MiB).
            vmem_limit_bytes=40 * 1024 * 1024),
    )(col_ids, row_ids, xf, w1, b1, w2k, b2, w3, b3)

    return out.reshape(B, H, W, Cout)


def bottleneck_forward(x_nchw, params):
    """PyTorch-layout entry point: (B, Cin, H, W) -> (B, Cout, H, W) f32."""
    # NOTE: keep the surrounding model in NHWC to avoid these HBM transposes.
    x = jnp.transpose(x_nchw, (0, 2, 3, 1))
    out = bottleneck_forward_nhwc(x, params)
    return jnp.transpose(out, (0, 3, 1, 2)).astype(jnp.float32)


def init_params(key, inplanes, planes):
    """Deterministic synthetic parameters, matmul-ready.

    BN (eval mode: mean=0, var=1) is folded:
      * scale folded into the conv weights (per-output-channel column scale),
      * shift kept as a (1, C) f32 row added in the kernel.
    Conv weights are stored bf16; w2 is kept as (kh, kw, cin, cout) and
    reshaped to (3, 3*width, width) by the wrapper only when width is
    lane-aligned (fused im2col path).
    """
    width = int(planes)
    cout = planes * EXPANSION
    ks = jax.random.split(key, 9)

    w1 = 0.1 * jax.random.normal(ks[0], (inplanes, width), jnp.float32)
    w2 = 0.1 * jax.random.normal(ks[1], (3, 3, width, width), jnp.float32)
    w3 = 0.1 * jax.random.normal(ks[2], (width, cout), jnp.float32)

    def bn_fold(kg, kb, c):
        gamma = 1.0 + 0.1 * jax.random.normal(kg, (c,), jnp.float32)
        beta = 0.1 * jax.random.normal(kb, (c,), jnp.float32)
        mean = jnp.zeros((c,), jnp.float32)        # eval-mode running stats
        var = jnp.ones((c,), jnp.float32)
        scale = gamma / jnp.sqrt(var + BN_EPS)
        shift = beta - mean * scale
        return scale, shift

    s1, b1 = bn_fold(ks[3], ks[4], width)
    s2, b2 = bn_fold(ks[5], ks[6], width)
    s3, b3 = bn_fold(ks[7], ks[8], cout)

    w1f = (w1 * s1[None, :]).astype(jnp.bfloat16)
    w2f = (w2 * s2[None, None, None, :]).astype(jnp.bfloat16)
    w3f = (w3 * s3[None, :]).astype(jnp.bfloat16)

    return (w1f, b1.reshape(1, width),
            w2f, b2.reshape(1, width),
            w3f, b3.reshape(1, cout))


def _reference_forward(x_nchw, params):
    """Pure-JAX f32 reference (lax convolutions) using the same folded params."""
    (w1, b1, w2, b2, w3, b3) = params
    x = jnp.transpose(x_nchw, (0, 2, 3, 1))  # NHWC
    dn = ("NHWC", "HWIO", "NHWC")

    w1f = w1.astype(jnp.float32)
    w2f = w2.astype(jnp.float32)              # (kh, kw, cin, cout)
    w3f = w3.astype(jnp.float32)

    def conv(a, w, pad):
        return lax.conv_general_dilated(a, w, (1, 1), pad, dimension_numbers=dn)

    h = conv(x, w1f.reshape(1, 1, *w1f.shape), "VALID")
    h = jnp.maximum(h + b1.reshape(1, 1, 1, -1), 0.0)
    h = conv(h, w2f, ((1, 1), (1, 1)))
    h = jnp.maximum(h + b2.reshape(1, 1, 1, -1), 0.0)
    h = conv(h, w3f.reshape(1, 1, *w3f.shape), "VALID")
    h = h + b3.reshape(1, 1, 1, -1)
    h = jnp.maximum(h + x, 0.0)
    return jnp.transpose(h, (0, 3, 1, 2))


if __name__ == "__main__":
    B, planes, H, W = 2, 4, 16, 16
    inplanes = planes * EXPANSION  # 16 -> identity residual works (no downsample)

    key = jax.random.PRNGKey(0)
    kx, kp = jax.random.split(key)
    x = jax.random.normal(kx, (B, inplanes, H, W), jnp.float32)
    params = init_params(kp, inplanes, planes)

    out = jax.block_until_ready(bottleneck_forward(x, params))
    ref = _reference_forward(x, params)

    assert out.shape == (B, planes * EXPANSION, H, W)
    # bf16 activations/weights in the kernel vs. f32 reference -> loose-but-
    # meaningful tolerance.
    assert jnp.allclose(out, ref, atol=5e-2, rtol=5e-2), \
        float(jnp.max(jnp.abs(out - ref)))

    print("KERNEL_OK")
</pallas_src>

<mosaic_0001>
module attributes {stable_mosaic.version = 11 : i64} {
  func.func @_bottleneck_kernel(%arg0: i32, %arg1: memref<256x1xi32, #tpu.memory_space<vmem>>, %arg2: memref<256x1xi32, #tpu.memory_space<vmem>>, %arg3: memref<1x256x16xbf16, #tpu.memory_space<vmem>>, %arg4: memref<16x4xbf16, #tpu.memory_space<vmem>>, %arg5: memref<1x4xf32, #tpu.memory_space<vmem>>, %arg6: memref<3x3x4x4xbf16, #tpu.memory_space<vmem>>, %arg7: memref<1x4xf32, #tpu.memory_space<vmem>>, %arg8: memref<4x16xbf16, #tpu.memory_space<vmem>>, %arg9: memref<1x16xf32, #tpu.memory_space<vmem>>, %arg10: memref<1x256x16xf32, #tpu.memory_space<vmem>>) attributes {dimension_semantics = [#tpu.dimension_semantics<parallel>], iteration_bounds = array<i64: 2>, scalar_prefetch = 0 : i64, scratch_operands = 0 : i64, tpu.core_type = #tpu.core_type<tc>, window_params = [{pipeline_mode = #tpu.pipeline_mode<synchronous>, transform_indices = @transform_0, window_bounds = array<i64: 256, 1>}, {pipeline_mode = #tpu.pipeline_mode<synchronous>, transform_indices = @transform_1, window_bounds = array<i64: 256, 1>}, {transform_indices = @transform_2, window_bounds = array<i64: 1, 256, 16>}, {pipeline_mode = #tpu.pipeline_mode<synchronous>, transform_indices = @transform_3, window_bounds = array<i64: 16, 4>}, {pipeline_mode = #tpu.pipeline_mode<synchronous>, transform_indices = @transform_4, window_bounds = array<i64: 1, 4>}, {pipeline_mode = #tpu.pipeline_mode<synchronous>, transform_indices = @transform_5, window_bounds = array<i64: 3, 3, 4, 4>}, {pipeline_mode = #tpu.pipeline_mode<synchronous>, transform_indices = @transform_6, window_bounds = array<i64: 1, 4>}, {pipeline_mode = #tpu.pipeline_mode<synchronous>, transform_indices = @transform_7, window_bounds = array<i64: 4, 16>}, {pipeline_mode = #tpu.pipeline_mode<synchronous>, transform_indices = @transform_8, window_bounds = array<i64: 1, 16>}, {transform_indices = @transform_9, window_bounds = array<i64: 1, 256, 16>}]} {
    %c0 = arith.constant 0 : index
    %c0_0 = arith.constant 0 : index
    %c0_1 = arith.constant 0 : index
    %0 = vector.load %arg3[%c0, %c0_0, %c0_1] : memref<1x256x16xbf16, #tpu.memory_space<vmem>>, vector<1x256x16xbf16>
    %1 = vector.shape_cast %0 : vector<1x256x16xbf16> to vector<256x16xbf16>
    %c0_2 = arith.constant 0 : index
    %c0_3 = arith.constant 0 : index
    %2 = vector.load %arg4[%c0_2, %c0_3] : memref<16x4xbf16, #tpu.memory_space<vmem>>, vector<16x4xbf16>
    %cst = arith.constant dense<0.000000e+00> : vector<256x4xf32>
    %3 = tpu.matmul %1, %2, %cst {dimension_numbers = #tpu.dot_dimension_numbers<[1], [0], [0], [1], [0, 0, 1, 1], [], []>} : vector<256x16xbf16>, vector<16x4xbf16>, vector<256x4xf32> -> vector<256x4xf32>
    %c0_4 = arith.constant 0 : index
    %c0_5 = arith.constant 0 : index
    %4 = vector.load %arg5[%c0_4, %c0_5] : memref<1x4xf32, #tpu.memory_space<vmem>>, vector<1x4xf32>
    %5 = vector.broadcast %4 : vector<1x4xf32> to vector<256x4xf32>
    %6 = arith.addf %3, %5 : vector<256x4xf32>
    %cst_6 = arith.constant 0.000000e+00 : f32
    %7 = vector.broadcast %cst_6 : f32 to vector<256x4xf32>
    %8 = arith.maximumf %6, %7 : vector<256x4xf32>
    %c0_7 = arith.constant 0 : index
    %c0_8 = arith.constant 0 : index
    %9 = vector.load %arg1[%c0_7, %c0_8] : memref<256x1xi32, #tpu.memory_space<vmem>>, vector<256x1xi32>
    %c0_9 = arith.constant 0 : index
    %c0_10 = arith.constant 0 : index
    %10 = vector.load %arg2[%c0_9, %c0_10] : memref<256x1xi32, #tpu.memory_space<vmem>>, vector<256x1xi32>
    %11 = arith.truncf %8 : vector<256x4xf32> to vector<256x4xbf16>
    %c0_i32 = arith.constant 0 : i32
    %12 = vector.broadcast %c0_i32 : i32 to vector<256x1xi32>
    %13 = arith.cmpi sgt, %9, %12 : vector<256x1xi32>
    %c1_i32 = arith.constant 1 : i32
    %14 = tpu.dynamic_rotate %8 by %c1_i32 dim 0 : vector<256x4xf32>, i32 -> vector<256x4xf32>
    %15 = arith.truncf %14 : vector<256x4xf32> to vector<256x4xbf16>
    %cst_11 = arith.constant 0.000000e+00 : f32
    %16 = arith.truncf %cst_11 : f32 to bf16
    %17 = vector.shape_cast %13 : vector<256x1xi1> to vector<256x1xi1>
    %18 = vector.broadcast %17 : vector<256x1xi1> to vector<256x4xi1>
    %19 = vector.broadcast %16 : bf16 to vector<256x4xbf16>
    %20 = arith.select %18, %15, %19 : vector<256x4xi1>, vector<256x4xbf16>
    %c15_i32 = arith.constant 15 : i32
    %21 = vector.broadcast %c15_i32 : i32 to vector<256x1xi32>
    %22 = arith.cmpi slt, %9, %21 : vector<256x1xi32>
    %c255_i32 = arith.constant 255 : i32
    %23 = tpu.dynamic_rotate %8 by %c255_i32 dim 0 : vector<256x4xf32>, i32 -> vector<256x4xf32>
    %24 = arith.truncf %23 : vector<256x4xf32> to vector<256x4xbf16>
    %cst_12 = arith.constant 0.000000e+00 : f32
    %25 = arith.truncf %cst_12 : f32 to bf16
    %26 = vector.shape_cast %22 : vector<256x1xi1> to vector<256x1xi1>
    %27 = vector.broadcast %26 : vector<256x1xi1> to vector<256x4xi1>
    %28 = vector.broadcast %25 : bf16 to vector<256x4xbf16>
    %29 = arith.select %27, %24, %28 : vector<256x4xi1>, vector<256x4xbf16>
    %c1 = arith.constant 1 : index
    %c0_13 = arith.constant 0 : index
    %c0_14 = arith.constant 0 : index
    %c0_15 = arith.constant 0 : index
    %30 = vector.load %arg6[%c1, %c0_13, %c0_14, %c0_15] : memref<3x3x4x4xbf16, #tpu.memory_space<vmem>>, vector<1x1x4x4xbf16>
    %31 = vector.shape_cast %30 : vector<1x1x4x4xbf16> to vector<4x4xbf16>
    %cst_16 = arith.constant dense<0.000000e+00> : vector<256x4xf32>
    %32 = tpu.matmul %20, %31, %cst_16 {dimension_numbers = #tpu.dot_dimension_numbers<[1], [0], [0], [1], [0, 0, 1, 1], [], []>} : vector<256x4xbf16>, vector<4x4xbf16>, vector<256x4xf32> -> vector<256x4xf32>
    %c1_17 = arith.constant 1 : index
    %c1_18 = arith.constant 1 : index
    %c0_19 = arith.constant 0 : index
    %c0_20 = arith.constant 0 : index
    %33 = vector.load %arg6[%c1_17, %c1_18, %c0_19, %c0_20] : memref<3x3x4x4xbf16, #tpu.memory_space<vmem>>, vector<1x1x4x4xbf16>
    %34 = vector.shape_cast %33 : vector<1x1x4x4xbf16> to vector<4x4xbf16>
    %cst_21 = arith.constant dense<0.000000e+00> : vector<256x4xf32>
    %35 = tpu.matmul %11, %34, %cst_21 {dimension_numbers = #tpu.dot_dimension_numbers<[1], [0], [0], [1], [0, 0, 1, 1], [], []>} : vector<256x4xbf16>, vector<4x4xbf16>, vector<256x4xf32> -> vector<256x4xf32>
    %36 = arith.addf %32, %35 : vector<256x4xf32>
    %c1_22 = arith.constant 1 : index
    %c2 = arith.constant 2 : index
    %c0_23 = arith.constant 0 : index
    %c0_24 = arith.constant 0 : index
    %37 = vector.load %arg6[%c1_22, %c2, %c0_23, %c0_24] : memref<3x3x4x4xbf16, #tpu.memory_space<vmem>>, vector<1x1x4x4xbf16>
    %38 = vector.shape_cast %37 : vector<1x1x4x4xbf16> to vector<4x4xbf16>
    %cst_25 = arith.constant dense<0.000000e+00> : vector<256x4xf32>
    %39 = tpu.matmul %29, %38, %cst_25 {dimension_numbers = #tpu.dot_dimension_numbers<[1], [0], [0], [1], [0, 0, 1, 1], [], []>} : vector<256x4xbf16>, vector<4x4xbf16>, vector<256x4xf32> -> vector<256x4xf32>
    %40 = arith.addf %36, %39 : vector<256x4xf32>
    %c0_i32_26 = arith.constant 0 : i32
    %41 = vector.broadcast %c0_i32_26 : i32 to vector<256x1xi32>
    %42 = arith.cmpi sgt, %10, %41 : vector<256x1xi32>
    %c0_27 = arith.constant 0 : index
    %c0_28 = arith.constant 0 : index
    %c0_29 = arith.constant 0 : index
    %c0_30 = arith.constant 0 : index
    %43 = vector.load %arg6[%c0_27, %c0_28, %c0_29, %c0_30] : memref<3x3x4x4xbf16, #tpu.memory_space<vmem>>, vector<1x1x4x4xbf16>
    %44 = vector.shape_cast %43 : vector<1x1x4x4xbf16> to vector<4x4xbf16>
    %cst_31 = arith.constant dense<0.000000e+00> : vector<256x4xf32>
    %45 = tpu.matmul %20, %44, %cst_31 {dimension_numbers = #tpu.dot_dimension_numbers<[1], [0], [0], [1], [0, 0, 1, 1], [], []>} : vector<256x4xbf16>, vector<4x4xbf16>, vector<256x4xf32> -> vector<256x4xf32>
    %c0_32 = arith.constant 0 : index
    %c1_33 = arith.constant 1 : index
    %c0_34 = arith.constant 0 : index
    %c0_35 = arith.constant 0 : index
    %46 = vector.load %arg6[%c0_32, %c1_33, %c0_34, %c0_35] : memref<3x3x4x4xbf16, #tpu.memory_space<vmem>>, vector<1x1x4x4xbf16>
    %47 = vector.shape_cast %46 : vector<1x1x4x4xbf16> to vector<4x4xbf16>
    %cst_36 = arith.constant dense<0.000000e+00> : vector<256x4xf32>
    %48 = tpu.matmul %11, %47, %cst_36 {dimension_numbers = #tpu.dot_dimension_numbers<[1], [0], [0], [1], [0, 0, 1, 1], [], []>} : vector<256x4xbf16>, vector<4x4xbf16>, vector<256x4xf32> -> vector<256x4xf32>
    %49 = arith.addf %45, %48 : vector<256x4xf32>
    %c0_37 = arith.constant 0 : index
    %c2_38 = arith.constant 2 : index
    %c0_39 = arith.constant 0 : index
    %c0_40 = arith.constant 0 : index
    %50 = vector.load %arg6[%c0_37, %c2_38, %c0_39, %c0_40] : memref<3x3x4x4xbf16, #tpu.memory_space<vmem>>, vector<1x1x4x4xbf16>
    %51 = vector.shape_cast %50 : vector<1x1x4x4xbf16> to vector<4x4xbf16>
    %cst_41 = arith.constant dense<0.000000e+00> : vector<256x4xf32>
    %52 = tpu.matmul %29, %51, %cst_41 {dimension_numbers = #tpu.dot_dimension_numbers<[1], [0], [0], [1], [0, 0, 1, 1], [], []>} : vector<256x4xbf16>, vector<4x4xbf16>, vector<256x4xf32> -> vector<256x4xf32>
    %53 = arith.addf %49, %52 : vector<256x4xf32>
    %c16_i32 = arith.constant 16 : i32
    %54 = tpu.dynamic_rotate %53 by %c16_i32 dim 0 : vector<256x4xf32>, i32 -> vector<256x4xf32>
    %cst_42 = arith.constant 0.000000e+00 : f32
    %55 = vector.shape_cast %42 : vector<256x1xi1> to vector<256x1xi1>
    %56 = vector.broadcast %55 : vector<256x1xi1> to vector<256x4xi1>
    %57 = vector.broadcast %cst_42 : f32 to vector<256x4xf32>
    %58 = arith.select %56, %54, %57 : vector<256x4xi1>, vector<256x4xf32>
    %59 = arith.addf %40, %58 : vector<256x4xf32>
    %c15_i32_43 = arith.constant 15 : i32
    %60 = vector.broadcast %c15_i32_43 : i32 to vector<256x1xi32>
    %61 = arith.cmpi slt, %10, %60 : vector<256x1xi32>
    %c2_44 = arith.constant 2 : index
    %c0_45 = arith.constant 0 : index
    %c0_46 = arith.constant 0 : index
    %c0_47 = arith.constant 0 : index
    %62 = vector.load %arg6[%c2_44, %c0_45, %c0_46, %c0_47] : memref<3x3x4x4xbf16, #tpu.memory_space<vmem>>, vector<1x1x4x4xbf16>
    %63 = vector.shape_cast %62 : vector<1x1x4x4xbf16> to vector<4x4xbf16>
    %cst_48 = arith.constant dense<0.000000e+00> : vector<256x4xf32>
    %64 = tpu.matmul %20, %63, %cst_48 {dimension_numbers = #tpu.dot_dimension_numbers<[1], [0], [0], [1], [0, 0, 1, 1], [], []>} : vector<256x4xbf16>, vector<4x4xbf16>, vector<256x4xf32> -> vector<256x4xf32>
    %c2_49 = arith.constant 2 : index
    %c1_50 = arith.constant 1 : index
    %c0_51 = arith.constant 0 : index
    %c0_52 = arith.constant 0 : index
    %65 = vector.load %arg6[%c2_49, %c1_50, %c0_51, %c0_52] : memref<3x3x4x4xbf16, #tpu.memory_space<vmem>>, vector<1x1x4x4xbf16>
    %66 = vector.shape_cast %65 : vector<1x1x4x4xbf16> to vector<4x4xbf16>
    %cst_53 = arith.constant dense<0.000000e+00> : vector<256x4xf32>
    %67 = tpu.matmul %11, %66, %cst_53 {dimension_numbers = #tpu.dot_dimension_numbers<[1], [0], [0], [1], [0, 0, 1, 1], [], []>} : vector<256x4xbf16>, vector<4x4xbf16>, vector<256x4xf32> -> vector<256x4xf32>
    %68 = arith.addf %64, %67 : vector<256x4xf32>
    %c2_54 = arith.constant 2 : index
    %c2_55 = arith.constant 2 : index
    %c0_56 = arith.constant 0 : index
    %c0_57 = arith.constant 0 : index
    %69 = vector.load %arg6[%c2_54, %c2_55, %c0_56, %c0_57] : memref<3x3x4x4xbf16, #tpu.memory_space<vmem>>, vector<1x1x4x4xbf16>
    %70 = vector.shape_cast %69 : vector<1x1x4x4xbf16> to vector<4x4xbf16>
    %cst_58 = arith.constant dense<0.000000e+00> : vector<256x4xf32>
    %71 = tpu.matmul %29, %70, %cst_58 {dimension_numbers = #tpu.dot_dimension_numbers<[1], [0], [0], [1], [0, 0, 1, 1], [], []>} : vector<256x4xbf16>, vector<4x4xbf16>, vector<256x4xf32> -> vector<256x4xf32>
    %72 = arith.addf %68, %71 : vector<256x4xf32>
    %c240_i32 = arith.constant 240 : i32
    %73 = tpu.dynamic_rotate %72 by %c240_i32 dim 0 : vector<256x4xf32>, i32 -> vector<256x4xf32>
    %cst_59 = arith.constant 0.000000e+00 : f32
    %74 = vector.shape_cast %61 : vector<256x1xi1> to vector<256x1xi1>
    %75 = vector.broadcast %74 : vector<256x1xi1> to vector<256x4xi1>
    %76 = vector.broadcast %cst_59 : f32 to vector<256x4xf32>
    %77 = arith.select %75, %73, %76 : vector<256x4xi1>, vector<256x4xf32>
    %78 = arith.addf %59, %77 : vector<256x4xf32>
    %c0_60 = arith.constant 0 : index
    %c0_61 = arith.constant 0 : index
    %79 = vector.load %arg7[%c0_60, %c0_61] : memref<1x4xf32, #tpu.memory_space<vmem>>, vector<1x4xf32>
    %80 = vector.broadcast %79 : vector<1x4xf32> to vector<256x4xf32>
    %81 = arith.addf %78, %80 : vector<256x4xf32>
    %cst_62 = arith.constant 0.000000e+00 : f32
    %82 = vector.broadcast %cst_62 : f32 to vector<256x4xf32>
    %83 = arith.maximumf %81, %82 : vector<256x4xf32>
    %84 = arith.truncf %83 : vector<256x4xf32> to vector<256x4xbf16>
    %c0_63 = arith.constant 0 : index
    %c0_64 = arith.constant 0 : index
    %85 = vector.load %arg8[%c0_63, %c0_64] : memref<4x16xbf16, #tpu.memory_space<vmem>>, vector<4x16xbf16>
    %cst_65 = arith.constant dense<0.000000e+00> : vector<256x16xf32>
    %86 = tpu.matmul %84, %85, %cst_65 {dimension_numbers = #tpu.dot_dimension_numbers<[1], [0], [0], [1], [0, 0, 1, 1], [], []>} : vector<256x4xbf16>, vector<4x16xbf16>, vector<256x16xf32> -> vector<256x16xf32>
    %c0_66 = arith.constant 0 : index
    %c0_67 = arith.constant 0 : index
    %87 = vector.load %arg9[%c0_66, %c0_67] : memref<1x16xf32, #tpu.memory_space<vmem>>, vector<1x16xf32>
    %88 = vector.broadcast %87 : vector<1x16xf32> to vector<256x16xf32>
    %89 = arith.addf %86, %88 : vector<256x16xf32>
    %90 = arith.extf %1 : vector<256x16xbf16> to vector<256x16xf32>
    %91 = arith.addf %89, %90 : vector<256x16xf32>
    %cst_68 = arith.constant 0.000000e+00 : f32
    %92 = vector.broadcast %cst_68 : f32 to vector<256x16xf32>
    %93 = arith.maximumf %91, %92 : vector<256x16xf32>
    %c0_69 = arith.constant 0 : index
    %c0_70 = arith.constant 0 : index
    %c0_71 = arith.constant 0 : index
    %94 = vector.load %arg10[%c0_69, %c0_70, %c0_71] : memref<1x256x16xf32, #tpu.memory_space<vmem>>, vector<1x256x16xf32>
    %95 = vector.shape_cast %94 : vector<1x256x16xf32> to vector<256x16xf32>
    %96 = vector.shape_cast %93 : vector<256x16xf32> to vector<1x256x16xf32>
    tpu.vector_store %arg10[%c0_69, %c0_70, %c0_71], %96 {strides = array<i32>} : memref<1x256x16xf32, #tpu.memory_space<vmem>>, vector<1x256x16xf32>,
    return
  }
  func.func @transform_0(%arg0: i32) -> (i32, i32) {
    %c0_i32 = arith.constant 0 : i32
    %c0_i32_0 = arith.constant 0 : i32
    %c0_i32_1 = arith.constant 0 : i32
    return %c0_i32, %c0_i32_0 : i32, i32
  }
  func.func @transform_1(%arg0: i32) -> (i32, i32) {
    %c0_i32 = arith.constant 0 : i32
    %c0_i32_0 = arith.constant 0 : i32
    %c0_i32_1 = arith.constant 0 : i32
    return %c0_i32, %c0_i32_0 : i32, i32
  }
  func.func @transform_2(%arg0: i32) -> (i32, i32, i32) {
    %c0_i32 = arith.constant 0 : i32
    %c0_i32_0 = arith.constant 0 : i32
    %c0_i32_1 = arith.constant 0 : i32
    return %arg0, %c0_i32, %c0_i32_0 : i32, i32, i32
  }
  func.func @transform_3(%arg0: i32) -> (i32, i32) {
    %c0_i32 = arith.constant 0 : i32
    %c0_i32_0 = arith.constant 0 : i32
    %c0_i32_1 = arith.constant 0 : i32
    return %c0_i32, %c0_i32_0 : i32, i32
  }
  func.func @transform_4(%arg0: i32) -> (i32, i32) {
    %c0_i32 = arith.constant 0 : i32
    %c0_i32_0 = arith.constant 0 : i32
    %c0_i32_1 = arith.constant 0 : i32
    return %c0_i32, %c0_i32_0 : i32, i32
  }
  func.func @transform_5(%arg0: i32) -> (i32, i32, i32, i32) {
    %c0_i32 = arith.constant 0 : i32
    %c0_i32_0 = arith.constant 0 : i32
    %c0_i32_1 = arith.constant 0 : i32
    %c0_i32_2 = arith.constant 0 : i32
    %c0_i32_3 = arith.constant 0 : i32
    return %c0_i32, %c0_i32_0, %c0_i32_1, %c0_i32_2 : i32, i32, i32, i32
  }
  func.func @transform_6(%arg0: i32) -> (i32, i32) {
    %c0_i32 = arith.constant 0 : i32
    %c0_i32_0 = arith.constant 0 : i32
    %c0_i32_1 = arith.constant 0 : i32
    return %c0_i32, %c0_i32_0 : i32, i32
  }
  func.func @transform_7(%arg0: i32) -> (i32, i32) {
    %c0_i32 = arith.constant 0 : i32
    %c0_i32_0 = arith.constant 0 : i32
    %c0_i32_1 = arith.constant 0 : i32
    return %c0_i32, %c0_i32_0 : i32, i32
  }
  func.func @transform_8(%arg0: i32) -> (i32, i32) {
    %c0_i32 = arith.constant 0 : i32
    %c0_i32_0 = arith.constant 0 : i32
    %c0_i32_1 = arith.constant 0 : i32
    return %c0_i32, %c0_i32_0 : i32, i32
  }
  func.func @transform_9(%arg0: i32) -> (i32, i32, i32) {
    %c0_i32 = arith.constant 0 : i32
    %c0_i32_0 = arith.constant 0 : i32
    %c0_i32_1 = arith.constant 0 : i32
    return %arg0, %c0_i32, %c0_i32_0 : i32, i32, i32
  }
}

</mosaic_0001>

<bundles_post_ra>
// kernel: tpu_custom_call.1
= control target key start
LH: loop header
LB: loop body
LE: loop exit
PB: predicated region body
PF: predicated region fallthrough
CT: control target
= control target key end

     0   :  { %s5492_s30 = smov 0   ;;  %s8169_s0 = inlined_call_operand.vmem [shape: s32[256,1], index: 0, kind: input, shape index: {}]   ;;  %s8170_s1 = inlined_call_operand.vmem [shape: s32[256,1], index: 1, kind: input, shape index: {}]   ;;  %s8171_s2 = inlined_call_operand.vmem [shape: bf16[2,256,16], index: 2, kind: input, shape index: {}]   ;;  %s8172_s3 = inlined_call_operand.vmem [shape: bf16[16,4], index: 3, kind: input, shape index: {}]   ;;  %s8173_s4 = inlined_call_operand.vmem [shape: f32[1,4], index: 4, kind: input, shape index: {}]   ;;  %s8174_s5 = inlined_call_operand.vmem [shape: bf16[3,3,4,4], index: 5, kind: input, shape index: {}]   ;;  %s8175_s6 = inlined_call_operand.vmem [shape: f32[1,4], index: 6, kind: input, shape index: {}]   ;;  %s8176_s7 = inlined_call_operand.vmem [shape: bf16[4,16], index: 7, kind: input, shape index: {}]   ;;  %s8177_s8 = inlined_call_operand.vmem [shape: f32[1,16], index: 8, kind: input, shape index: {}]   ;;  %s8178_s9 = inlined_call_operand.vmem [shape: f32[2,256,16], index: 9, kind: output, shape index: {}]  }
   0x1 LB: > { %s4358_s10 = sadd.s32 4294967295, %s5439_s30   ;;  %p4362_p0 = scmp.ge.s32.totalorder %s5439_s30, 1  ;;  %s5439_s30 = sphi %s5492_s30, %s19_s30  }
   0x2   : > { %p287_p1 = scmp.lt.s32.totalorder %s5439_s30, 3 }
   0x4   : > { %p288_p2 = pnand %p4362_p0, %p287_p1 }
   0x6   : > { %291 = sbr.rel (%p288_p2) target bundleno = 1076 (0x434), region = 56 }
   0xd   : > { %v5503_v0 = vld [vmem:[%s8169_s0 + $0x10] sm:$0xff]  ;;  %v5508_v1 = vld [vmem:[%s8169_s0] sm:$0xff]  ;;  %p323_p3 = scmp.lt.s32.totalorder %s4358_s10, 1  ;;  %v8183_v2 = vmov 0   ;;  %v5520_v4 = vld [vmem:[%s8169_s0 + $0x18] sm:$0xff]  ;;  %vm463_vm6 = vcmask 130048  }
   0xe   : > { %5383 = vset.pattern.permute.xlu1 %v8183_v2  ;;  %5382 = vset.pattern.permute.xlu0 %v8183_v2  ;;  %vm787_vm0 = vcmp.gt.s32.totalorder %v5503_v0, 0  ;;  %vm785_vm1 = vcmp.gt.s32.totalorder %v5508_v1, 0  ;;  %v5384_v3 = vld [vmem:[%s8172_s3] sm:$0xff]   ;;  %vm788_vm2 = vcmp.gt.s32.totalorder %v5520_v4, 0  ;;  %v5528_v7 = vld [vmem:[%s8169_s0 + $0x8] sm:$0xff]  ;;  %v5556_v12 = vld [vmem:[%s8169_s0 + $0x38] sm:$0xff] }
   0xf   : > { %v902_v5 = vsel %vm787_vm0, 1, %v8183_v2  ;;  %v900_v6 = vsel %vm785_vm1, 1, %v8183_v2  ;;  %s8543_s10 = smov (!%p323_p3, %s4358_s10), 1  ;;  %vm786_vm3 = vcmp.gt.s32.totalorder %v5528_v7, 0  ;;  %v5536_v8 = vld [vmem:[%s8169_s0 + $0x28] sm:$0xff]  ;;  %v5541_v9 = vld [vmem:[%s8169_s0 + $0x20] sm:$0xff]  ;;  %4794 = vmatprep.subr.bf16.mxu0 %v5384_v3 }
  0x10   : > { %939 = vperm.xlu1 %5383, %v902_v5   ;;  %933 = vperm.xlu0 %5382, %v900_v6   ;;  %v903_v10 = vsel %vm788_vm2, 1, %v8183_v2  ;;  %v901_v11 = vsel %vm786_vm3, 1, %v8183_v2  ;;  %s4605_s25 = sshll.u32 %s8543_s10, 7  ;;  %vm790_vm4 = vcmp.gt.s32.totalorder %v5536_v8, 0  ;;  %vm789_vm5 = vcmp.gt.s32.totalorder %v5541_v9, 0  ;;  %v5561_v13 = vld [vmem:[%s8169_s0 + $0x30] sm:$0xff] }
  0x11   : > { %4795 = vmatpush3.bf16.msra.mxu0 %v5384_v3  ;;  %s5549_s28 = scalar_lea.vmem %s8171_s2, %s4605_s25  ;;  %v905_v17 = vsel %vm790_vm4, 1, %v8183_v2  ;;  %v904_v18 = vsel %vm789_vm5, 1, %v8183_v2  ;;  %vm792_vm7 = vcmp.gt.s32.totalorder %v5556_v12, 0  ;;  %vm791_vm8 = vcmp.gt.s32.totalorder %v5561_v13, 0  ;;  %v5575_v19 = vld [vmem:[%s8169_s0 + $0x48] sm:$0xff]  ;;  %v5580_v20 = vld [vmem:[%s8169_s0 + $0x40] sm:$0xff] }
  0x12   : > { %v336_v14 = vld [vmem:[%s5549_s28] sm:$0xff]   ;;  %v338_v15 = vld [vmem:[%s5549_s28 + $0x8] sm:$0xff]   ;;  %v340_v16 = vld [vmem:[%s5549_s28 + $0x10] sm:$0xff]   ;;  %v907_v22 = vsel %vm792_vm7, 1, %v8183_v2  ;;  %v906_v23 = vsel %vm791_vm8, 1, %v8183_v2  ;;  %vm794_vm9 = vcmp.gt.s32.totalorder %v5575_v19, 0 }
  0x13   : > { %4796 = vmatprep.mubr.msk.bf16.mxu0 %vm463_vm6, %v336_v14  ;;  %v342_v21 = vld [vmem:[%s5549_s28 + $0x18] sm:$0xff]   ;;  %vm793_vm10 = vcmp.gt.s32.totalorder %v5580_v20, 0  ;;  %v344_v24 = vld [vmem:[%s5549_s28 + $0x20] sm:$0xff]   ;;  %v5597_v26 = vld [vmem:[%s8169_s0 + $0x50] sm:$0xff]  ;;  %v909_v27 = vsel %vm794_vm9, 1, %v8183_v2  ;;  %s4606_s26 = sshll.u32 %s8543_s10, 8 }
  0x14   : > { %942 = vperm.xlu1 %5383, %v903_v10   ;;  %936 = vperm.xlu0 %5382, %v901_v11   ;;  %v5592_v25 = vld [vmem:[%s8169_s0 + $0x58] sm:$0xff]  ;;  %v908_v28 = vsel %vm793_vm10, 1, %v8183_v2  ;;  %vm795_vm12 = vcmp.gt.s32.totalorder %v5597_v26, 0  ;;  %v5607_v29 = vld [vmem:[%s8169_s0 + $0x68] sm:$0xff]  ;;  %v5612_v30 = vld [vmem:[%s8169_s0 + $0x60] sm:$0xff]  ;;  %s8057_s11 = scalar_lea.vmem %s8178_s9, %s4606_s26 }
  0x15   : > { %4797 = vmatmul.mubr.msk.bf16.vlgmr.msra.gmra.mrb[0].mxu0 %vm463_vm6, %v338_v15  ;;  %vm796_vm11 = vcmp.gt.s32.totalorder %v5592_v25, 0  ;;  %v346_v31 = vld [vmem:[%s5549_s28 + $0x28] sm:$0xff]   ;;  %v910_v33 = vsel %vm795_vm12, 1, %v8183_v2  ;;  %vm798_vm13 = vcmp.gt.s32.totalorder %v5607_v29, 0  ;;  %vm797_vm14 = vcmp.gt.s32.totalorder %v5612_v30, 0  ;;  %v348_v34 = vld [vmem:[%s5549_s28 + $0x30] sm:$0xff]  }
  0x16   : > { %4800 = vmatprep.mubr.msk.bf16.mxu0 %vm463_vm6, %v340_v16  ;;  %v911_v32 = vsel %vm796_vm11, 1, %v8183_v2  ;;  %v5624_v35 = vld [vmem:[%s8169_s0 + $0x78] sm:$0xff]  ;;  %v5629_v36 = vld [vmem:[%s8169_s0 + $0x70] sm:$0xff]  ;;  %v913_v37 = vsel %vm798_vm13, 1, %v8183_v2  ;;  %v912_v38 = vsel %vm797_vm14, 1, %v8183_v2  ;;  %v5639_v39 = vld [vmem:[%s8169_s0 + $0x88] sm:$0xff] }
  0x17   : > { %vm800_vm15 = vcmp.gt.s32.totalorder %v5624_v35, 0  ;;  %vm799_vm0 = vcmp.gt.s32.totalorder %v5629_v36, 0  ;;  %v5644_v40 = vld [vmem:[%s8169_s0 + $0x80] sm:$0xff]  ;;  %v350_v41 = vld [vmem:[%s5549_s28 + $0x38] sm:$0xff]   ;;  %vm802_vm1 = vcmp.gt.s32.totalorder %v5639_v39, 0  ;;  %v5661_v46 = vld [vmem:[%s8169_s0 + $0x90] sm:$0xff] }
  0x18   : > { %948 = vperm.xlu1 %5383, %v905_v17   ;;  %945 = vperm.xlu0 %5382, %v904_v18   ;;  %v915_v42 = vsel %vm800_vm15, 1, %v8183_v2  ;;  %v914_v43 = vsel %vm799_vm0, 1, %v8183_v2  ;;  %vm801_vm2 = vcmp.gt.s32.totalorder %v5644_v40, 0  ;;  %v352_v44 = vld [vmem:[%s5549_s28 + $0x40] sm:$0xff]   ;;  %v5656_v45 = vld [vmem:[%s8169_s0 + $0x98] sm:$0xff]  ;;  %v917_v47 = vsel %vm802_vm1, 1, %v8183_v2 }
  0x19   : > { %v916_v48 = vsel %vm801_vm2, 1, %v8183_v2  ;;  %vm804_vm3 = vcmp.gt.s32.totalorder %v5656_v45, 0  ;;  %vm803_vm4 = vcmp.gt.s32.totalorder %v5661_v46, 0  ;;  %v5671_v49 = vld [vmem:[%s8169_s0 + $0xa8] sm:$0xff]  ;;  %v5676_v50 = vld [vmem:[%s8169_s0 + $0xa0] sm:$0xff]  ;;  %v356_v54 = vld [vmem:[%s5549_s28 + $0x50] sm:$0xff]  }
  0x1a   : > { %v354_v51 = vld [vmem:[%s5549_s28 + $0x48] sm:$0xff]   ;;  %v919_v52 = vsel %vm804_vm3, 1, %v8183_v2  ;;  %v918_v53 = vsel %vm803_vm4, 1, %v8183_v2  ;;  %vm806_vm5 = vcmp.gt.s32.totalorder %v5671_v49, 0  ;;  %vm805_vm7 = vcmp.gt.s32.totalorder %v5676_v50, 0  ;;  %v5688_v55 = vld [vmem:[%s8169_s0 + $0xb8] sm:$0xff] }
  0x1b   : > { %v5693_v56 = vld [vmem:[%s8169_s0 + $0xb0] sm:$0xff]  ;;  %v921_v57 = vsel %vm806_vm5, 1, %v8183_v2  ;;  %v920_v58 = vsel %vm805_vm7, 1, %v8183_v2  ;;  %vm808_vm8 = vcmp.gt.s32.totalorder %v5688_v55, 0  ;;  %v5703_v59 = vld [vmem:[%s8169_s0 + $0xc8] sm:$0xff]  ;;  %v5708_v60 = vld [vmem:[%s8169_s0 + $0xc0] sm:$0xff] }
  0x1c   : > { %954 = vperm.xlu1 %5383, %v907_v22   ;;  %951 = vperm.xlu0 %5382, %v906_v23   ;;  %vm807_vm9 = vcmp.gt.s32.totalorder %v5693_v56, 0  ;;  %v358_v61 = vld [vmem:[%s5549_s28 + $0x58] sm:$0xff]   ;;  %v923_v62 = vsel %vm808_vm8, 1, %v8183_v2  ;;  %vm810_vm10 = vcmp.gt.s32.totalorder %v5703_v59, 0  ;;  %vm809_vm11 = vcmp.gt.s32.totalorder %v5708_v60, 0  ;;  %v360_v3 = vld [vmem:[%s5549_s28 + $0x60] sm:$0xff]  }
  0x1d   : > { %4801 = vmatmul.mubr.msk.bf16.gmra.mrb[4].mxu0 %vm463_vm6, %v342_v21  ;;  %v922_v63 = vsel %vm807_vm9, 1, %v8183_v2  ;;  %v5720_v5 = vld [vmem:[%s8169_s0 + $0xd8] sm:$0xff]  ;;  %v5725_v6 = vld [vmem:[%s8169_s0 + $0xd0] sm:$0xff]  ;;  %v925_v10 = vsel %vm810_vm10, 1, %v8183_v2  ;;  %v924_v11 = vsel %vm809_vm11, 1, %v8183_v2  ;;  %v5735_v14 = vld [vmem:[%s8169_s0 + $0xe8] sm:$0xff] }
  0x1e   : > { %4804 = vmatprep.mubr.msk.bf16.mxu0 %vm463_vm6, %v344_v24  ;;  %vm812_vm12 = vcmp.gt.s32.totalorder %v5720_v5, 0  ;;  %vm811_vm13 = vcmp.gt.s32.totalorder %v5725_v6, 0  ;;  %v5740_v15 = vld [vmem:[%s8169_s0 + $0xe0] sm:$0xff]  ;;  %v362_v16 = vld [vmem:[%s5549_s28 + $0x68] sm:$0xff]   ;;  %vm814_vm14 = vcmp.gt.s32.totalorder %v5735_v14, 0  ;;  %v364_v21 = vld [vmem:[%s5549_s28 + $0x70] sm:$0xff]  }
  0x1f   : > { %v927_v17 = vsel %vm812_vm12, 1, %v8183_v2  ;;  %v926_v18 = vsel %vm811_vm13, 1, %v8183_v2  ;;  %vm813_vm15 = vcmp.gt.s32.totalorder %v5740_v15, 0  ;;  %v5752_v22 = vld [vmem:[%s8169_s0 + $0xf8] sm:$0xff]  ;;  %v5757_v23 = vld [vmem:[%s8169_s0 + $0xf0] sm:$0xff]  ;;  %v929_v24 = vsel %vm814_vm14, 1, %v8183_v2 }
  0x20   : > { %960 = vperm.xlu1 %5383, %v909_v27   ;;  %957 = vperm.xlu0 %5382, %v908_v28   ;;  %v928_v27 = vsel %vm813_vm15, 1, %v8183_v2  ;;  %vm816_vm0 = vcmp.gt.s32.totalorder %v5752_v22, 0  ;;  %vm815_vm1 = vcmp.gt.s32.totalorder %v5757_v23, 0  ;;  %v366_v28 = vld [vmem:[%s5549_s28 + $0x78] sm:$0xff]   ;;  %vm1205_vm2 = vcmp.lt.s32.totalorder %v5528_v7, 15 }
  0x21   : > { %vm1204_vm3 = vcmp.lt.s32.totalorder %v5508_v1, 15  ;;  %vm1207_vm4 = vcmp.lt.s32.totalorder %v5520_v4, 15  ;;  %vm1206_vm5 = vcmp.lt.s32.totalorder %v5503_v0, 15  ;;  %vm1209_vm7 = vcmp.lt.s32.totalorder %v5536_v8, 15 }
  0x22   : > { %v1319_v7 = vsel %vm1206_vm5, 1, %v8183_v2  ;;  %vm1208_vm8 = vcmp.lt.s32.totalorder %v5541_v9, 15  ;;  %v1322_v1 = vsel %vm1209_vm7, 1, %v8183_v2  ;;  %vm1211_vm9 = vcmp.lt.s32.totalorder %v5556_v12, 15 }
  0x23   : > { %v1321_v4 = vsel %vm1208_vm8, 1, %v8183_v2  ;;  %vm1210_vm10 = vcmp.lt.s32.totalorder %v5561_v13, 15  ;;  %v1324_v0 = vsel %vm1211_vm9, 1, %v8183_v2  ;;  %vm1213_vm11 = vcmp.lt.s32.totalorder %v5575_v19, 15 }
  0x24   : > { %966 = vperm.xlu1 %5383, %v911_v32   ;;  %963 = vperm.xlu0 %5382, %v910_v33   ;;  %v930_v32 = vsel %vm815_vm1, 1, %v8183_v2  ;;  %v1318_v33 = vsel %vm1205_vm2, 1, %v8183_v2  ;;  %vm1212_vm12 = vcmp.lt.s32.totalorder %v5580_v20, 15  ;;  %v1326_v8 = vsel %vm1213_vm11, 1, %v8183_v2 }
  0x25   : > { %4805 = vmatmul.mubr.msk.bf16.gmra.mrb[8].mxu0 %vm463_vm6, %v346_v31  ;;  %v931_v31 = vsel %vm816_vm0, 1, %v8183_v2  ;;  %v1325_v9 = vsel %vm1212_vm12, 1, %v8183_v2  ;;  %vm1215_vm13 = vcmp.lt.s32.totalorder %v5592_v25, 15  ;;  %vm1214_vm14 = vcmp.lt.s32.totalorder %v5597_v26, 15 }
  0x26   : > { %4808 = vmatprep.mubr.msk.bf16.mxu0 %vm463_vm6, %v348_v34  ;;  %v1317_v34 = vsel %vm1204_vm3, 1, %v8183_v2  ;;  %v1328_v12 = vsel %vm1215_vm13, 1, %v8183_v2  ;;  %v1327_v13 = vsel %vm1214_vm14, 1, %v8183_v2  ;;  %vm1217_vm15 = vcmp.lt.s32.totalorder %v5607_v29, 15 }
  0x27   : > { %vm1216_vm0 = vcmp.lt.s32.totalorder %v5612_v30, 15  ;;  %v1330_v19 = vsel %vm1217_vm15, 1, %v8183_v2  ;;  %vm1219_vm1 = vcmp.lt.s32.totalorder %v5624_v35, 15  ;;  %vm1218_vm2 = vcmp.lt.s32.totalorder %v5629_v36, 15 }
  0x28   : > { %972 = vperm.xlu1 %5383, %v913_v37   ;;  %969 = vperm.xlu0 %5382, %v912_v38   ;;  %v1320_v37 = vsel %vm1207_vm4, 1, %v8183_v2  ;;  %v1323_v38 = vsel %vm1210_vm10, 1, %v8183_v2  ;;  %v1329_v20 = vsel %vm1216_vm0, 1, %v8183_v2  ;;  %v1332_v25 = vsel %vm1219_vm1, 1, %v8183_v2 }
  0x29   : > { %v1331_v26 = vsel %vm1218_vm2, 1, %v8183_v2  ;;  %vm1221_vm3 = vcmp.lt.s32.totalorder %v5639_v39, 15  ;;  %vm1220_vm4 = vcmp.lt.s32.totalorder %v5644_v40, 15  ;;  %vm1223_vm5 = vcmp.lt.s32.totalorder %v5656_v45, 15  ;;  %v4434_v39 = vld [vmem:[%s8174_s5 + $0x8] sm:$0x3] }
  0x2a   : > { %v1334_v29 = vsel %vm1221_vm3, 1, %v8183_v2  ;;  %v1333_v30 = vsel %vm1220_vm4, 1, %v8183_v2  ;;  %vm1222_vm7 = vcmp.lt.s32.totalorder %v5661_v46, 15  ;;  %v1336_v35 = vsel %vm1223_vm5, 1, %v8183_v2 }
  0x2b   : > { %v1335_v36 = vsel %vm1222_vm7, 1, %v8183_v2  ;;  %vm1225_vm8 = vcmp.lt.s32.totalorder %v5671_v49, 15  ;;  %vm1224_vm9 = vcmp.lt.s32.totalorder %v5676_v50, 15  ;;  %vm1674_vm10 = vcmask 1041408  }
  0x2c   : > { %978 = vperm.xlu1 %5383, %v915_v42   ;;  %975 = vperm.xlu0 %5382, %v914_v43   ;;  %v1676_v40 = vsel %vm1674_vm10, %v4434_v39, 0  ;;  %v1337_v42 = vsel %vm1224_vm9, 1, %v8183_v2  ;;  %vm1227_vm11 = vcmp.lt.s32.totalorder %v5688_v55, 15  ;;  %vm1226_vm12 = vcmp.lt.s32.totalorder %v5693_v56, 15  ;;  %v740_v55 = vld [vmem:[%s8170_s1 + $0x18] sm:$0xff]  ;;  %v739_v56 = vld [vmem:[%s8170_s1 + $0x10] sm:$0xff] }
  0x2d   : > { %4809 = vmatmul.mubr.msk.bf16.gmra.mrb[12].mxu0 %vm463_vm6, %v350_v41  ;;  %v1338_v41 = vsel %vm1225_vm8, 1, %v8183_v2  ;;  %5362 = vmatprep.subr.msk.bf16.mxu0 %vm1674_vm10, %v4434_v39  ;;  %v1340_v43 = vsel %vm1227_vm11, 1, %v8183_v2  ;;  %vm1229_vm13 = vcmp.lt.s32.totalorder %v5703_v59, 15  ;;  %vm1228_vm14 = vcmp.lt.s32.totalorder %v5708_v60, 15 }
  0x2e   : > { %4812 = vmatprep.mubr.msk.bf16.mxu0 %vm463_vm6, %v352_v44  ;;  %5363 = vmatprep.subr.msk.bf16.mxu1 %vm1674_vm10, %v4434_v39  ;;  %v1339_v44 = vsel %vm1226_vm12, 1, %v8183_v2  ;;  %v1342_v45 = vsel %vm1229_vm13, 1, %v8183_v2  ;;  %v1341_v46 = vsel %vm1228_vm14, 1, %v8183_v2  ;;  %vm1231_vm15 = vcmp.lt.s32.totalorder %v5720_v5, 15  ;;  %v741_v5 = vld [vmem:[%s8170_s1 + $0x20] sm:$0xff] }
  0x2f   : > { %4829 = vmatpush3.bf16.msra.mxu0 %v1676_v40  ;;  %5169 = vmatpush3.bf16.msra.mxu1 %v1676_v40  ;;  %vm1230_vm0 = vcmp.lt.s32.totalorder %v5725_v6, 15  ;;  %vm1233_vm1 = vcmp.lt.s32.totalorder %v5735_v14, 15  ;;  %vm1232_vm2 = vcmp.lt.s32.totalorder %v5740_v15, 15  ;;  %vm1235_vm3 = vcmp.lt.s32.totalorder %v5752_v22, 15  ;;  %v744_v14 = vld [vmem:[%s8170_s1 + $0x38] sm:$0xff]  ;;  %v743_v15 = vld [vmem:[%s8170_s1 + $0x30] sm:$0xff] }
  0x30   : > { %984 = vperm.xlu1 %5383, %v917_v47   ;;  %981 = vperm.xlu0 %5382, %v916_v48   ;;  %v1344_v47 = vsel %vm1231_vm15, 1, %v8183_v2  ;;  %v1343_v48 = vsel %vm1230_vm0, 1, %v8183_v2  ;;  %v1346_v49 = vsel %vm1233_vm1, 1, %v8183_v2  ;;  %v1345_v50 = vsel %vm1232_vm2, 1, %v8183_v2 }
  0x31   : > { %vm1234_vm4 = vcmp.lt.s32.totalorder %v5757_v23, 15  ;;  %vm2300_vm8 = vcmp.gt.s32.totalorder %v740_v55, 0  ;;  %vm2299_vm9 = vcmp.gt.s32.totalorder %v739_v56, 0  ;;  %vm3085_vm13 = vcmp.lt.s32.totalorder %v740_v55, 15 }
  0x32   : > { %v2861_v59 = vsel %vm2300_vm8, 1, %v8183_v2  ;;  %v2860_v60 = vsel %vm2299_vm9, 1, %v8183_v2  ;;  %vm3084_vm14 = vcmp.lt.s32.totalorder %v739_v56, 15  ;;  %v3647_v6 = vsel %vm3085_vm13, 1, %v8183_v2 }
  0x33   : > { %vm2301_vm0 = vcmp.gt.s32.totalorder %v741_v5, 0  ;;  %vm2304_vm1 = vcmp.gt.s32.totalorder %v744_v14, 0  ;;  %vm2303_vm2 = vcmp.gt.s32.totalorder %v743_v15, 0 }
  0x34   : > { %990 = vperm.xlu1 %5383, %v919_v52   ;;  %987 = vperm.xlu0 %5382, %v918_v53   ;;  %v737_v52 = vld [vmem:[%s8170_s1] sm:$0xff]  ;;  %v1348_v53 = vsel %vm1235_vm3, 1, %v8183_v2 }
  0x35   : > { %4813 = vmatmul.mubr.msk.bf16.gmra.mrb[16].mxu0 %vm463_vm6, %v354_v51  ;;  %v738_v51 = vld [vmem:[%s8170_s1 + $0x8] sm:$0xff]  ;;  %vm2297_vm7 = vcmp.gt.s32.totalorder %v737_v52, 0  ;;  %vm3082_vm12 = vcmp.lt.s32.totalorder %v737_v52, 15 }
  0x36   : > { %4816 = vmatprep.mubr.msk.bf16.mxu0 %vm463_vm6, %v356_v54  ;;  %v1347_v54 = vsel %vm1234_vm4, 1, %v8183_v2  ;;  %vm2298_vm5 = vcmp.gt.s32.totalorder %v738_v51, 0  ;;  %vm3083_vm11 = vcmp.lt.s32.totalorder %v738_v51, 15  ;;  %vm3086_vm4 = vcmp.lt.s32.totalorder %v741_v5, 15  ;;  %v755_v51 = vld [vmem:[%s8170_s1 + $0x90] sm:$0xff] }
  0x37   : > { %v3648_v23 = vsel %vm3086_vm4, 1, %v8183_v2 }
  0x38   : > { %996 = vperm.xlu1 %5383, %v921_v57   ;;  %993 = vperm.xlu0 %5382, %v920_v58   ;;  %v2859_v57 = vsel %vm2298_vm5, 1, %v8183_v2  ;;  %v2858_v58 = vsel %vm2297_vm7, 1, %v8183_v2  ;;  %vm3089_vm5 = vcmp.lt.s32.totalorder %v744_v14, 15  ;;  %vm3088_vm7 = vcmp.lt.s32.totalorder %v743_v15, 15  ;;  %v759_v14 = vld [vmem:[%s8170_s1 + $0xb0] sm:$0xff] }
  0x3c   : > { %1002 = vperm.xlu1 %5383, %v923_v62   ;;  %999 = vperm.xlu0 %5382, %v922_v63   ;;  %v3645_v62 = vsel %vm3083_vm11, 1, %v8183_v2  ;;  %v3644_v63 = vsel %vm3082_vm12, 1, %v8183_v2 }
  0x3d   : > { %4817 = vmatmul.mubr.msk.bf16.gmra.mrb[20].mxu0 %vm463_vm6, %v358_v61  ;;  %v5858_v61 = vld [vmem:[%s8174_s5 + $0x2] sm:$0x3] }
  0x3e   : > { %4820 = vmatprep.mubr.msk.bf16.mxu0 %vm463_vm6, %v360_v3  ;;  %5366 = vmatprep.subr.msk.bf16.mxu0 %vm1674_vm10, %v5858_v61  ;;  %v742_v3 = vld [vmem:[%s8170_s1 + $0x28] sm:$0xff] }
  0x3f   : > { %vm2302_vm15 = vcmp.gt.s32.totalorder %v742_v3, 0  ;;  %vm3087_vm3 = vcmp.lt.s32.totalorder %v742_v3, 15  ;;  %v757_v3 = vld [vmem:[%s8170_s1 + $0xa0] sm:$0xff] }
  0x40   : > { %1008 = vperm.xlu1 %5383, %v925_v10   ;;  %1005 = vperm.xlu0 %5382, %v924_v11   ;;  %v3646_v10 = vsel %vm3084_vm14, 1, %v8183_v2  ;;  %v5875_v11 = vld [vmem:[%s8174_s5 + $0x6] sm:$0x3]  ;;  %v3649_v22 = vsel %vm3087_vm3, 1, %v8183_v2 }
  0x41   : > { %5364 = vmatprep.subr.msk.bf16.mxu1 %vm1674_vm10, %v5875_v11 }
  0x44   : > { %1014 = vperm.xlu1 %5383, %v927_v17   ;;  %1011 = vperm.xlu0 %5382, %v926_v18   ;;  %v2862_v17 = vsel %vm2301_vm0, 1, %v8183_v2  ;;  %v2865_v18 = vsel %vm2304_vm1, 1, %v8183_v2 }
  0x45   : > { %4821 = vmatmul.mubr.msk.bf16.gmra.mrb[24].mxu0 %vm463_vm6, %v362_v16  ;;  %v2863_v16 = vsel %vm2302_vm15, 1, %v8183_v2 }
  0x46   : > { %4824 = vmatprep.mubr.msk.bf16.mxu0 %vm463_vm6, %v364_v21  ;;  %v2864_v21 = vsel %vm2303_vm2, 1, %v8183_v2 }
  0x48   : > { %1020 = vperm.xlu1 %5383, %v929_v24   ;;  %1017 = vperm.xlu0 %5382, %v928_v27   ;;  %v746_v24 = vld [vmem:[%s8170_s1 + $0x48] sm:$0xff]  ;;  %v745_v27 = vld [vmem:[%s8170_s1 + $0x40] sm:$0xff] }
  0x49   : > { %vm2306_vm8 = vcmp.gt.s32.totalorder %v746_v24, 0  ;;  %vm2305_vm9 = vcmp.gt.s32.totalorder %v745_v27, 0  ;;  %vm3091_vm13 = vcmp.lt.s32.totalorder %v746_v24, 15  ;;  %vm3090_vm14 = vcmp.lt.s32.totalorder %v745_v27, 15 }
  0x4c   : > { %1026 = vperm.xlu1 %5383, %v931_v31   ;;  %1023 = vperm.xlu0 %5382, %v930_v32   ;;  %v3650_v31 = vsel %vm3088_vm7, 1, %v8183_v2  ;;  %v748_v32 = vld [vmem:[%s8170_s1 + $0x58] sm:$0xff] }
  0x4d   : > { %4825 = vmatmul.mubr.msk.bf16.gmra.mrb[28].mxu0 %vm463_vm6, %v366_v28  ;;  %v3651_v28 = vsel %vm3089_vm5, 1, %v8183_v2  ;;  %vm2308_vm11 = vcmp.gt.s32.totalorder %v748_v32, 0  ;;  %vm3093_vm15 = vcmp.lt.s32.totalorder %v748_v32, 15  ;;  %v6009_v32 = vld [vmem:[%s8170_s1 + $0xc0] sm:$0xff] }
  0x50   : > { %1353 = vperm.xlu1 %5383, %v1318_v33   ;;  %1350 = vperm.xlu0 %5382, %v1317_v34   ;;  %v747_v33 = vld [vmem:[%s8170_s1 + $0x50] sm:$0xff]  ;;  %v2867_v34 = vsel %vm2306_vm8, 1, %v8183_v2 }
  0x51   : > { %vm2307_vm12 = vcmp.gt.s32.totalorder %v747_v33, 0  ;;  %vm3092_vm0 = vcmp.lt.s32.totalorder %v747_v33, 15 }
  0x54   : > { %1359 = vperm.xlu1 %5383, %v1320_v37   ;;  %1356 = vperm.xlu0 %5382, %v1319_v7   ;;  %v2866_v37 = vsel %vm2305_vm9, 1, %v8183_v2  ;;  %v2869_v7 = vsel %vm2308_vm11, 1, %v8183_v2 }
  0x58   : > { %1365 = vperm.xlu1 %5383, %v1322_v1   ;;  %1362 = vperm.xlu0 %5382, %v1321_v4   ;;  %v2868_v1 = vsel %vm2307_vm12, 1, %v8183_v2  ;;  %v3653_v4 = vsel %vm3091_vm13, 1, %v8183_v2 }
  0x5c   : > { %1371 = vperm.xlu1 %5383, %v1324_v0   ;;  %1368 = vperm.xlu0 %5382, %v1323_v38   ;;  %v3652_v0 = vsel %vm3090_vm14, 1, %v8183_v2  ;;  %v750_v38 = vld [vmem:[%s8170_s1 + $0x68] sm:$0xff]  ;;  %vm2315_vm14 = vcmp.gt.s32.totalorder %v755_v51, 0 }
  0x5d   : > { %vm2310_vm1 = vcmp.gt.s32.totalorder %v750_v38, 0  ;;  %vm3095_vm5 = vcmp.lt.s32.totalorder %v750_v38, 15 }
  0x60   : > { %1377 = vperm.xlu1 %5383, %v1326_v8   ;;  %1374 = vperm.xlu0 %5382, %v1325_v9   ;;  %v749_v8 = vld [vmem:[%s8170_s1 + $0x60] sm:$0xff] }
  0x61   : > { %vm2309_vm2 = vcmp.gt.s32.totalorder %v749_v8, 0  ;;  %vm3094_vm7 = vcmp.lt.s32.totalorder %v749_v8, 15  ;;  %v6027_v8 = vld [vmem:[%s8170_s1 + $0xd8] sm:$0xff] }
  0x64   : > { %1383 = vperm.xlu1 %5383, %v1328_v12   ;;  %1380 = vperm.xlu0 %5382, %v1327_v13   ;;  %v3655_v13 = vsel %vm3093_vm15, 1, %v8183_v2 }
  0x68   : > { %1389 = vperm.xlu1 %5383, %v1330_v19   ;;  %1386 = vperm.xlu0 %5382, %v1329_v20   ;;  %v3654_v19 = vsel %vm3092_vm0, 1, %v8183_v2  ;;  %v752_v20 = vld [vmem:[%s8170_s1 + $0x78] sm:$0xff] }
  0x69   : > { %vm2312_vm3 = vcmp.gt.s32.totalorder %v752_v20, 0  ;;  %vm3097_vm8 = vcmp.lt.s32.totalorder %v752_v20, 15 }
  0x6c   : > { %1395 = vperm.xlu1 %5383, %v1332_v25   ;;  %1392 = vperm.xlu0 %5382, %v1331_v26   ;;  %v751_v25 = vld [vmem:[%s8170_s1 + $0x70] sm:$0xff]  ;;  %v2871_v26 = vsel %vm2310_vm1, 1, %v8183_v2 }
  0x6d   : > { %vm2311_vm4 = vcmp.gt.s32.totalorder %v751_v25, 0  ;;  %vm3096_vm9 = vcmp.lt.s32.totalorder %v751_v25, 15 }
  0x6e   : > { %v2872_v39 = vsel %vm2311_vm4, 1, %v8183_v2  ;;  %vm2317_vm4 = vcmp.gt.s32.totalorder %v757_v3, 0 }
  0x70   : > { %1401 = vperm.xlu1 %5383, %v1334_v29   ;;  %1398 = vperm.xlu0 %5382, %v1333_v30   ;;  %v2870_v29 = vsel %vm2309_vm2, 1, %v8183_v2  ;;  %vm3100_vm2 = vcmp.lt.s32.totalorder %v755_v51, 15 }
  0x74   : > { %1407 = vperm.xlu1 %5383, %v1336_v35   ;;  %1404 = vperm.xlu0 %5382, %v1335_v36   ;;  %v2873_v36 = vsel %vm2312_vm3, 1, %v8183_v2 }
  0x78   : > { %1413 = vperm.xlu1 %5383, %v1338_v41   ;;  %1410 = vperm.xlu0 %5382, %v1337_v42   ;;  %v3657_v42 = vsel %vm3095_vm5, 1, %v8183_v2 }
  0x7c   : > { %1419 = vperm.xlu1 %5383, %v1340_v43   ;;  %1416 = vperm.xlu0 %5382, %v1339_v44   ;;  %v3656_v43 = vsel %vm3094_vm7, 1, %v8183_v2  ;;  %v754_v44 = vld [vmem:[%s8170_s1 + $0x88] sm:$0xff]  ;;  %vm2319_vm7 = vcmp.gt.s32.totalorder %v759_v14, 0 }
  0x7d   : > { %vm2314_vm11 = vcmp.gt.s32.totalorder %v754_v44, 0  ;;  %vm3099_vm15 = vcmp.lt.s32.totalorder %v754_v44, 15 }
  0x7e   : > { %v2875_v52 = vsel %vm2314_vm11, 1, %v8183_v2 }
  0x80   : > { %1425 = vperm.xlu1 %5383, %v1342_v45   ;;  %1422 = vperm.xlu0 %5382, %v1341_v46   ;;  %v753_v45 = vld [vmem:[%s8170_s1 + $0x80] sm:$0xff]  ;;  %v3659_v46 = vsel %vm3097_vm8, 1, %v8183_v2 }
  0x81   : > { %vm2313_vm12 = vcmp.gt.s32.totalorder %v753_v45, 0  ;;  %vm3098_vm0 = vcmp.lt.s32.totalorder %v753_v45, 15 }
  0x84   : > { %1431 = vperm.xlu1 %5383, %v1344_v47   ;;  %1428 = vperm.xlu0 %5382, %v1343_v48   ;;  %v3658_v47 = vsel %vm3096_vm9, 1, %v8183_v2  ;;  %vm3102_vm9 = vcmp.lt.s32.totalorder %v757_v3, 15 }
  0x88   : > { %1437 = vperm.xlu1 %5383, %v1346_v49   ;;  %1434 = vperm.xlu0 %5382, %v1345_v50   ;;  %v756_v50 = vld [vmem:[%s8170_s1 + $0x98] sm:$0xff] }
  0x89   : > { %vm2316_vm13 = vcmp.gt.s32.totalorder %v756_v50, 0  ;;  %vm3101_vm1 = vcmp.lt.s32.totalorder %v756_v50, 15 }
  0x8a   : > { %v2877_v56 = vsel %vm2316_vm13, 1, %v8183_v2  ;;  %v3663_v5 = vsel %vm3101_vm1, 1, %v8183_v2 }
  0x8c   : > { %1443 = vperm.xlu1 %5383, %v1348_v53   ;;  %1440 = vperm.xlu0 %5382, %v1347_v54   ;;  %v2874_v53 = vsel %vm2313_vm12, 1, %v8183_v2  ;;  %vm3104_vm12 = vcmp.lt.s32.totalorder %v759_v14, 15 }
  0x8f   : > { %v5917_v9 = vpop.permute.xlu1 %939  ;;  %v5919_v12 = vpop.permute.xlu0 %933 }
  0x90   : > { %2894 = vperm.xlu1 %5383, %v2859_v57   ;;  %2891 = vperm.xlu0 %5382, %v2858_v58   ;;  %v2876_v57 = vsel %vm2315_vm14, 1, %v8183_v2  ;;  %v3661_v58 = vsel %vm3099_vm15, 1, %v8183_v2  ;;  %vm2321_vm14 = vcmp.gt.s32.totalorder %v6009_v32, 0  ;;  %vm2324_vm15 = vcmp.gt.s32.totalorder %v6027_v8, 0 }
  0x91   : > { %v2885_v51 = vsel %vm2324_vm15, 1, %v8183_v2 }
  0x93   : > { %v5931_v30 = vpop.permute.xlu1 %942  ;;  %v5933_v35 = vpop.permute.xlu0 %936 }
  0x94   : > { %2900 = vperm.xlu1 %5383, %v2861_v59   ;;  %2897 = vperm.xlu0 %5382, %v2860_v60   ;;  %v3660_v59 = vsel %vm3098_vm0, 1, %v8183_v2 }
  0x97   : > { %v5937_v40 = vpop.permute.xlu1 %948  ;;  %v5939_v41 = vpop.permute.xlu0 %945 }
  0x98   : > { %3680 = vperm.xlu1 %5383, %v3645_v62   ;;  %3677 = vperm.xlu0 %5382, %v3644_v63   ;;  %v758_v63 = vld [vmem:[%s8170_s1 + $0xa8] sm:$0xff] }
  0x99   : > { %vm2318_vm3 = vcmp.gt.s32.totalorder %v758_v63, 0  ;;  %vm3103_vm8 = vcmp.lt.s32.totalorder %v758_v63, 15 }
  0x9a   : > { %v3665_v27 = vsel %vm3103_vm8, 1, %v8183_v2 }
  0x9b   : > { %v5951_v48 = vpop.permute.xlu1 %954  ;;  %v5953_v49 = vpop.permute.xlu0 %951 }
  0x9c   : > { %3686 = vperm.xlu1 %5383, %v3647_v6   ;;  %3683 = vperm.xlu0 %5382, %v3646_v10   ;;  %v3662_v6 = vsel %vm3100_vm2, 1, %v8183_v2  ;;  %v760_v10 = vld [vmem:[%s8170_s1 + $0xb8] sm:$0xff] }
  0x9d   : > { %vm2320_vm5 = vcmp.gt.s32.totalorder %v760_v10, 0  ;;  %vm3105_vm11 = vcmp.lt.s32.totalorder %v760_v10, 15 }
  0x9f   : > { %v5963_v54 = vpop.permute.xlu1 %960  ;;  %v5965_v55 = vpop.permute.xlu0 %957 }
  0xa0   : > { %2906 = vperm.xlu1 %5383, %v2863_v16   ;;  %2903 = vperm.xlu0 %5382, %v2862_v17   ;;  %v2879_v17 = vsel %vm2318_vm3, 1, %v8183_v2 }
  0xa3   : > { %v5971_v60 = vpop.permute.xlu1 %966  ;;  %v5973_v62 = vpop.permute.xlu0 %963 }
  0xa4   : > { %2912 = vperm.xlu1 %5383, %v2865_v18   ;;  %2909 = vperm.xlu0 %5382, %v2864_v21   ;;  %v2878_v18 = vsel %vm2317_vm4, 1, %v8183_v2  ;;  %v2881_v21 = vsel %vm2320_vm5, 1, %v8183_v2  ;;  %vm3106_vm4 = vcmp.lt.s32.totalorder %v6009_v32, 15  ;;  %vm1625_vm5 = vcmask 31744   ;;  %v6111_v32 = vld [vmem:[%s8170_s1 + $0xe8] sm:$0xff] }
  0xa7   : > { %v5989_v15 = vpop.permute.xlu1 %972  ;;  %v5991_v16 = vpop.permute.xlu0 %969 }
  0xa8   : > { %3692 = vperm.xlu1 %5383, %v3649_v22   ;;  %3689 = vperm.xlu0 %5382, %v3648_v23   ;;  %v2880_v22 = vsel %vm2319_vm7, 1, %v8183_v2  ;;  %vm3109_vm7 = vcmp.lt.s32.totalorder %v6027_v8, 15 }
  0xab   : > { %v5997_v23 = vpop.permute.xlu1 %978  ;;  %v5999_v24 = vpop.permute.xlu0 %975 }
  0xac   : > { %3698 = vperm.xlu1 %5383, %v3651_v28   ;;  %3695 = vperm.xlu0 %5382, %v3650_v31   ;;  %8251 = vst [vmem:[#allocation2_spill] sm:$0xff] %v5997_v23  ;;  %8252 = vst [vmem:[#allocation3_spill] sm:$0xff] %v5999_v24  ;;  %v3664_v28 = vsel %vm3102_vm9, 1, %v8183_v2  ;;  %v762_v31 = vld [vmem:[%s8170_s1 + $0xc8] sm:$0xff]  ;;  %vm2326_vm9 = vcmp.gt.s32.totalorder %v6111_v32, 0 }
  0xad   : > { %vm2322_vm13 = vcmp.gt.s32.totalorder %v762_v31, 0  ;;  %vm3107_vm3 = vcmp.lt.s32.totalorder %v762_v31, 15  ;;  %v3668_v31 = vsel %vm3106_vm4, 1, %v8183_v2  ;;  %vm1031_vm4 = vcmp.eq.s32.totalorder %v5931_v30, 1 }
  0xaf   : > { %v6011_v33 = vpop.permute.xlu1 %984 }
  0xb0   : > { %2918 = vperm.xlu1 %5383, %v2867_v34   ;;  %2915 = vperm.xlu0 %5382, %v2866_v37   ;;  %8253 = vst [vmem:[#allocation4_spill] sm:$0xff] %v6011_v33  ;;  %v6016_v34 = vld [vmem:[%s8173_s4] ss:$0 sm:$0xff]  ;;  %v849_v37 = vlaneseq }
  0xb2   : > { %v6034_v20 = vshrl.u32 %v849_v37, 7 }
  0xb4   : > { %2924 = vperm.xlu1 %5383, %v2869_v7   ;;  %2921 = vperm.xlu0 %5382, %v2868_v1   ;;  %v6018_v7 = vpop.permute.xlu0 %981  ;;  %v3667_v1 = vsel %vm3105_vm11, 1, %v8183_v2  ;;  %vm851_vm1 = vcmp.lt.s32.totalorder %v6034_v20, 1  ;;  %vm1268_vm2 = vcmp.lt.s32.totalorder %v6034_v20, 7 }
  0xb5   : > { %8254 = vst [vmem:[#allocation5_spill] sm:$0xff] %v6018_v7 }
  0xb8   : > { %3704 = vperm.xlu1 %5383, %v3653_v4   ;;  %3701 = vperm.xlu0 %5382, %v3652_v0   ;;  %v3666_v4 = vsel %vm3104_vm12, 1, %v8183_v2  ;;  %v6045_v44 = vpop.permute.xlu0 %987 }
  0xb9   : > { %8256 = vst [vmem:[#allocation7_spill] sm:$0xff] %v6045_v44 }
  0xbc   : > { %3710 = vperm.xlu1 %5383, %v3655_v13   ;;  %3707 = vperm.xlu0 %5382, %v3654_v19   ;;  %v6032_v13 = vld [vmem:[%s8170_s1 + $0xd0] sm:$0xff] }
  0xbd   : > { %vm2323_vm0 = vcmp.gt.s32.totalorder %v6032_v13, 0  ;;  %vm3108_vm8 = vcmp.lt.s32.totalorder %v6032_v13, 15 }
  0xc0   : > { %2930 = vperm.xlu1 %5383, %v2871_v26   ;;  %2927 = vperm.xlu0 %5382, %v2870_v29   ;;  %v2883_v29 = vsel %vm2322_vm13, 1, %v8183_v2 }
  0xc4   : > { %2936 = vperm.xlu1 %5383, %v2873_v36   ;;  %2933 = vperm.xlu0 %5382, %v2872_v39   ;;  %v2882_v36 = vsel %vm2321_vm14, 1, %v8183_v2  ;;  %v6040_v39 = vpop.permute.xlu1 %990  ;;  %vm3111_vm14 = vcmp.lt.s32.totalorder %v6111_v32, 15 }
  0xc5   : > { %8255 = vst [vmem:[#allocation6_spill] sm:$0xff] %v6040_v39 }
  0xc8   : > { %3716 = vperm.xlu1 %5383, %v3657_v42   ;;  %3713 = vperm.xlu0 %5382, %v3656_v43  }
  0xcc   : > { %3722 = vperm.xlu1 %5383, %v3659_v46   ;;  %3719 = vperm.xlu0 %5382, %v3658_v47  }
  0xd0   : > { %2942 = vperm.xlu1 %5383, %v2875_v52   ;;  %2939 = vperm.xlu0 %5382, %v2874_v53   ;;  %v2884_v52 = vsel %vm2323_vm0, 1, %v8183_v2  ;;  %vm1030_vm0 = vcmp.eq.s32.totalorder %v5917_v9, 1 }
  0xd4   : > { %2948 = vperm.xlu1 %5383, %v2877_v56   ;;  %2945 = vperm.xlu0 %5382, %v2876_v57  }
  0xd8   : > { %3728 = vperm.xlu1 %5383, %v3661_v58   ;;  %3725 = vperm.xlu0 %5382, %v3660_v59  }
  0xdc   : > { %3734 = vperm.xlu1 %5383, %v3663_v5   ;;  %3731 = vperm.xlu0 %5382, %v3662_v6   ;;  %v6068_v5 = vpop.permute.xlu1 %996 }
  0xdd   : > { %8258 = vst [vmem:[#allocation9_spill] sm:$0xff] %v6068_v5 }
  0xe0   : > { %2954 = vperm.xlu1 %5383, %v2879_v17   ;;  %2951 = vperm.xlu0 %5382, %v2878_v18   ;;  %v3669_v17 = vsel %vm3107_vm3, 1, %v8183_v2  ;;  %v6084_v18 = vpop.permute.xlu0 %993  ;;  %vm1028_vm3 = vcmp.eq.s32.totalorder %v5919_v12, 1 }
  0xe1   : > { %8260 = vst [vmem:[#allocation11_spill] sm:$0xff] %v6084_v18 }
  0xe4   : > { %2960 = vperm.xlu1 %5383, %v2881_v21   ;;  %2957 = vperm.xlu0 %5382, %v2880_v22   ;;  %v6153_v13 = vpop.permute.xlu0 %999 }
  0xe5   : > { %8264 = vst [vmem:[#allocation15_spill] sm:$0xff] %v6153_v13  ;;  %v8271_v13 = vmov 0  }
  0xe6   : > { %v3673_v32 = vsel %vm3111_vm14, 1, %v8271_v13 }
  0xe8   : > { %3740 = vperm.xlu1 %5383, %v3665_v27   ;;  %3737 = vperm.xlu0 %5382, %v3664_v28   ;;  %v4798_v0 = vpop.f32.mrb[0].mxu0 }
  0xe9   : > { %v555_v38 = vadd.f32 %v4798_v0, %v6016_v34  ;;  %v546_v19 = vpop.f32.mrb[1].mxu0 }
  0xea   : > { %v4799_v26 = vpop.f32.mrb[2].mxu0  ;;  %v547_v45 = vadd.f32 %v6016_v34, %v546_v19 }
  0xeb   : > { %v6036_v25 = vmax.f32 %v555_v38, 0.0  ;;  %v558_v42 = vadd.f32 %v4799_v26, %v6016_v34  ;;  %v549_v43 = vpop.f32.mrb[3].mxu0  ;;  %v6121_v26 = vld [vmem:[%s8174_s5] sm:$0x3] }
  0xec   : > { %3746 = vperm.xlu1 %5383, %v3667_v1   ;;  %3743 = vperm.xlu0 %5382, %v3666_v4   ;;  %v550_v47 = vadd.f32 %v6016_v34, %v549_v43  ;;  %v6063_v63 = vmax.f32 %v547_v45, 0.0  ;;  %v2333_v4 = vsel %vm1674_vm10, %v5858_v61, 0  ;;  %v6116_v61 = vld [vmem:[%s8170_s1 + $0xe0] sm:$0xff] }
  0xed   : > { %v6048_v46 = vmax.f32 %v558_v42, 0.0  ;;  %v819_v50 = vrot.slane %v6036_v25, 7  ;;  %v8180_v53 = vrot.slane %v6036_v25, 1  ;;  %v3671_v42 = vsel %vm3109_vm7, 1, %v8183_v2 }
  0xee   : > { %v6065_v3 = vmax.f32 %v550_v47, 0.0  ;;  %v8181_v0 = vrot.slane %v6063_v63, 7  ;;  %v3670_v47 = vsel %vm3108_vm8, 1, %v8183_v2  ;;  %vm2325_vm11 = vcmp.gt.s32.totalorder %v6116_v61, 0  ;;  %vm6238_vm8 = vmpackc.low %vm1030_vm0, %vm1030_vm0 }
  0xef   : > { %v6059_v56 = vpack.c.bf16 %v6048_v46, %v6036_v25  ;;  %v8182_v57 = vrot.slane %v6048_v46, 7  ;;  %v1239_v58 = vrot.slane %v6048_v46, 1  ;;  %vm3110_vm15 = vcmp.lt.s32.totalorder %v6116_v61, 15 }
  0xf0   : > { %2966 = vperm.xlu1 %5383, %v2883_v29   ;;  %2963 = vperm.xlu0 %5382, %v2882_v36   ;;  %v4802_v59 = vpop.f32.mrb[4].mxu0  ;;  %v6088_v21 = vpack.c.bf16 %v6065_v3, %v6063_v63  ;;  %v818_v22 = vrot.slane %v6065_v3, 7  ;;  %v3672_v9 = vsel %vm3110_vm15, 1, %v8271_v13  ;;  %vm1033_vm15 = vcmp.eq.s32.totalorder %v5937_v40, 1 }
  0xf1   : > { %8257 = vst [vmem:[#allocation8_spill] sm:$0xff] %v6059_v56  ;;  %v6074_v6 = vsel %vm851_vm1, %v819_v50, %v8182_v57  ;;  %v6080_v10 = vsel %vm1268_vm2, %v8180_v53, %v1239_v58  ;;  %v562_v14 = vpop.f32.mrb[5].mxu0  ;;  %v571_v27 = vadd.f32 %v4802_v59, %v6016_v34  ;;  %vm1032_vm0 = vcmp.eq.s32.totalorder %v5939_v41, 1 }
  0xf2   : > { %8259 = vst [vmem:[#allocation10_spill] sm:$0xff] %v6080_v10  ;;  %8261 = vst [vmem:[#allocation12_spill] sm:$0xff] %v6088_v21  ;;  %v4803_v28 = vpop.f32.mrb[6].mxu0  ;;  %v563_v37 = vadd.f32 %v6016_v34, %v562_v14  ;;  %v6103_v38 = vsel %vm851_vm1, %v818_v22, %v819_v50  ;;  %4830 = vmatprep.mubr.msk.bf16.mxu0 %vm1625_vm5, %v6088_v21  ;;  %v6142_v50 = vsel %vm851_vm1, %v8181_v0, %v818_v22 }
  0xf3   : > { %v565_v1 = vpop.f32.mrb[7].mxu0  ;;  %v574_v19 = vadd.f32 %v4803_v28, %v6016_v34  ;;  %4831 = vmatmul.mubr.msk.bf16.vlgmr.msra.gmra.mrb[32].mxu0 %vm1625_vm5, %v6059_v56  ;;  %v6131_v43 = vmax.f32 %v571_v27, 0.0 }
  0xf4   : > { %2972 = vperm.xlu1 %5383, %v2885_v51   ;;  %2969 = vperm.xlu0 %5382, %v2884_v52   ;;  %v6123_v29 = vmax.f32 %v563_v37, 0.0  ;;  %v566_v36 = vadd.f32 %v6016_v34, %v565_v1  ;;  %v6144_v51 = vpop.permute.xlu1 %1002  ;;  %v6178_v1 = vld [vmem:[%s8170_s1 + $0xf0] sm:$0xff] }
  0xf5   : > { %v6133_v45 = vmax.f32 %v574_v19, 0.0  ;;  %4931 = vmatpush3.bf16.msra.mxu0 %v2333_v4  ;;  %8263 = vst [vmem:[#allocation14_spill] sm:$0xff] %v6144_v51  ;;  %v2887_v19 = vsel %vm2326_vm9, 1, %v8183_v2  ;;  %vm2327_vm13 = vcmp.gt.s32.totalorder %v6178_v1, 0  ;;  %vm1029_vm9 = vcmp.eq.s32.totalorder %v5933_v35, 1 }
  0xf6   : > { %8262 = vst [vmem:[#allocation13_spill] sm:$0xff] %v6123_v29  ;;  %v8179_v8 = vrot.slane %v6123_v29, 1  ;;  %v6147_v52 = vmax.f32 %v566_v36, 0.0  ;;  %5367 = vmatprep.subr.msk.bf16.mxu0 %vm1674_vm10, %v6121_v26  ;;  %v2886_v36 = vsel %vm2325_vm11, 1, %v8183_v2  ;;  %v8277_v51 = vrot.slane %v6048_v46, 7  ;;  %vm6256_vm11 = vmpackc.low %vm1028_vm3, %vm1028_vm3 }
  0xf7   : > { %v6157_v14 = vpack.c.bf16 %v6133_v45, %v6131_v43  ;;  %vm1061_vm14 = vmpackc.low %vm1029_vm9, %vm1029_vm9  ;;  %v6301_v40 = vsel %vm6256_vm11, 65537, %v8271_v13  ;;  %vm1037_vm9 = vcmp.eq.s32.totalorder %v5963_v54, 1 }
  0xf8   : > { %3752 = vperm.xlu1 %5383, %v3669_v17   ;;  %3749 = vperm.xlu0 %5382, %v3668_v31   ;;  %v4806_v59 = vpop.f32.mrb[8].mxu0  ;;  %v6162_v17 = vld [vmem:[%s8170_s1 + $0xf8] sm:$0xff]  ;;  %v6168_v22 = vsel %vm1268_vm2, %v1239_v58, %v8179_v8  ;;  %v6172_v27 = vpack.c.bf16 %v6147_v52, %v6123_v29  ;;  %v8185_v28 = vrot.slane %v6147_v52, 7  ;;  %v821_v31 = vrot.slane %v6123_v29, 7  ;;  %vm1065_vm3 = vmpackc.low %vm1033_vm15, %vm1033_vm15 }
  0xf9   : > { %8265 = vst [vmem:[#allocation16_spill] sm:$0xff] %v6157_v14  ;;  %8266 = vst [vmem:[#allocation17_spill] sm:$0xff] %v6168_v22  ;;  %v578_v37 = vpop.f32.mrb[9].mxu0  ;;  %v587_v4 = vadd.f32 %v4806_v59, %v6016_v34  ;;  %vm2328_vm12 = vcmp.gt.s32.totalorder %v6162_v17, 0  ;;  %vm3113_vm7 = vcmp.lt.s32.totalorder %v6162_v17, 15  ;;  %vm1038_vm15 = vcmp.eq.s32.totalorder %v5973_v62, 1 }
  0xfa   : > { %8267 = vst [vmem:[#allocation18_spill] sm:$0xff] %v6172_v27  ;;  %v4807_v58 = vpop.f32.mrb[10].mxu0  ;;  %4834 = vmatprep.mubr.msk.bf16.mxu0 %vm1625_vm5, %v6172_v27  ;;  %v6251_v18 = vsel %vm851_vm1, %v8277_v51, %v821_v31  ;;  %v6459_v62 = vld [vmem:[%s8174_s5 + $0x4] sm:$0x3] }
  0xfb   : > { %v590_v8 = vadd.f32 %v4807_v58, %v6016_v34  ;;  %v581_v53 = vpop.f32.mrb[11].mxu0  ;;  %v6203_v58 = vpop.permute.xlu1 %1008  ;;  %v6205_v0 = vmax.f32 %v587_v4, 0.0  ;;  %4835 = vmatmul.mubr.msk.bf16.gmra.mrb[36].mxu0 %vm1625_vm5, %v6157_v14  ;;  %8278 = vst [vmem:[#allocation25_spill] sm:$0xff] %v6251_v18  ;;  %v8301_v18 = vrot.slane %v6147_v52, 7  ;;  %8310 = vst [vmem:[#allocation39_spill] sm:$0xff] %v6459_v62 }
  0xfc   : > { %3758 = vperm.xlu1 %5383, %v3671_v42   ;;  %3755 = vperm.xlu0 %5382, %v3670_v47   ;;  %v579_v42 = vadd.f32 %v6016_v34, %v578_v37  ;;  %v582_v59 = vadd.f32 %v6016_v34, %v581_v53  ;;  %v6201_v37 = vsel %vm851_vm1, %v821_v31, %v8185_v28  ;;  %v6211_v47 = vpop.permute.xlu0 %1005  ;;  %v2889_v28 = vsel %vm2328_vm12, 1, %v8271_v13 }
  0xfd   : > { %8268 = vst [vmem:[#allocation19_spill] sm:$0xff] %v6201_v37  ;;  %8269 = vst [vmem:[#allocation20_spill] sm:$0xff] %v6203_v58  ;;  %v6207_v57 = vmax.f32 %v590_v8, 0.0  ;;  %v2888_v58 = vsel %vm2327_vm13, 1, %v8271_v13  ;;  %vm3112_vm12 = vcmp.lt.s32.totalorder %v6178_v1, 15  ;;  %v3675_v1 = vsel %vm3113_vm7, 1, %v8271_v13 }
  0xfe   : > { %8270 = vst [vmem:[#allocation21_spill] sm:$0xff] %v6211_v47  ;;  %v6213_v53 = vmax.f32 %v579_v42, 0.0  ;;  %v6215_v2 = vmax.f32 %v582_v59, 0.0  ;;  %vm6269_vm13 = vmpackc.low %vm1031_vm4, %vm1031_vm4  ;;  %v3674_v46 = vsel %vm3112_vm12, 1, %v8271_v13  ;;  %vm1035_vm7 = vcmp.eq.s32.totalorder %v5951_v48, 1 }
  0xff   : > { %v6221_v4 = vpack.c.bf16 %v6207_v57, %v6205_v0  ;;  %vm1064_vm4 = vmpackc.low %vm1032_vm0, %vm1032_vm0  ;;  %vm1036_vm12 = vcmp.eq.s32.totalorder %v5965_v55, 1 }
 0x100   : > { %2978 = vperm.xlu1 %5383, %v2887_v19   ;;  %2975 = vperm.xlu0 %5382, %v2886_v36   ;;  %v4810_v8 = vpop.f32.mrb[12].mxu0  ;;  %v6228_v19 = vpack.c.bf16 %v6215_v2, %v6213_v53  ;;  %v6260_v35 = vpop.permute.xlu0 %1011  ;;  %vm6356_vm11 = vmpackc.low %vm1035_vm7, %vm1035_vm7  ;;  %vm1040_vm7 = vcmp.eq.s32.totalorder %v5991_v16, 1  ;;  %v8303_v23 = vrot.slane %v6215_v2, 7 }
 0x101   : > { %8272 = vst [vmem:[#allocation22_spill] sm:$0xff] %v6221_v4  ;;  %v594_v36 = vpop.f32.mrb[13].mxu0  ;;  %v603_v42 = vadd.f32 %v4810_v8, %v6016_v34  ;;  %8281 = vst [vmem:[#allocation26_spill] sm:$0xff] %v6260_v35  ;;  %v6340_v35 = vsel %vm1064_vm4, 65537, %v8271_v13  ;;  %v6438_v10 = vsel %vm6356_vm11, 65537, %v8271_v13 }
 0x102   : > { %8273 = vst [vmem:[#allocation23_spill] sm:$0xff] %v6228_v19  ;;  %v4811_v59 = vpop.f32.mrb[14].mxu0  ;;  %4838 = vmatprep.mubr.msk.bf16.mxu0 %vm1625_vm5, %v6228_v19  ;;  %v595_v47 = vadd.f32 %v6016_v34, %v594_v36  ;;  %vm6377_vm0 = vmpackc.low %vm1037_vm9, %vm1037_vm9 }
 0x103   : > { %v597_v8 = vpop.f32.mrb[15].mxu0  ;;  %4839 = vmatmul.mubr.msk.bf16.gmra.mrb[40].mxu0 %vm1625_vm5, %v6221_v4  ;;  %v6275_v12 = vmax.f32 %v603_v42, 0.0  ;;  %v6309_v42 = vsel %vm1061_vm14, 65537, %v8271_v13  ;;  %vm1039_vm14 = vcmp.eq.s32.totalorder %v5971_v60, 1  ;;  %vm6394_vm4 = vmpackc.low %vm1036_vm12, %vm1036_vm12  ;;  %v6483_v39 = vsel %vm6377_vm0, 65537, %v8271_v13 }
 0x104   : > { %2984 = vperm.xlu1 %5383, %v2889_v28   ;;  %2981 = vperm.xlu0 %5382, %v2888_v58   ;;  %v6243_v28 = vpop.permute.xlu1 %1014  ;;  %v606_v58 = vadd.f32 %v4811_v59, %v6016_v34  ;;  %v598_v36 = vadd.f32 %v6016_v34, %v597_v8  ;;  %v6283_v30 = vmax.f32 %v595_v47, 0.0  ;;  %v6306_v47 = vsel %vm6269_vm13, 65537, %v8271_v13  ;;  %v6317_v5 = vpop.permute.xlu0 %1017  ;;  %vm6443_vm9 = vmpackc.low %vm1038_vm15, %vm1038_vm15 }
 0x105   : > { %8276 = vst [vmem:[#allocation24_spill] sm:$0xff] %v6243_v28  ;;  %8289 = vst [vmem:[#allocation32_spill] sm:$0xff] %v6317_v5  ;;  %v6503_v16 = vsel %vm6394_vm4, 65537, %v8271_v13 }
 0x106   : > { %v6277_v31 = vmax.f32 %v606_v58, 0.0  ;;  %8285 = vst [vmem:[#allocation28_spill] sm:$0xff] %v6283_v30  ;;  %v6285_v59 = vmax.f32 %v598_v36, 0.0  ;;  %vm6488_vm12 = vmpackc.low %vm1040_vm7, %vm1040_vm7 }
 0x108   : > { %3764 = vperm.xlu1 %5383, %v3673_v32   ;;  %8284 = vst [vmem:[#allocation27_spill] sm:$0xff] %v6277_v31  ;;  %3761 = vperm.xlu0 %5382, %v3672_v9   ;;  %v4814_v8 = vpop.f32.mrb[16].mxu0  ;;  %v6291_v32 = vsel %vm6238_vm8, 65537, %v8271_v13  ;;  %v6296_v17 = vpack.c.bf16 %v6277_v31, %v6275_v12  ;;  %v6311_v9 = vpop.permute.xlu1 %1020  ;;  %v6315_v41 = vpack.c.bf16 %v6285_v59, %v6283_v30  ;;  %vm1034_vm8 = vcmp.eq.s32.totalorder %v5953_v49, 1 }
 0x109   : > { %8287 = vst [vmem:[#allocation30_spill] sm:$0xff] %v6311_v9  ;;  %v610_v61 = vpop.f32.mrb[17].mxu0  ;;  %v619_v58 = vadd.f32 %v4814_v8, %v6016_v34  ;;  %vm6367_vm13 = vmpackc.low %vm1034_vm8, %vm1034_vm8 }
 0x10a   : > { %8286 = vst [vmem:[#allocation29_spill] sm:$0xff] %v6296_v17  ;;  %8288 = vst [vmem:[#allocation31_spill] sm:$0xff] %v6315_v41  ;;  %v4815_v36 = vpop.f32.mrb[18].mxu0  ;;  %4842 = vmatprep.mubr.msk.bf16.mxu0 %vm1625_vm5, %v6315_v41  ;;  %v611_v28 = vadd.f32 %v6016_v34, %v610_v61  ;;  %v824_v61 = vrot.slane %v6133_v45, 7 }
 0x10b   : > { %v622_v51 = vadd.f32 %v4815_v36, %v6016_v34  ;;  %v613_v9 = vpop.f32.mrb[19].mxu0  ;;  %v6333_v8 = vmax.f32 %v619_v58, 0.0  ;;  %4843 = vmatmul.mubr.msk.bf16.gmra.mrb[44].mxu0 %vm1625_vm5, %v6296_v17  ;;  %vm6415_vm8 = vmpackc.low %vm1039_vm14, %vm1039_vm14 }
 0x10c   : > { %3770 = vperm.xlu1 %5383, %v3675_v1   ;;  %3767 = vperm.xlu0 %5382, %v3674_v46   ;;  %v614_v5 = vadd.f32 %v6016_v34, %v613_v9  ;;  %v6330_v46 = vsel %vm1065_vm3, 65537, %v8271_v13  ;;  %v1888_v1 = vsel %vm1674_vm10, %v5875_v11, 0  ;;  %v6363_v44 = vmax.f32 %v611_v28, 0.0 }
 0x10d   : > { %v6335_v36 = vmax.f32 %v622_v51, 0.0  ;;  %4932 = vmatprep.mubr.msk.bf16.mxu0 %vm1625_vm5, %v6088_v21  ;;  %v825_v21 = vrot.slane %v6213_v53, 7  ;;  %vm1041_vm3 = vcmp.eq.s32.totalorder %v5989_v15, 1  ;;  %v6508_v28 = vsel %vm6415_vm8, 65537, %v8271_v13 }
 0x10e   : > { %v6344_v9 = vmax.f32 %v614_v5, 0.0  ;;  %v823_v5 = vrot.slane %v6131_v43, 7  ;;  %vm6469_vm11 = vmpackc.low %vm1041_vm3, %vm1041_vm3  ;;  %8316 = vst [vmem:[#allocation41_spill] sm:$0xff] %v6508_v28  ;;  %v832_v15 = vrot.slane %v6277_v31, 7 }
 0x10f   : > { %v6352_v58 = vpack.c.bf16 %v6335_v36, %v6333_v8  ;;  %v6410_v55 = vsel %vm851_vm1, %v825_v21, %v8303_v23  ;;  %v6431_v60 = vsel %vm851_vm1, %v824_v61, %v825_v21  ;;  %v828_v23 = vrot.slane %v6207_v57, 7 }
 0x110   : > { %v4818_v51 = vpop.f32.mrb[20].mxu0  ;;  %v6385_v29 = vpack.c.bf16 %v6344_v9, %v6363_v44  ;;  %v6404_v37 = vsel %vm851_vm1, %v8301_v18, %v823_v5  ;;  %8304 = vst [vmem:[#allocation37_spill] sm:$0xff] %v6410_v55  ;;  %v6425_v18 = vld [vmem:[%s8174_s5 + $0xa] sm:$0x3]  ;;  %8307 = vst [vmem:[#allocation38_spill] sm:$0xff] %v6431_v60  ;;  %v6524_v54 = vsel %vm6469_vm11, 65537, %v8271_v13 }
 0x111   : > { %8290 = vst [vmem:[#allocation33_spill] sm:$0xff] %v6352_v58  ;;  %v635_v11 = vadd.f32 %v4818_v51, %v6016_v34  ;;  %v626_v7 = vpop.f32.mrb[21].mxu0  ;;  %v6389_v51 = vsel %vm851_vm1, %v823_v5, %v824_v61  ;;  %8302 = vst [vmem:[#allocation36_spill] sm:$0xff] %v6404_v37  ;;  %v2497_v5 = vsel %vm1674_vm10, %v6121_v26, 0  ;;  %v6464_v26 = vsel %vm6367_vm13, 65537, %v8271_v13 }
 0x112   : > { %v627_v48 = vadd.f32 %v6016_v34, %v626_v7  ;;  %v4819_v33 = vpop.f32.mrb[22].mxu0  ;;  %8297 = vst [vmem:[#allocation34_spill] sm:$0xff] %v6385_v29  ;;  %8298 = vst [vmem:[#allocation35_spill] sm:$0xff] %v6389_v51  ;;  %4846 = vmatprep.mubr.msk.bf16.mxu1 %vm1625_vm5, %v6385_v29  ;;  %v8324_v60 = vrot.slane %v6285_v59, 7 }
 0x113   : > { %v638_v7 = vadd.f32 %v4819_v33, %v6016_v34  ;;  %v629_v24 = vpop.f32.mrb[23].mxu0  ;;  %v6448_v37 = vmax.f32 %v635_v11, 0.0  ;;  %4847 = vmatmul.mubr.msk.bf16.vlgmr.msra.gmra.mrb[0].mxu1 %vm1625_vm5, %v6352_v58  ;;  %4933 = vmatmul.mubr.msk.bf16.vlgmr.msra.gmra.mrb[48].mxu0 %vm1625_vm5, %v6059_v56  ;;  %8319 = vst [vmem:[#allocation44_spill] sm:$0xff] %v6524_v54  ;;  %v6536_v58 = vsel %vm6488_vm12, 65537, %v8271_v13 }
 0x114   : > { %v630_v33 = vadd.f32 %v6016_v34, %v629_v24  ;;  %v6474_v11 = vmax.f32 %v627_v48, 0.0  ;;  %4863 = vmatpush3.bf16.msra.mxu1 %v1888_v1  ;;  %4936 = vmatprep.mubr.msk.bf16.mxu0 %vm1625_vm5, %v6172_v27  ;;  %v827_v48 = vrot.slane %v6205_v0, 7  ;;  %v6513_v27 = vsel %vm6443_vm9, 65537, %v8271_v13  ;;  %8321 = vst [vmem:[#allocation46_spill] sm:$0xff] %v6536_v58 }
 0x115   : > { %v6450_v21 = vmax.f32 %v638_v7, 0.0  ;;  %5365 = vmatprep.subr.msk.bf16.mxu1 %vm1674_vm10, %v6425_v18  ;;  %4965 = vmatpush3.bf16.msra.mxu0 %v2497_v5  ;;  %8317 = vst [vmem:[#allocation42_spill] sm:$0xff] %v6513_v27  ;;  %v8333_v58 = vrot.slane %v6285_v59, 7 }
 0x116   : > { %v6476_v7 = vmax.f32 %v630_v33, 0.0  ;;  %v829_v33 = vrot.slane %v6283_v30, 7  ;;  %5368 = vmatprep.subr.msk.bf16.mxu0 %vm1674_vm10, %v6459_v62  ;;  %v6531_v51 = vsel %vm851_vm1, %v827_v48, %v828_v23 }
 0x117   : > { %v6496_v1 = vpack.c.bf16 %v6450_v21, %v6448_v37  ;;  %8320 = vst [vmem:[#allocation45_spill] sm:$0xff] %v6531_v51 }
 0x118   : > { %v4822_v49 = vpop.f32.mrb[24].mxu0  ;;  %v6517_v56 = vpack.c.bf16 %v6476_v7, %v6474_v11  ;;  %v6551_v55 = vsel %vm851_vm1, %v829_v33, %v8324_v60  ;;  %v6559_v30 = vsel %vm851_vm1, %v828_v23, %v829_v33  ;;  %v834_v33 = vrot.slane %v6344_v9, 7 }
 0x119   : > { %8315 = vst [vmem:[#allocation40_spill] sm:$0xff] %v6496_v1  ;;  %v651_v22 = vadd.f32 %v4822_v49, %v6016_v34  ;;  %v642_v5 = vpop.f32.mrb[25].mxu0  ;;  %v8322_v49 = vrot.slane %v6215_v2, 7  ;;  %8325 = vst [vmem:[#allocation48_spill] sm:$0xff] %v6551_v55  ;;  %v835_v55 = vrot.slane %v6333_v8, 7 }
 0x11a   : > { %8318 = vst [vmem:[#allocation43_spill] sm:$0xff] %v6517_v56  ;;  %v643_v62 = vadd.f32 %v6016_v34, %v642_v5  ;;  %v4823_v61 = vpop.f32.mrb[26].mxu0  ;;  %4850 = vmatprep.mubr.msk.bf16.mxu1 %vm1625_vm5, %v6517_v56  ;;  %8326 = vst [vmem:[#allocation49_spill] sm:$0xff] %v6559_v30  ;;  %v831_v56 = vrot.slane %v6275_v12, 7 }
 0x11b   : > { %v6545_v24 = vsel %vm851_vm1, %v8322_v49, %v827_v48  ;;  %v654_v5 = vadd.f32 %v4823_v61, %v6016_v34  ;;  %v645_v13 = vpop.f32.mrb[27].mxu0  ;;  %4851 = vmatmul.mubr.msk.bf16.gmra.mrb[4].mxu1 %vm1625_vm5, %v6496_v1  ;;  %4937 = vmatmul.mubr.msk.bf16.gmra.mrb[52].mxu0 %vm1625_vm5, %v6157_v14  ;;  %v836_v61 = vrot.slane %v6335_v36, 7  ;;  %v6606_v14 = vsel %vm1674_vm10, %v6425_v18, 0 }
 0x11c   : > { %8323 = vst [vmem:[#allocation47_spill] sm:$0xff] %v6545_v24  ;;  %v646_v31 = vadd.f32 %v6016_v34, %v645_v13  ;;  %v6571_v24 = vmax.f32 %v651_v22, 0.0  ;;  %v6580_v60 = vmax.f32 %v643_v62, 0.0  ;;  %4940 = vmatprep.mubr.msk.bf16.mxu0 %vm1625_vm5, %v6228_v19  ;;  %v6596_v62 = vsel %vm851_vm1, %v831_v56, %v832_v15 }
 0x11d   : > { %v6573_v23 = vmax.f32 %v654_v5, 0.0  ;;  %v833_v5 = vrot.slane %v6363_v44, 7  ;;  %8328 = vst [vmem:[#allocation51_spill] sm:$0xff] %v6596_v62  ;;  %v6622_v18 = vsel %vm851_vm1, %v8333_v58, %v831_v56  ;;  %v6652_v30 = vsel %vm851_vm1, %v834_v33, %v835_v55 }
 0x11e   : > { %v6582_v13 = vmax.f32 %v646_v31, 0.0  ;;  %v8330_v31 = vcombine.low %v6301_v40, %v6309_v42  ;;  %8334 = vst [vmem:[#allocation53_spill] sm:$0xff] %v6622_v18  ;;  %v6648_v40 = vsel %vm851_vm1, %v835_v55, %v836_v61  ;;  %8341 = vst [vmem:[#allocation57_spill] sm:$0xff] %v6652_v30  ;;  %v840_v18 = vrot.slane %v6450_v21, 7 }
 0x11f   : > { %v6592_v49 = vpack.c.bf16 %v6573_v23, %v6571_v24  ;;  %v6632_v42 = vsel %vm851_vm1, %v833_v5, %v834_v33  ;;  %8340 = vst [vmem:[#allocation56_spill] sm:$0xff] %v6648_v40  ;;  %v838_v55 = vrot.slane %v6476_v7, 7  ;;  %v841_v33 = vrot.slane %v6580_v60, 7 }
 0x120   : > { %v4826_v48 = vpop.f32.mrb[28].mxu0  ;;  %v6602_v22 = vpack.c.bf16 %v6582_v13, %v6580_v60  ;;  %vm6614_vm13 = vcmp.ne.s16.totalorder %v8330_v31, 0  ;;  %8335 = vst [vmem:[#allocation54_spill] sm:$0xff] %v6632_v42  ;;  %v6644_v31 = vsel %vm851_vm1, %v832_v15, %v833_v5  ;;  %v843_v42 = vrot.slane %v6571_v24, 7 }
 0x121   : > { %8327 = vst [vmem:[#allocation50_spill] sm:$0xff] %v6592_v49  ;;  %v667_v51 = vadd.f32 %v4826_v48, %v6016_v34  ;;  %v658_v54 = vpop.f32.mrb[29].mxu0  ;;  %v8336_v48 = vcombine.low %v6291_v32, %v6306_v47  ;;  %8339 = vst [vmem:[#allocation55_spill] sm:$0xff] %v6644_v31  ;;  %v8356_v56 = vrot.slane %v6065_v3, 1  ;;  %v1254_v3 = vrot.slane %v6333_v8, 1 }
 0x122   : > { %8329 = vst [vmem:[#allocation52_spill] sm:$0xff] %v6602_v22  ;;  %v659_v28 = vadd.f32 %v6016_v34, %v658_v54  ;;  %v4827_v27 = vpop.f32.mrb[30].mxu0  ;;  %4854 = vmatprep.mubr.msk.bf16.mxu1 %vm1625_vm5, %v6602_v22  ;;  %v8371_v8 = vrot.slane %v6147_v52, 1  ;;  %v6870_v52 = vld [vmem:[%s8174_s5 + $0xe] sm:$0x3] }
 0x123   : > { %vm6637_vm14 = vcmp.ne.s16.totalorder %v8336_v48, 0  ;;  %v670_v58 = vadd.f32 %v4827_v27, %v6016_v34  ;;  %v661_v54 = vpop.f32.mrb[31].mxu0  ;;  %v837_v48 = vrot.slane %v6474_v11, 7  ;;  %v6659_v15 = vmax.f32 %v667_v51, 0.0  ;;  %4855 = vmatmul.mubr.msk.bf16.gmra.mrb[8].mxu1 %vm1625_vm5, %v6592_v49  ;;  %4941 = vmatmul.mubr.msk.bf16.gmra.mrb[56].mxu0 %vm1625_vm5, %v6221_v4 }
 0x124   : > { %v662_v27 = vadd.f32 %v6016_v34, %v661_v54  ;;  %v6661_v5 = vmax.f32 %v659_v28, 0.0  ;;  %4944 = vmatprep.mubr.msk.bf16.mxu0 %vm1625_vm5, %v6315_v41  ;;  %v842_v51 = vrot.slane %v6582_v13, 7  ;;  %v8343_v54 = vcombine.low %v6340_v35, %v6330_v46 }
 0x125   : > { %v6663_v62 = vmax.f32 %v670_v58, 0.0  ;;  %v839_v41 = vrot.slane %v6448_v37, 7  ;;  %v844_v4 = vrot.slane %v6573_v23, 7  ;;  %v6711_v30 = vsel %vm851_vm1, %v837_v48, %v838_v55 }
 0x126   : > { %v6671_v47 = vmax.f32 %v662_v27, 0.0  ;;  %vm6686_vm15 = vcmp.ne.s16.totalorder %v8343_v54, 0  ;;  %v845_v35 = vrot.slane %v6661_v5, 7  ;;  %v8347_v54 = vrot.slane %v6063_v63, 7 }
 0x127   : > { %v6680_v28 = vpack.c.bf16 %v6663_v62, %v6659_v15  ;;  %v848_v58 = vrot.slane %v6663_v62, 7  ;;  %v6715_v40 = vsel %vm851_vm1, %v836_v61, %v837_v48  ;;  %v6719_v49 = vsel %vm851_vm1, %v839_v41, %v840_v18 }
 0x128   : > { %v6697_v31 = vpack.c.bf16 %v6671_v47, %v6661_v5  ;;  %v846_v46 = vrot.slane %v6671_v47, 7  ;;  %8348 = vst [vmem:[#allocation60_spill] sm:$0xff] %v6715_v40  ;;  %v1245_v40 = vrot.slane %v6215_v2, 1  ;;  %v6756_v19 = vsel %vm851_vm1, %v842_v51, %v843_v42 }
 0x129   : > { %8342 = vst [vmem:[#allocation58_spill] sm:$0xff] %v6680_v28  ;;  %v883_v32 = vsel %vm851_vm1, %v848_v58, %v8347_v54  ;;  %v8350_v2 = vpack.c.bf16 %v6074_v6, %v6103_v38  ;;  %v6785_v6 = vsel %vm851_vm1, %v844_v4, %v845_v35  ;;  %v8370_v48 = vrot.slane %v6131_v43, 1 }
 0x12a   : > { %8346 = vst [vmem:[#allocation59_spill] sm:$0xff] %v6697_v31  ;;  %4858 = vmatprep.mubr.msk.bf16.mxu1 %vm1625_vm5, %v6697_v31  ;;  %v884_v34 = vpack.c.bf16 %v6142_v50, %v883_v32  ;;  %v6725_v31 = vsel %vm851_vm1, %v838_v55, %v839_v41  ;;  %v6729_v50 = vsel %vm851_vm1, %v841_v33, %v842_v51  ;;  %v1247_v55 = vrot.slane %v6207_v57, 1 }
 0x12b   : > { %v6733_v32 = vsel %vm851_vm1, %v840_v18, %v841_v33  ;;  %v6745_v41 = vsel %vm851_vm1, %v843_v42, %v844_v4  ;;  %v847_v18 = vrot.slane %v6659_v15, 7  ;;  %4859 = vmatmul.mubr.msk.bf16.gmra.mrb[12].mxu1 %vm1625_vm5, %v6680_v28  ;;  %4945 = vmatmul.mubr.msk.bf16.gmra.mrb[60].mxu0 %vm1625_vm5, %v6296_v17  ;;  %v1250_v33 = vrot.slane %v6275_v12, 1  ;;  %v8364_v17 = vld [vmem:[#allocation19_spill] sm:$0xff] }
 0x12c   : > { %v6737_v61 = vsel %vm6614_vm13, %v884_v34, 0  ;;  %4948 = vmatprep.mubr.msk.bf16.mxu0 %vm1625_vm5, %v6385_v29  ;;  %v6768_v57 = vsel %vm6637_vm14, %v8350_v2, 0  ;;  %v8351_v34 = vcombine.low %v6464_v26, %v6438_v10  ;;  %v6781_v51 = vsel %vm851_vm1, %v845_v35, %v846_v46  ;;  %v8363_v29 = vld [vmem:[#allocation2_spill] sm:$0xff] }
 0x12d   : > { %8349 = vst [vmem:[#allocation61_spill] sm:$0xff] %v6737_v61  ;;  %4864 = vmatprep.mubr.msk.bf16.mxu1 %vm1625_vm5, %v6737_v61  ;;  %v6789_v38 = vsel %vm851_vm1, %v847_v18, %v848_v58  ;;  %v6793_v10 = vsel %vm851_vm1, %v846_v46, %v847_v18  ;;  %v8355_v26 = vrot.slane %v6036_v25, 1  ;;  %v8358_v35 = vmov %v8356_v56  ;;  %v8360_v18 = vld [vmem:[#allocation27_spill] sm:$0xff] }
 0x12e   : > { %vm6773_vm0 = vcmp.ne.s16.totalorder %v8351_v34, 0  ;;  %8354 = vst [vmem:[#allocation62_spill] sm:$0xff] %v6793_v10  ;;  %v8357_v34 = vld [vmem:[#allocation28_spill] sm:$0xff]  ;;  %v8359_v46 = vrot.slane %v6063_v63, 1  ;;  %v1251_v54 = vrot.slane %v8360_v18, 1  ;;  %vm1043_vm1 = vcmp.eq.s32.totalorder %v8363_v29, 1 }
 0x12f   : > { %v6801_v2 = vsel %vm1268_vm2, %v8356_v56, %v8355_v26  ;;  %v1248_v12 = vrot.slane %v8357_v34, 1  ;;  %v1249_v26 = vrot.slane %v6285_v59, 1  ;;  %v1252_v58 = vrot.slane %v6363_v44, 1  ;;  %v8365_v10 = vld [vmem:[#allocation25_spill] sm:$0xff]  ;;  %vm7001_vm8 = vmpackc.low %vm1043_vm1, %vm1043_vm1 }
 0x130   : > { %v6814_v25 = vsel %vm1268_vm2, %v8359_v46, %v8358_v35  ;;  %v8366_v35 = vpack.c.bf16 %v8364_v17, %v8365_v10  ;;  %v8367_v59 = vcombine.low %v6503_v16, %v6483_v39  ;;  %v6845_v44 = vsel %vm1268_vm2, %v8371_v8, %v8370_v48  ;;  %v8372_v17 = vld [vmem:[#allocation3_spill] sm:$0xff]  ;;  %v8374_v16 = vld [vmem:[#allocation13_spill] sm:$0xff] }
 0x131   : > { %vm1042_vm4 = vcmp.eq.s32.totalorder %v8372_v17, 1  ;;  %v1255_v27 = vrot.slane %v6335_v36, 1  ;;  %v1253_v10 = vrot.slane %v6344_v9, 1  ;;  %v8373_v39 = vmov %v8371_v8  ;;  %v8378_v8 = vld [vmem:[#allocation4_spill] sm:$0xff]  ;;  %v8388_v36 = vld [vmem:[#allocation35_spill] sm:$0xff] }
 0x132   : > { %v6830_v46 = vsel %vm6686_vm15, %v8366_v35, 0  ;;  %vm6835_vm3 = vcmp.ne.s16.totalorder %v8367_v59, 0  ;;  %v8375_v35 = vrot.slane %v8374_v16, 1  ;;  %v8376_v56 = vrot.slane %v6213_v53, 1  ;;  %vm7023_vm11 = vmpackc.low %vm1042_vm4, %vm1042_vm4 }
 0x133   : > { %v8377_v34 = vrot.slane %v6133_v45, 1  ;;  %vm1045_vm7 = vcmp.eq.s32.totalorder %v8378_v8, 1  ;;  %v1258_v45 = vrot.slane %v6448_v37, 1  ;;  %4865 = vmatmul.mubr.msk.bf16.vlgmr.msra.gmra.mrb[16].mxu1 %vm1625_vm5, %v6768_v57  ;;  %v6910_v37 = vsel %vm1268_vm2, %v1247_v55, %v1248_v12 }
 0x134   : > { %v6856_v59 = vsel %vm1268_vm2, %v8375_v35, %v8373_v39  ;;  %v8380_v39 = vrot.slane %v6131_v43, 1  ;;  %v8382_v35 = vrot.slane %v6213_v53, 1  ;;  %v1256_v43 = vrot.slane %v6474_v11, 1  ;;  %4897 = vmatpush3.bf16.msra.mxu1 %v6606_v14  ;;  %4868 = vmatprep.mubr.msk.bf16.mxu1 %vm1625_vm5, %v6830_v46  ;;  %v8386_v53 = vld [vmem:[#allocation43_spill] sm:$0xff]  ;;  %vm7045_vm12 = vmpackc.low %vm1045_vm7, %vm1045_vm7 }
 0x135   : > { %v6864_v48 = vsel %vm1268_vm2, %v8377_v34, %v8376_v56  ;;  %v8379_v9 = vmov %v8377_v34  ;;  %v8381_v56 = vrot.slane %v6205_v0, 1  ;;  %v8384_v11 = vrot.slane %v6205_v0, 1  ;;  %5369 = vmatprep.subr.msk.bf16.mxu1 %vm1674_vm10, %v6870_v52  ;;  %v6948_v0 = vpop.permute.xlu1 %1026 }
 0x136   : > { %v6880_v16 = vsel %vm1268_vm2, %v8380_v39, %v8379_v9  ;;  %v6892_v4 = vsel %vm1268_vm2, %v8382_v35, %v1245_v40  ;;  %v8383_v9 = vld [vmem:[#allocation33_spill] sm:$0xff]  ;;  %v6920_v35 = vsel %vm1268_vm2, %v1249_v26, %v1250_v33  ;;  %v1260_v14 = vrot.slane %v6580_v60, 1 }
 0x137   : > { %v6886_v34 = vsel %vm1268_vm2, %v1245_v40, %v8381_v56  ;;  %4949 = vmatmul.mubr.msk.bf16.gmra.mrb[64].mxu0 %vm1625_vm5, %v8383_v9  ;;  %v1259_v56 = vrot.slane %v6450_v21, 1  ;;  %v6916_v40 = vsel %vm1268_vm2, %v8384_v11, %v1247_v55  ;;  %8385 = vst [vmem:[#allocation28_spill] sm:$0xff] %v6920_v35  ;;  %v1257_v21 = vrot.slane %v6476_v7, 1  ;;  %v8389_v11 = vld [vmem:[#allocation36_spill] sm:$0xff] }
 0x138   : > { %4952 = vmatprep.mubr.msk.bf16.mxu0 %vm1625_vm5, %v8386_v53  ;;  %v6932_v55 = vsel %vm1268_vm2, %v1248_v12, %v1249_v26  ;;  %v6938_v7 = vsel %vm1268_vm2, %v1251_v54, %v1252_v58  ;;  %v6942_v60 = vsel %vm1268_vm2, %v1250_v33, %v1251_v54  ;;  %v6946_v39 = vsel %vm1268_vm2, %v1253_v10, %v1254_v3  ;;  %v6961_v33 = vpop.permute.xlu0 %1023 }
 0x139   : > { %8387 = vst [vmem:[#allocation27_spill] sm:$0xff] %v6932_v55  ;;  %v1262_v12 = vrot.slane %v6571_v24, 1  ;;  %v1263_v26 = vrot.slane %v6573_v23, 1  ;;  %v8390_v53 = vpack.c.bf16 %v8388_v36, %v8389_v11  ;;  %v1261_v55 = vrot.slane %v6582_v13, 1 }
 0x13a   : > { %v1264_v35 = vrot.slane %v6661_v5, 1  ;;  %v6967_v24 = vsel %vm1268_vm2, %v1252_v58, %v1253_v10  ;;  %v6971_v23 = vsel %vm1268_vm2, %v1255_v27, %v1256_v43  ;;  %v1265_v42 = vrot.slane %v6671_v47, 1 }
 0x13b   : > { %v6957_v9 = vsel %vm6773_vm0, %v8390_v53, 0  ;;  %v6978_v53 = vsel %vm1268_vm2, %v1254_v3, %v1255_v27  ;;  %v6982_v13 = vsel %vm1268_vm2, %v1257_v21, %v1258_v45  ;;  %v6988_v58 = vsel %vm1268_vm2, %v1256_v43, %v1257_v21  ;;  %v8394_v27 = vld [vmem:[#allocation5_spill] sm:$0xff] }
 0x13c   : > { %v6992_v47 = vsel %vm1268_vm2, %v1259_v56, %v1260_v14  ;;  %v6996_v10 = vsel %vm1268_vm2, %v1258_v45, %v1259_v56  ;;  %vm1044_vm9 = vcmp.eq.s32.totalorder %v8394_v27, 1  ;;  %v1266_v43 = vrot.slane %v6659_v15, 1  ;;  %4869 = vmatmul.mubr.msk.bf16.gmra.mrb[20].mxu1 %vm1625_vm5, %v6957_v9  ;;  %v8395_v21 = vld [vmem:[#allocation37_spill] sm:$0xff]  ;;  %v8396_v45 = vld [vmem:[#allocation38_spill] sm:$0xff]  ;;  %v7064_v8 = vpop.permute.xlu0 %1350  ;;  %v8421_v15 = vld [vmem:[#allocation7_spill] sm:$0xff] }
 0x13d   : > { %8391 = vst [vmem:[#allocation2_spill] sm:$0xff] %v6996_v10  ;;  %v8397_v56 = vpack.c.bf16 %v8395_v21, %v8396_v45  ;;  %v1267_v5 = vrot.slane %v6663_v62, 1  ;;  %v7036_v21 = vsel %vm1268_vm2, %v1261_v55, %v1262_v12  ;;  %v7040_v17 = vsel %vm1268_vm2, %v1260_v14, %v1261_v55  ;;  %v7049_v45 = vpop.permute.xlu1 %1353  ;;  %vm1076_vm13 = vmpackc.low %vm1044_vm9, %vm1044_vm9  ;;  %v8410_v27 = vld [vmem:[#allocation41_spill] sm:$0xff]  ;;  %v8432_v55 = vld [vmem:[#allocation14_spill] sm:$0xff] }
 0x13e   : > { %8400 = vst [vmem:[#allocation19_spill] sm:$0xff] %v7036_v21  ;;  %8401 = vst [vmem:[#allocation25_spill] sm:$0xff] %v7040_v17  ;;  %v7055_v18 = vsel %vm1268_vm2, %v1263_v26, %v1264_v35  ;;  %v7059_v14 = vsel %vm1268_vm2, %v1262_v12, %v1263_v26  ;;  %v7074_v11 = vsel %vm1268_vm2, %v1264_v35, %v1265_v42  ;;  %v8408_v36 = vmov 0   ;;  %v8409_v26 = vld [vmem:[#allocation42_spill] sm:$0xff]  ;;  %v8449_v10 = vld [vmem:[#allocation32_spill] sm:$0xff] }
 0x13f   : > { %4953 = vmatmul.mubr.msk.bf16.gmra.mrb[68].mxu0 %vm1625_vm5, %v6496_v1  ;;  %v7016_v29 = vsel %vm6835_vm3, %v8397_v56, 0  ;;  %8404 = vst [vmem:[#allocation3_spill] sm:$0xff] %v7055_v18  ;;  %8405 = vst [vmem:[#allocation13_spill] sm:$0xff] %v7059_v14  ;;  %v7070_v56 = vsel %vm1268_vm2, %v1265_v42, %v1266_v43  ;;  %v1107_v12 = vsel %vm7001_vm8, 65537, %v8408_v36  ;;  %v8411_v54 = vcombine.low %v8409_v26, %v8410_v27  ;;  %v8413_v1 = vld [vmem:[#allocation44_spill] sm:$0xff]  ;;  %v8417_v42 = vld [vmem:[#allocation6_spill] sm:$0xff] }
 0x140   : > { %4872 = vmatprep.mubr.msk.bf16.mxu1 %vm1625_vm5, %v7016_v29  ;;  %4956 = vmatprep.mubr.msk.bf16.mxu0 %vm1625_vm5, %v6602_v22  ;;  %8406 = vst [vmem:[#allocation4_spill] sm:$0xff] %v7070_v56  ;;  %8407 = vst [vmem:[#allocation35_spill] sm:$0xff] %v7074_v11  ;;  %v8412_v22 = vld [vmem:[#allocation46_spill] sm:$0xff]  ;;  %v1106_v35 = vsel %vm7023_vm11, 65537, %v8408_v36  ;;  %vm1047_vm0 = vcmp.eq.s32.totalorder %v8417_v42, 1  ;;  %v7097_v3 = vsel %vm1268_vm2, %v1266_v43, %v1267_v5  ;;  %vm1046_vm1 = vcmp.eq.s32.totalorder %v8421_v15, 1 }
 0x141   : > { %vm1177_vm14 = vcmp.ne.s16.totalorder %v8411_v54, 0  ;;  %v8414_v17 = vcombine.low %v8412_v22, %v8413_v1  ;;  %8418 = vst [vmem:[#allocation36_spill] sm:$0xff] %v7097_v3  ;;  %v8419_v54 = vrot.slane %v6063_v63, 1  ;;  %v1109_v22 = vsel %vm7045_vm12, 65537, %v8408_v36  ;;  %v8422_v27 = vld [vmem:[#allocation9_spill] sm:$0xff]  ;;  %v8424_v42 = vld [vmem:[#allocation47_spill] sm:$0xff]  ;;  %v7119_v62 = vpop.permute.xlu1 %1359  ;;  %vm1078_vm7 = vmpackc.low %vm1046_vm1, %vm1046_vm1 }
 0x142   : > { %vm1049_vm3 = vcmp.eq.s32.totalorder %v8422_v27, 1  ;;  %v8423_v43 = vld [vmem:[#allocation45_spill] sm:$0xff]  ;;  %v4408_v20 = vcombine.low %v1106_v35, %v1107_v12  ;;  %v8428_v15 = vld [vmem:[#allocation48_spill] sm:$0xff]  ;;  %v7132_v12 = vpop.permute.xlu0 %1356  ;;  %v8431_v35 = vld [vmem:[#allocation59_spill] sm:$0xff]  ;;  %vm1051_vm12 = vcmp.eq.s32.totalorder %v8432_v55, 1 }
 0x143   : > { %vm7085_vm15 = vcmp.ne.s16.totalorder %v8414_v17, 0  ;;  %v7103_v1 = vsel %vm1268_vm2, %v1267_v5, %v8419_v54  ;;  %v1108_v17 = vsel %vm1076_vm13, 65537, %v8408_v36  ;;  %v8425_v63 = vpack.c.bf16 %v8423_v43, %v8424_v42  ;;  %vm1079_vm2 = vmpackc.low %vm1047_vm0, %vm1047_vm0  ;;  %v8426_v5 = vld [vmem:[#allocation11_spill] sm:$0xff]  ;;  %v8427_v54 = vld [vmem:[#allocation50_spill] sm:$0xff] }
 0x144   : > { %8420 = vst [vmem:[#allocation5_spill] sm:$0xff] %v7103_v1  ;;  %vm1048_vm4 = vcmp.eq.s32.totalorder %v8426_v5, 1  ;;  %v8429_v26 = vld [vmem:[#allocation49_spill] sm:$0xff]  ;;  %v4409_v42 = vcombine.low %v1108_v17, %v1109_v22  ;;  %vm1081_vm8 = vmpackc.low %vm1049_vm3, %vm1049_vm3  ;;  %vm1179_vm11 = vcmp.ne.s16.totalorder %v4408_v20, 0  ;;  %v8433_v5 = vld [vmem:[#allocation15_spill] sm:$0xff] }
 0x145   : > { %v7116_v14 = vsel %vm1177_vm14, %v8425_v63, 0  ;;  %v8430_v27 = vpack.c.bf16 %v8428_v15, %v8429_v26  ;;  %vm1080_vm9 = vmpackc.low %vm1048_vm4, %vm1048_vm4  ;;  %v1111_v63 = vsel %vm1079_vm2, 65537, %v8408_v36  ;;  %v1110_v26 = vsel %vm1078_vm7, 65537, %v8408_v36  ;;  %v7144_v15 = vpop.permute.xlu1 %1365  ;;  %v8435_v20 = vld [vmem:[#allocation51_spill] sm:$0xff]  ;;  %v8439_v55 = vld [vmem:[#allocation54_spill] sm:$0xff] }
 0x146   : > { %4873 = vmatmul.mubr.msk.bf16.gmra.mrb[24].mxu1 %vm1625_vm5, %v7116_v14  ;;  %vm1180_vm13 = vcmp.ne.s16.totalorder %v4409_v42, 0  ;;  %v1113_v22 = vsel %vm1081_vm8, 65537, %v8408_v36  ;;  %v1112_v17 = vsel %vm1080_vm9, 65537, %v8408_v36  ;;  %vm1050_vm14 = vcmp.eq.s32.totalorder %v8433_v5, 1  ;;  %vm1083_vm0 = vmpackc.low %vm1051_vm12, %vm1051_vm12  ;;  %v8438_v42 = vld [vmem:[#allocation21_spill] sm:$0xff]  ;;  %v8440_v5 = vld [vmem:[#allocation55_spill] sm:$0xff] }
 0x147   : > { %4957 = vmatmul.mubr.msk.bf16.gmra.mrb[72].mxu0 %vm1625_vm5, %v8427_v54  ;;  %v7130_v43 = vsel %vm7085_vm15, %v8430_v27, 0  ;;  %v8434_v27 = vld [vmem:[#allocation20_spill] sm:$0xff]  ;;  %v8436_v54 = vld [vmem:[#allocation53_spill] sm:$0xff]  ;;  %v4410_v11 = vcombine.low %v1110_v26, %v1111_v63  ;;  %vm1052_vm1 = vcmp.eq.s32.totalorder %v8438_v42, 1  ;;  %v4411_v18 = vcombine.low %v1112_v17, %v1113_v22  ;;  %vm1082_vm3 = vmpackc.low %vm1050_vm14, %vm1050_vm14 }
 0x148   : > { %4876 = vmatprep.mubr.msk.bf16.mxu1 %vm1625_vm5, %v7130_v43  ;;  %4960 = vmatprep.mubr.msk.bf16.mxu0 %vm1625_vm5, %v8431_v35  ;;  %vm1053_vm15 = vcmp.eq.s32.totalorder %v8434_v27, 1  ;;  %v7147_v35 = vpop.permute.xlu0 %1362  ;;  %v8437_v3 = vpack.c.bf16 %v8435_v20, %v8436_v54  ;;  %v8441_v27 = vpack.c.bf16 %v8439_v55, %v8440_v5  ;;  %vm1084_vm4 = vmpackc.low %vm1052_vm1, %vm1052_vm1  ;;  %v1115_v54 = vsel %vm1083_vm0, 65537, %v8408_v36  ;;  %v8442_v26 = vld [vmem:[#allocation24_spill] sm:$0xff]  ;;  %v8443_v42 = vld [vmem:[#allocation26_spill] sm:$0xff] }
 0x149   : > { %vm1085_vm2 = vmpackc.low %vm1053_vm15, %vm1053_vm15  ;;  %vm1181_vm7 = vcmp.ne.s16.totalorder %v4410_v11, 0  ;;  %v1114_v63 = vsel %vm1082_vm3, 65537, %v8408_v36  ;;  %vm1055_vm8 = vcmp.eq.s32.totalorder %v8442_v26, 1  ;;  %vm1182_vm9 = vcmp.ne.s16.totalorder %v4411_v18, 0  ;;  %v8444_v55 = vld [vmem:[#allocation30_spill] sm:$0xff]  ;;  %v8445_v5 = vld [vmem:[#allocation56_spill] sm:$0xff] }
 0x14a   : > { %v7152_v1 = vsel %vm1179_vm11, %v8437_v3, 0  ;;  %v7162_v56 = vsel %vm1180_vm13, %v8441_v27, 0  ;;  %v7168_v3 = vpop.permute.xlu1 %1371  ;;  %v1117_v22 = vsel %vm1085_vm2, 65537, %v8408_v36  ;;  %v1116_v17 = vsel %vm1084_vm4, 65537, %v8408_v36  ;;  %v8446_v27 = vld [vmem:[#allocation57_spill] sm:$0xff]  ;;  %vm1087_vm13 = vmpackc.low %vm1055_vm8, %vm1055_vm8  ;;  %v8450_v18 = vld [vmem:[#allocation60_spill] sm:$0xff] }
 0x14b   : > { %vm1054_vm11 = vcmp.eq.s32.totalorder %v8443_v42, 1  ;;  %vm1057_vm12 = vcmp.eq.s32.totalorder %v8444_v55, 1  ;;  %v8447_v11 = vpack.c.bf16 %v8445_v5, %v8446_v27  ;;  %v4412_v26 = vcombine.low %v1114_v63, %v1115_v54 }
 0x14c   : > { %v7173_v20 = vpop.permute.xlu0 %1368  ;;  %vm1056_vm14 = vcmp.eq.s32.totalorder %v8449_v10, 1  ;;  %v8451_v42 = vpack.c.bf16 %v6711_v30, %v8450_v18  ;;  %v4413_v5 = vcombine.low %v1116_v17, %v1117_v22  ;;  %vm1086_vm15 = vmpackc.low %vm1054_vm11, %vm1054_vm11  ;;  %v1119_v30 = vsel %vm1087_vm13, 65537, %v8408_v36 }
 0x14d   : > { %vm1089_vm0 = vmpackc.low %vm1057_vm12, %vm1057_vm12  ;;  %vm1183_vm3 = vcmp.ne.s16.totalorder %v4412_v26, 0  ;;  %v1118_v54 = vsel %vm1086_vm15, 65537, %v8408_v36  ;;  %vm1059_vm2 = vcmp.eq.s32.totalorder %v6948_v0, 1  ;;  %vm1446_vm8 = vcmp.eq.s32.totalorder %v7049_v45, 1 }
 0x14e   : > { %4877 = vmatmul.mubr.msk.bf16.gmra.mrb[28].mxu1 %vm1625_vm5, %v7152_v1  ;;  %v7194_v55 = vsel %vm1182_vm9, %v8451_v42, 0  ;;  %vm1088_vm1 = vmpackc.low %vm1056_vm14, %vm1056_vm14  ;;  %vm1184_vm4 = vcmp.ne.s16.totalorder %v4413_v5, 0  ;;  %v1121_v63 = vsel %vm1089_vm0, 65537, %v8408_v36  ;;  %v4414_v27 = vcombine.low %v1118_v54, %v1119_v30 }
 0x14f   : > { %4961 = vmatmul.mubr.msk.bf16.gmra.mrb[76].mxu0 %vm1625_vm5, %v6680_v28  ;;  %4880 = vmatprep.mubr.msk.bf16.mxu1 %vm1625_vm5, %v7162_v56  ;;  %v8448_v28 = vld [vmem:[#allocation39_spill] sm:$0xff]  ;;  %v1120_v22 = vsel %vm1088_vm1, 65537, %v8408_v36  ;;  %vm1091_vm9 = vmpackc.low %vm1059_vm2, %vm1059_vm2  ;;  %vm1445_vm11 = vcmp.eq.s32.totalorder %v7064_v8, 1  ;;  %v8453_v0 = vpack.c.bf16 %v6729_v50, %v6733_v32  ;;  %vm1448_vm0 = vcmp.eq.s32.totalorder %v7119_v62, 1 }
 0x150   : > { %4966 = vmatprep.mubr.msk.bf16.mxu0 %vm1625_vm5, %v6737_v61  ;;  %v7182_v61 = vsel %vm1181_vm7, %v8447_v11, 0  ;;  %v2663_v21 = vsel %vm1674_vm10, %v8448_v28, 0  ;;  %v7200_v28 = vpop.permute.xlu1 %1377  ;;  %v7202_v10 = vpop.permute.xlu0 %1374  ;;  %vm1058_vm7 = vcmp.eq.s32.totalorder %v6961_v33, 1  ;;  %vm1478_vm13 = vmpackc.low %vm1446_vm8, %vm1446_vm8  ;;  %vm1185_vm15 = vcmp.ne.s16.totalorder %v4414_v27, 0 }
 0x151   : > { %v7226_v33 = vsel %vm1184_vm4, %v8453_v0, 0  ;;  %vm1090_vm12 = vmpackc.low %vm1058_vm7, %vm1058_vm7  ;;  %v1123_v45 = vsel %vm1091_vm9, 65537, %v8408_v36  ;;  %v1510_v50 = vsel %vm1478_vm13, 65537, %v8408_v36  ;;  %vm1450_vm2 = vcmp.eq.s32.totalorder %v7144_v15, 1 }
 0x152   : > { %vm1477_vm14 = vmpackc.low %vm1445_vm11, %vm1445_vm11  ;;  %v1122_v8 = vsel %vm1090_vm12, 65537, %v8408_v36  ;;  %v8454_v42 = vpack.c.bf16 %v6745_v41, %v6756_v19  ;;  %vm1449_vm7 = vcmp.eq.s32.totalorder %v7147_v35, 1  ;;  %v8455_v62 = vpack.c.bf16 %v6781_v51, %v6785_v6 }
 0x153   : > { %v1509_v32 = vsel %vm1477_vm14, 65537, %v8408_v36  ;;  %v4416_v30 = vcombine.low %v1122_v8, %v1123_v45  ;;  %vm1480_vm4 = vmpackc.low %vm1448_vm0, %vm1448_vm0  ;;  %vm1452_vm14 = vcmp.eq.s32.totalorder %v7168_v3, 1  ;;  %vm1454_vm0 = vcmp.eq.s32.totalorder %v7200_v28, 1 }
 0x154   : > { %v7217_v11 = vpop.permute.xlu1 %1383  ;;  %v7248_v5 = vsel %vm1185_vm15, %v8454_v42, 0  ;;  %v4417_v15 = vcombine.low %v1509_v32, %v1510_v50  ;;  %vm1482_vm9 = vmpackc.low %vm1450_vm2, %vm1450_vm2  ;;  %v1512_v19 = vsel %vm1480_vm4, 65537, %v8408_v36  ;;  %vm1451_vm15 = vcmp.eq.s32.totalorder %v7173_v20, 1  ;;  %v8461_v50 = vld [vmem:[#allocation17_spill] sm:$0xff]  ;;  %v8462_v32 = vld [vmem:[#allocation10_spill] sm:$0xff] }
 0x155   : > { %vm1481_vm11 = vmpackc.low %vm1449_vm7, %vm1449_vm7  ;;  %vm1187_vm12 = vcmp.ne.s16.totalorder %v4416_v30, 0  ;;  %v1514_v35 = vsel %vm1482_vm9, 65537, %v8408_v36  ;;  %v8458_v3 = vpack.c.bf16 %v6801_v2, %v6814_v25  ;;  %v3119_v8 = vsel %vm1674_vm10, %v6870_v52, 0 }
 0x156   : > { %4881 = vmatmul.mubr.msk.bf16.gmra.mrb[0].mxu1 %vm1625_vm5, %v7182_v61  ;;  %vm1589_vm13 = vcmp.ne.s16.totalorder %v4417_v15, 0  ;;  %v1513_v54 = vsel %vm1481_vm11, 65537, %v8408_v36  ;;  %vm1483_vm2 = vmpackc.low %vm1451_vm15, %vm1451_vm15  ;;  %vm1456_vm11 = vcmp.eq.s32.totalorder %v7217_v11, 1  ;;  %v8463_v42 = vpack.c.bf16 %v8461_v50, %v8462_v32  ;;  %v7315_v11 = vld [vmem:[%s8174_s5 + $0xc] sm:$0x3] }
 0x157   : > { %4967 = vmatmul.mubr.msk.bf16.vlgmr.msra.gmra.mrb[48].mxu0 %vm1625_vm5, %v6768_v57  ;;  %4884 = vmatprep.mubr.msk.bf16.mxu1 %vm1625_vm5, %v7194_v55  ;;  %v7288_v20 = vsel %vm1589_vm13, %v8458_v3, 0  ;;  %v4419_v28 = vcombine.low %v1513_v54, %v1514_v35  ;;  %vm1486_vm4 = vmpackc.low %vm1454_vm0, %vm1454_vm0  ;;  %v1515_v25 = vsel %vm1483_vm2, 65537, %v8408_v36 }
 0x158   : > { %4970 = vmatprep.mubr.msk.bf16.mxu0 %vm1625_vm5, %v6830_v46  ;;  %4999 = vmatpush3.bf16.msra.mxu0 %v2663_v21  ;;  %v8452_v21 = vpack.c.bf16 %v6719_v49, %v6725_v31  ;;  %v4415_v49 = vcombine.low %v1120_v22, %v1121_v63  ;;  %v7228_v31 = vpop.permute.xlu0 %1380  ;;  %v7240_v26 = vpop.permute.xlu1 %1389  ;;  %v8456_v63 = vld [vmem:[#allocation62_spill] sm:$0xff] }
 0x159   : > { %v8457_v22 = vpack.c.bf16 %v6789_v38, %v8456_v63  ;;  %vm7294_vm9 = vcmp.ne.s16.totalorder %v4419_v28, 0  ;;  %vm1458_vm13 = vcmp.eq.s32.totalorder %v7240_v26, 1 }
 0x15a   : > { %v7214_v17 = vsel %vm1183_vm3, %v8452_v21, 0  ;;  %vm1186_vm1 = vcmp.ne.s16.totalorder %v4415_v49, 0  ;;  %vm1447_vm3 = vcmp.eq.s32.totalorder %v7132_v12, 1  ;;  %v1518_v49 = vsel %vm1486_vm4, 65537, %v8408_v36 }
 0x15b   : > { %v7258_v12 = vsel %vm1186_vm1, %v8455_v62, 0  ;;  %vm1479_vm8 = vmpackc.low %vm1447_vm3, %vm1447_vm3  ;;  %v7278_v21 = vsel %vm1187_vm12, %v8457_v22, 0  ;;  %vm1453_vm3 = vcmp.eq.s32.totalorder %v7202_v10, 1  ;;  %vm1455_vm12 = vcmp.eq.s32.totalorder %v7228_v31, 1 }
 0x15c   : > { %v7243_v18 = vpop.permute.xlu0 %1386  ;;  %v7264_v41 = vpop.permute.xlu1 %1395  ;;  %v1511_v51 = vsel %vm1479_vm8, 65537, %v8408_v36  ;;  %vm1484_vm1 = vmpackc.low %vm1452_vm14, %vm1452_vm14  ;;  %v8466_v31 = vpack.c.bf16 %v6845_v44, %v6856_v59 }
 0x15d   : > { %v4418_v27 = vcombine.low %v1511_v51, %v1512_v19  ;;  %vm1485_vm7 = vmpackc.low %vm1453_vm3, %vm1453_vm3  ;;  %v1516_v2 = vsel %vm1484_vm1, 65537, %v8408_v36  ;;  %vm1457_vm15 = vcmp.eq.s32.totalorder %v7243_v18, 1 }
 0x15e   : > { %4885 = vmatmul.mubr.msk.bf16.gmra.mrb[4].mxu1 %vm1625_vm5, %v7214_v17  ;;  %v1517_v45 = vsel %vm1485_vm7, 65537, %v8408_v36  ;;  %v4420_v62 = vcombine.low %v1515_v25, %v1516_v2  ;;  %vm7317_vm14 = vmpackc.low %vm1456_vm11, %vm1456_vm11  ;;  %v7331_v26 = vsel %vm7294_vm9, %v8466_v31, 0  ;;  %vm1460_vm7 = vcmp.eq.s32.totalorder %v7264_v41, 1 }
 0x15f   : > { %4971 = vmatmul.mubr.msk.bf16.gmra.mrb[52].mxu0 %vm1625_vm5, %v6957_v9  ;;  %4888 = vmatprep.mubr.msk.bf16.mxu1 %vm1625_vm5, %v7226_v33  ;;  %vm1590_vm8 = vcmp.ne.s16.totalorder %v4418_v27, 0  ;;  %v4421_v19 = vcombine.low %v1517_v45, %v1518_v49  ;;  %vm1487_vm0 = vmpackc.low %vm1455_vm12, %vm1455_vm12  ;;  %v1520_v59 = vsel %vm7317_vm14, 65537, %v8408_v36  ;;  %v8469_v27 = vpack.c.bf16 %v6864_v48, %v6880_v16  ;;  %v8472_v45 = vld [vmem:[#allocation28_spill] sm:$0xff] }
 0x160   : > { %4974 = vmatprep.mubr.msk.bf16.mxu0 %vm1625_vm5, %v7016_v29  ;;  %v7269_v6 = vpop.permute.xlu0 %1392  ;;  %v1402_v38 = vpop.permute.xlu1 %1401  ;;  %v7310_v30 = vsel %vm1590_vm8, %v8463_v42, 0  ;;  %vm1490_vm1 = vmpackc.low %vm1458_vm13, %vm1458_vm13  ;;  %vm1592_vm2 = vcmp.ne.s16.totalorder %v4420_v62, 0  ;;  %v1519_v18 = vsel %vm1487_vm0, 65537, %v8408_v36  ;;  %v8470_v41 = vpack.c.bf16 %v6886_v34, %v6892_v4 }
 0x161   : > { %vm1489_vm3 = vmpackc.low %vm1457_vm15, %vm1457_vm15  ;;  %vm7339_vm4 = vcmp.ne.s16.totalorder %v4421_v19, 0  ;;  %v1522_v35 = vsel %vm1490_vm1, 65537, %v8408_v36  ;;  %vm1459_vm8 = vcmp.eq.s32.totalorder %v7269_v6, 1  ;;  %vm1462_vm9 = vcmp.eq.s32.totalorder %v1402_v38, 1 }
 0x162   : > { %v1521_v54 = vsel %vm1489_vm3, 65537, %v8408_v36  ;;  %v7354_v3 = vsel %vm1592_vm2, %v8469_v27, 0  ;;  %v4422_v28 = vcombine.low %v1519_v18, %v1520_v59  ;;  %vm1492_vm11 = vmpackc.low %vm1460_vm7, %vm1460_vm7  ;;  %v7365_v6 = vsel %vm7339_vm4, %v8470_v41, 0 }
 0x163   : > { %v4423_v38 = vcombine.low %v1521_v54, %v1522_v35  ;;  %vm1491_vm13 = vmpackc.low %vm1459_vm8, %vm1459_vm8  ;;  %v1524_v16 = vsel %vm1492_vm11, 65537, %v8408_v36  ;;  %v8471_v2 = vpack.c.bf16 %v6910_v37, %v6916_v40  ;;  %v8475_v19 = vpack.c.bf16 %v6938_v7, %v6942_v60 }
 0x164   : > { %v1399_v10 = vpop.permute.xlu0 %1398  ;;  %v1408_v52 = vpop.permute.xlu1 %1407  ;;  %vm1494_vm14 = vmpackc.low %vm1462_vm9, %vm1462_vm9  ;;  %vm1594_vm0 = vcmp.ne.s16.totalorder %v4422_v28, 0  ;;  %v1523_v4 = vsel %vm1491_vm13, 65537, %v8408_v36  ;;  %v8476_v18 = vpack.c.bf16 %v6946_v39, %v6967_v24  ;;  %v8479_v41 = vpack.c.bf16 %v6971_v23, %v6978_v53 }
 0x165   : > { %vm1461_vm12 = vcmp.eq.s32.totalorder %v1399_v10, 1  ;;  %vm1595_vm1 = vcmp.ne.s16.totalorder %v4423_v38, 0  ;;  %vm1464_vm3 = vcmp.eq.s32.totalorder %v1408_v52, 1  ;;  %v1526_v10 = vsel %vm1494_vm14, 65537, %v8408_v36 }
 0x166   : > { %4889 = vmatmul.mubr.msk.bf16.gmra.mrb[8].mxu1 %vm1625_vm5, %v7248_v5  ;;  %vm1493_vm15 = vmpackc.low %vm1461_vm12, %vm1461_vm12  ;;  %v7378_v25 = vsel %vm1594_vm0, %v8471_v2, 0  ;;  %v4424_v49 = vcombine.low %v1523_v4, %v1524_v16  ;;  %v8480_v16 = vpack.c.bf16 %v6982_v13, %v6988_v58  ;;  %v8481_v2 = vld [vmem:[#allocation2_spill] sm:$0xff] }
 0x167   : > { %4975 = vmatmul.mubr.msk.bf16.gmra.mrb[56].mxu0 %vm1625_vm5, %v7116_v14  ;;  %4892 = vmatprep.mubr.msk.bf16.mxu1 %vm1625_vm5, %v7258_v12  ;;  %v1525_v0 = vsel %vm1493_vm15, 65537, %v8408_v36  ;;  %vm1496_vm7 = vmpackc.low %vm1464_vm3, %vm1464_vm3 }
 0x168   : > { %4978 = vmatprep.mubr.msk.bf16.mxu0 %vm1625_vm5, %v7130_v43  ;;  %v1405_v51 = vpop.permute.xlu0 %1404  ;;  %v1414_v63 = vpop.permute.xlu1 %1413  ;;  %v4425_v42 = vcombine.low %v1525_v0, %v1526_v10  ;;  %vm1596_vm13 = vcmp.ne.s16.totalorder %v4424_v49, 0  ;;  %v1528_v62 = vsel %vm1496_vm7, 65537, %v8408_v36  ;;  %v8482_v49 = vpack.c.bf16 %v6992_v47, %v8481_v2  ;;  %v8503_v2 = vld [vmem:[#allocation34_spill] sm:$0xff] }
 0x169   : > { %vm1463_vm2 = vcmp.eq.s32.totalorder %v1405_v51, 1  ;;  %vm1466_vm4 = vcmp.eq.s32.totalorder %v1414_v63, 1  ;;  %v7400_v51 = vsel %vm1596_vm13, %v8475_v19, 0 }
 0x16a   : > { %vm1495_vm9 = vmpackc.low %vm1463_vm2, %vm1463_vm2  ;;  %vm1597_vm14 = vcmp.ne.s16.totalorder %v4425_v42, 0  ;;  %v8484_v42 = vld [vmem:[#allocation25_spill] sm:$0xff] }
 0x16b   : > { %vm1498_vm11 = vmpackc.low %vm1466_vm4, %vm1466_vm4  ;;  %v1527_v15 = vsel %vm1495_vm9, 65537, %v8408_v36  ;;  %v7409_v35 = vsel %vm1597_vm14, %v8476_v18, 0  ;;  %v8489_v18 = vld [vmem:[#allocation4_spill] sm:$0xff] }
 0x16c   : > { %v1411_v22 = vpop.permute.xlu0 %1410  ;;  %v1420_v48 = vpop.permute.xlu1 %1419  ;;  %v1530_v52 = vsel %vm1498_vm11, 65537, %v8408_v36  ;;  %v4426_v44 = vcombine.low %v1527_v15, %v1528_v62 }
 0x16d   : > { %vm1465_vm8 = vcmp.eq.s32.totalorder %v1411_v22, 1  ;;  %vm1468_vm15 = vcmp.eq.s32.totalorder %v1420_v48, 1 }
 0x16e   : > { %4893 = vmatmul.mubr.msk.bf16.gmra.mrb[12].mxu1 %vm1625_vm5, %v7278_v21  ;;  %vm1497_vm12 = vmpackc.low %vm1465_vm8, %vm1465_vm8  ;;  %vm1598_vm9 = vcmp.ne.s16.totalorder %v4426_v44, 0 }
 0x16f   : > { %4979 = vmatmul.mubr.msk.bf16.gmra.mrb[60].mxu0 %vm1625_vm5, %v7152_v1  ;;  %4898 = vmatprep.mubr.msk.bf16.mxu1 %vm1625_vm5, %v7288_v20  ;;  %v1529_v31 = vsel %vm1497_vm12, 65537, %v8408_v36  ;;  %vm1500_vm3 = vmpackc.low %vm1468_vm15, %vm1468_vm15  ;;  %v7426_v38 = vsel %vm1598_vm9, %v8479_v41, 0  ;;  %v8496_v41 = vld [vmem:[#allocation8_spill] sm:$0xff] }
 0x170   : > { %4982 = vmatprep.mubr.msk.bf16.mxu0 %vm1625_vm5, %v7162_v56  ;;  %v1417_v34 = vpop.permute.xlu0 %1416  ;;  %v1426_v37 = vpop.permute.xlu1 %1425  ;;  %v4427_v54 = vcombine.low %v1529_v31, %v1530_v52  ;;  %v1532_v39 = vsel %vm1500_vm3, 65537, %v8408_v36  ;;  %v8486_v52 = vld [vmem:[#allocation3_spill] sm:$0xff]  ;;  %v8487_v31 = vld [vmem:[#allocation13_spill] sm:$0xff] }
 0x171   : > { %vm1467_vm0 = vcmp.eq.s32.totalorder %v1417_v34, 1  ;;  %v8488_v19 = vpack.c.bf16 %v8486_v52, %v8487_v31 }
 0x172   : > { %vm1499_vm4 = vmpackc.low %vm1467_vm0, %vm1467_vm0  ;;  %vm7415_vm11 = vcmp.ne.s16.totalorder %v4427_v54, 0  ;;  %v8490_v54 = vld [vmem:[#allocation35_spill] sm:$0xff] }
 0x173   : > { %v1531_v24 = vsel %vm1499_vm4, 65537, %v8408_v36  ;;  %v7437_v4 = vsel %vm7415_vm11, %v8480_v16, 0  ;;  %v8499_v16 = vld [vmem:[#allocation23_spill] sm:$0xff] }
 0x174   : > { %v1423_v40 = vpop.permute.xlu0 %1422  ;;  %v1432_v59 = vpop.permute.xlu1 %1431  ;;  %v4428_v48 = vcombine.low %v1531_v24, %v1532_v39  ;;  %v8493_v39 = vld [vmem:[#allocation36_spill] sm:$0xff] }
 0x175   : > { %vm1469_vm2 = vcmp.eq.s32.totalorder %v1423_v40, 1  ;;  %vm1472_vm12 = vcmp.eq.s32.totalorder %v1432_v59, 1 }
 0x176   : > { %4899 = vmatmul.mubr.msk.bf16.vlgmr.msra.gmra.mrb[16].mxu1 %vm1625_vm5, %v7310_v30  ;;  %vm1501_vm8 = vmpackc.low %vm1469_vm2, %vm1469_vm2  ;;  %vm1600_vm4 = vcmp.ne.s16.totalorder %v4428_v48, 0  ;;  %v8497_v48 = vld [vmem:[#allocation18_spill] sm:$0xff] }
 0x177   : > { %4983 = vmatmul.mubr.msk.bf16.gmra.mrb[64].mxu0 %vm1625_vm5, %v7182_v61  ;;  %5033 = vmatpush3.bf16.msra.mxu1 %v3119_v8  ;;  %v8473_v8 = vld [vmem:[#allocation27_spill] sm:$0xff]  ;;  %v1533_v22 = vsel %vm1501_vm8, 65537, %v8408_v36  ;;  %vm1504_vm15 = vmpackc.low %vm1472_vm12, %vm1472_vm12 }
 0x178   : > { %4902 = vmatprep.mubr.msk.bf16.mxu1 %vm1625_vm5, %v7331_v26  ;;  %4986 = vmatprep.mubr.msk.bf16.mxu0 %vm1625_vm5, %v7194_v55  ;;  %v8474_v50 = vpack.c.bf16 %v8472_v45, %v8473_v8  ;;  %v1429_v7 = vpop.permute.xlu0 %1428  ;;  %v1438_v27 = vpop.permute.xlu1 %1437  ;;  %v1536_v23 = vsel %vm1504_vm15, 65537, %v8408_v36  ;;  %v7450_v45 = vsel %vm1600_vm4, %v8482_v49, 0 }
 0x179   : > { %5370 = vmatprep.subr.msk.bf16.mxu1 %vm1674_vm10, %v7315_v11  ;;  %vm1471_vm13 = vcmp.eq.s32.totalorder %v1429_v7, 1  ;;  %vm1474_vm14 = vcmp.eq.s32.totalorder %v1438_v27, 1  ;;  %v8491_v7 = vpack.c.bf16 %v8489_v18, %v8490_v54  ;;  %v3283_v27 = vsel %vm1674_vm10, %v7315_v11, 0  ;;  %v8498_v11 = vld [vmem:[#allocation16_spill] sm:$0xff] }
 0x17a   : > { %v7387_v32 = vsel %vm1595_vm1, %v8474_v50, 0  ;;  %vm1470_vm1 = vcmp.eq.s32.totalorder %v1426_v37, 1  ;;  %vm1506_vm3 = vmpackc.low %vm1474_vm14, %vm1474_vm14  ;;  %v8483_v50 = vld [vmem:[#allocation19_spill] sm:$0xff] }
 0x17b   : > { %vm1502_vm7 = vmpackc.low %vm1470_vm1, %vm1470_vm1  ;;  %v1538_v58 = vsel %vm1506_vm3, 65537, %v8408_v36  ;;  %v8485_v37 = vpack.c.bf16 %v8483_v50, %v8484_v42 }
 0x17c   : > { %v1534_v63 = vsel %vm1502_vm7, 65537, %v8408_v36  ;;  %v1435_v28 = vpop.permute.xlu0 %1434  ;;  %vm1503_vm1 = vmpackc.low %vm1471_vm13, %vm1471_vm13  ;;  %v1444_v13 = vpop.permute.xlu1 %1443 }
 0x17d   : > { %vm1473_vm0 = vcmp.eq.s32.totalorder %v1435_v28, 1  ;;  %v4429_v34 = vcombine.low %v1533_v22, %v1534_v63  ;;  %v1535_v53 = vsel %vm1503_vm1, 65537, %v8408_v36  ;;  %vm1476_vm8 = vcmp.eq.s32.totalorder %v1444_v13, 1  ;;  %v8495_v22 = vld [vmem:[#allocation12_spill] sm:$0xff] }
 0x17e   : > { %4903 = vmatmul.mubr.msk.bf16.gmra.mrb[20].mxu1 %vm1625_vm5, %v7354_v3  ;;  %vm1505_vm2 = vmpackc.low %vm1473_vm0, %vm1473_vm0  ;;  %v4430_v8 = vcombine.low %v1535_v53, %v1536_v23  ;;  %v4568_v28 = vld [vmem:[%s8174_s5 + $0x10] sm:$0x3]  ;;  %v8501_v23 = vld [vmem:[#allocation31_spill] sm:$0xff] }
 0x17f   : > { %4987 = vmatmul.mubr.msk.bf16.gmra.mrb[68].mxu0 %vm1625_vm5, %v7214_v17  ;;  %4906 = vmatprep.mubr.msk.bf16.mxu1 %vm1625_vm5, %v7365_v6  ;;  %vm1601_vm7 = vcmp.ne.s16.totalorder %v4429_v34, 0  ;;  %v1537_v10 = vsel %vm1505_vm2, 65537, %v8408_v36  ;;  %vm1508_vm11 = vmpackc.low %vm1476_vm8, %vm1476_vm8  ;;  %v8500_v34 = vld [vmem:[#allocation22_spill] sm:$0xff] }
 0x180   : > { %4990 = vmatprep.mubr.msk.bf16.mxu0 %vm1625_vm5, %v7226_v33  ;;  %v1441_v0 = vpop.permute.xlu0 %1440  ;;  %v7459_v40 = vsel %vm1601_vm7, %v8485_v37, 0  ;;  %v4431_v62 = vcombine.low %v1537_v10, %v1538_v58  ;;  %vm1602_vm13 = vcmp.ne.s16.totalorder %v4430_v8, 0  ;;  %v1540_v47 = vsel %vm1508_vm11, 65537, %v8408_v36  ;;  %v8504_v37 = vld [vmem:[#allocation33_spill] sm:$0xff] }
 0x181   : > { %vm1475_vm9 = vcmp.eq.s32.totalorder %v1441_v0, 1  ;;  %v7470_v44 = vsel %vm1602_vm13, %v8488_v19, 0  ;;  %v8502_v0 = vld [vmem:[#allocation29_spill] sm:$0xff]  ;;  %v8506_v19 = vld [vmem:[#allocation40_spill] sm:$0xff] }
 0x182   : > { %vm1507_vm12 = vmpackc.low %vm1475_vm9, %vm1475_vm9  ;;  %vm1603_vm14 = vcmp.ne.s16.totalorder %v4431_v62, 0  ;;  %v8505_v62 = vld [vmem:[#allocation43_spill] sm:$0xff] }
 0x183   : > { %v1539_v15 = vsel %vm1507_vm12, 65537, %v8408_v36  ;;  %v7479_v60 = vsel %vm1603_vm14, %v8491_v7, 0  ;;  %v8492_v36 = vld [vmem:[#allocation5_spill] sm:$0xff] }
 0x184   : > { %v4432_v59 = vcombine.low %v1539_v15, %v1540_v47  ;;  %v8494_v24 = vpack.c.bf16 %v8492_v36, %v8493_v39  ;;  %v7572_v36 = vpop.permute.xlu0 %2891 }
 0x186   : > { %4907 = vmatmul.mubr.msk.bf16.gmra.mrb[24].mxu1 %vm1625_vm5, %v7378_v25  ;;  %vm1604_vm15 = vcmp.ne.s16.totalorder %v4432_v59, 0  ;;  %v8507_v59 = vld [vmem:[#allocation52_spill] sm:$0xff] }
 0x187   : > { %4991 = vmatmul.mubr.msk.bf16.gmra.mrb[72].mxu0 %vm1625_vm5, %v7248_v5  ;;  %4910 = vmatprep.mubr.msk.bf16.mxu1 %vm1625_vm5, %v7387_v32  ;;  %v7488_v63 = vsel %vm1604_vm15, %v8494_v24, 0  ;;  %v8508_v24 = vld [vmem:[#allocation50_spill] sm:$0xff] }
 0x188   : > { %4994 = vmatprep.mubr.msk.bf16.mxu0 %vm1625_vm5, %v7258_v12 }
 0x18e   : > { %4911 = vmatmul.mubr.msk.bf16.gmra.mrb[28].mxu1 %vm1625_vm5, %v7400_v51 }
 0x18f   : > { %4995 = vmatmul.mubr.msk.bf16.gmra.mrb[76].mxu0 %vm1625_vm5, %v7278_v21  ;;  %4914 = vmatprep.mubr.msk.bf16.mxu1 %vm1625_vm5, %v7409_v35 }
 0x190   : > { %5000 = vmatprep.mubr.msk.bf16.mxu0 %vm1625_vm5, %v7288_v20 }
 0x196   : > { %4915 = vmatmul.mubr.msk.bf16.gmra.mrb[0].mxu1 %vm1625_vm5, %v7426_v38 }
 0x197   : > { %5001 = vmatmul.mubr.msk.bf16.vlgmr.msra.gmra.mrb[48].mxu0 %vm1625_vm5, %v7310_v30  ;;  %4918 = vmatprep.mubr.msk.bf16.mxu1 %vm1625_vm5, %v7437_v4 }
 0x198   : > { %5004 = vmatprep.mubr.msk.bf16.mxu0 %vm1625_vm5, %v7331_v26 }
 0x19e   : > { %4919 = vmatmul.mubr.msk.bf16.gmra.mrb[4].mxu1 %vm1625_vm5, %v7450_v45 }
 0x19f   : > { %5005 = vmatmul.mubr.msk.bf16.gmra.mrb[52].mxu0 %vm1625_vm5, %v7354_v3  ;;  %4922 = vmatprep.mubr.msk.bf16.mxu1 %vm1625_vm5, %v7459_v40 }
 0x1a0   : > { %5008 = vmatprep.mubr.msk.bf16.mxu0 %vm1625_vm5, %v7365_v6 }
 0x1a6   : > { %4923 = vmatmul.mubr.msk.bf16.gmra.mrb[8].mxu1 %vm1625_vm5, %v7470_v44 }
 0x1a7   : > { %5009 = vmatmul.mubr.msk.bf16.gmra.mrb[56].mxu0 %vm1625_vm5, %v7378_v25  ;;  %4926 = vmatprep.mubr.msk.bf16.mxu1 %vm1625_vm5, %v7479_v60 }
 0x1a8   : > { %5012 = vmatprep.mubr.msk.bf16.mxu0 %vm1625_vm5, %v7387_v32 }
 0x1ae   : > { %4927 = vmatmul.mubr.msk.bf16.gmra.mrb[12].mxu1 %vm1625_vm5, %v7488_v63 }
 0x1af   : > { %5013 = vmatmul.mubr.msk.bf16.gmra.mrb[60].mxu0 %vm1625_vm5, %v7400_v51  ;;  %5034 = vmatprep.mubr.msk.bf16.mxu1 %vm1625_vm5, %v8495_v22  ;;  %v8509_v22 = vld [vmem:[#allocation59_spill] sm:$0xff] }
 0x1b0   : > { %5016 = vmatprep.mubr.msk.bf16.mxu0 %vm1625_vm5, %v7409_v35 }
 0x1b6   : > { %5035 = vmatmul.mubr.msk.bf16.vlgmr.msra.gmra.mrb[32].mxu1 %vm1625_vm5, %v8496_v41  ;;  %v7582_v41 = vpop.permute.xlu0 %2897 }
 0x1b7   : > { %5017 = vmatmul.mubr.msk.bf16.gmra.mrb[64].mxu0 %vm1625_vm5, %v7426_v38  ;;  %5067 = vmatpush3.bf16.msra.mxu1 %v3283_v27  ;;  %v7580_v27 = vpop.permute.xlu1 %2894  ;;  %vm2988_vm0 = vcmp.eq.s32.totalorder %v7582_v41, 1 }
 0x1b8   : > { %5020 = vmatprep.mubr.msk.bf16.mxu0 %vm1625_vm5, %v7437_v4  ;;  %5038 = vmatprep.mubr.msk.bf16.mxu1 %vm1625_vm5, %v8497_v48  ;;  %v8510_v48 = vld [vmem:[#allocation58_spill] sm:$0xff] }
 0x1b9   : > { %5371 = vmatprep.subr.msk.bf16.mxu1 %vm1674_vm10, %v4568_v28 }
 0x1be   : > { %5039 = vmatmul.mubr.msk.bf16.gmra.mrb[36].mxu1 %vm1625_vm5, %v8498_v11  ;;  %v7586_v11 = vpop.permute.xlu1 %2900 }
 0x1bf   : > { %5021 = vmatmul.mubr.msk.bf16.gmra.mrb[68].mxu0 %vm1625_vm5, %v7450_v45  ;;  %5042 = vmatprep.mubr.msk.bf16.mxu1 %vm1625_vm5, %v8499_v16  ;;  %v8511_v16 = vld [vmem:[#allocation61_spill] sm:$0xff]  ;;  %vm2989_vm3 = vcmp.eq.s32.totalorder %v7586_v11, 1 }
 0x1c0   : > { %5024 = vmatprep.mubr.msk.bf16.mxu0 %vm1625_vm5, %v7459_v40 }
 0x1c6   : > { %5043 = vmatmul.mubr.msk.bf16.gmra.mrb[40].mxu1 %vm1625_vm5, %v8500_v34  ;;  %v7528_v53 = vpop.f32.mrb[32].mxu0  ;;  %v7590_v34 = vpop.permute.xlu0 %3677 }
 0x1c7   : > { %5025 = vmatmul.mubr.msk.bf16.gmra.mrb[72].mxu0 %vm1625_vm5, %v7470_v44  ;;  %5046 = vmatprep.mubr.msk.bf16.mxu1 %vm1625_vm5, %v8501_v23  ;;  %v7530_v13 = vpop.f32.mrb[33].mxu0  ;;  %v3449_v23 = vsel %vm1674_vm10, %v4568_v28, 0 }
 0x1c8   : > { %5028 = vmatprep.mubr.msk.bf16.mxu0 %vm1625_vm5, %v7479_v60  ;;  %v7532_v58 = vpop.f32.mrb[34].mxu0 }
 0x1c9   : > { %v7534_v10 = vpop.f32.mrb[35].mxu0 }
 0x1ce   : > { %5047 = vmatmul.mubr.msk.bf16.gmra.mrb[44].mxu1 %vm1625_vm5, %v8502_v0  ;;  %v7542_v49 = vpop.f32.mrb[36].mxu0  ;;  %v7593_v0 = vpop.permute.xlu1 %3680 }
 0x1cf   : > { %5029 = vmatmul.mubr.msk.bf16.gmra.mrb[76].mxu0 %vm1625_vm5, %v7488_v63  ;;  %5050 = vmatprep.mubr.msk.bf16.mxu1 %vm1625_vm5, %v8503_v2  ;;  %v7544_v8 = vpop.f32.mrb[37].mxu0  ;;  %v7595_v2 = vpop.permute.xlu0 %3683 }
 0x1d0   : > { %v7546_v50 = vpop.f32.mrb[38].mxu0 }
 0x1d1   : > { %v7548_v42 = vpop.f32.mrb[39].mxu0 }
 0x1d6   : > { %5051 = vmatmul.mubr.msk.bf16.gmra.mrb[48].mxu1 %vm1625_vm5, %v8504_v37  ;;  %v7554_v47 = vpop.f32.mrb[40].mxu0  ;;  %v7601_v37 = vpop.permute.xlu1 %3686 }
 0x1d7   : > { %5054 = vmatprep.mubr.msk.bf16.mxu1 %vm1625_vm5, %v8505_v62  ;;  %v7556_v15 = vpop.f32.mrb[41].mxu0  ;;  %v7603_v62 = vpop.permute.xlu0 %2903 }
 0x1d8   : > { %v7558_v52 = vpop.f32.mrb[42].mxu0 }
 0x1d9   : > { %v7560_v31 = vpop.f32.mrb[43].mxu0 }
 0x1da   : > { %v7609_v28 = vpop.permute.xlu1 %2906 }
 0x1db   : > { %vm2991_vm1 = vcmp.eq.s32.totalorder %v7609_v28, 1 }
 0x1de   : > { %5055 = vmatmul.mubr.msk.bf16.gmra.mrb[52].mxu1 %vm1625_vm5, %v8506_v19  ;;  %v7566_v18 = vpop.f32.mrb[44].mxu0  ;;  %v7611_v19 = vpop.permute.xlu0 %2909 }
 0x1df   : > { %5058 = vmatprep.mubr.msk.bf16.mxu1 %vm1625_vm5, %v8507_v59  ;;  %v7568_v54 = vpop.f32.mrb[45].mxu0  ;;  %vm2992_vm4 = vcmp.eq.s32.totalorder %v7611_v19, 1 }
 0x1e0   : > { %v7570_v7 = vpop.f32.mrb[46].mxu0 }
 0x1e1   : > { %v7574_v39 = vpop.f32.mrb[47].mxu0 }
 0x1e6   : > { %5059 = vmatmul.mubr.msk.bf16.gmra.mrb[56].mxu1 %vm1625_vm5, %v8508_v24 }
 0x1e7   : > { %5062 = vmatprep.mubr.msk.bf16.mxu1 %vm1625_vm5, %v8509_v22 }
 0x1ee   : > { %5063 = vmatmul.mubr.msk.bf16.gmra.mrb[60].mxu1 %vm1625_vm5, %v8510_v48 }
 0x1ef   : > { %5068 = vmatprep.mubr.msk.bf16.mxu1 %vm1625_vm5, %v8511_v16 }
 0x1f6   : > { %5069 = vmatmul.mubr.msk.bf16.vlgmr.msra.gmra.mrb[32].mxu1 %vm1625_vm5, %v6768_v57  ;;  %v7615_v57 = vpop.permute.xlu1 %2912 }
 0x1f7   : > { %5101 = vmatpush3.bf16.msra.mxu1 %v3449_v23  ;;  %5072 = vmatprep.mubr.msk.bf16.mxu1 %vm1625_vm5, %v6830_v46  ;;  %v7619_v46 = vpop.permute.xlu0 %3689  ;;  %vm2993_vm8 = vcmp.eq.s32.totalorder %v7615_v57, 1 }
 0x1fa   : > { %v7621_v59 = vpop.permute.xlu1 %3692 }
 0x1fe   : > { %5073 = vmatmul.mubr.msk.bf16.gmra.mrb[36].mxu1 %vm1625_vm5, %v6957_v9  ;;  %v7623_v9 = vpop.permute.xlu0 %3695 }
 0x1ff   : > { %5076 = vmatprep.mubr.msk.bf16.mxu1 %vm1625_vm5, %v7016_v29  ;;  %v7629_v29 = vpop.permute.xlu1 %3698 }
 0x200   : > { %8512 = vst [vmem:[#allocation37_spill] sm:$0xff] %v7629_v29 }
 0x206   : > { %5077 = vmatmul.mubr.msk.bf16.gmra.mrb[40].mxu1 %vm1625_vm5, %v7116_v14  ;;  %v7631_v14 = vpop.permute.xlu0 %2915 }
 0x207   : > { %5080 = vmatprep.mubr.msk.bf16.mxu1 %vm1625_vm5, %v7130_v43  ;;  %v7637_v43 = vpop.permute.xlu1 %2918  ;;  %vm2994_vm2 = vcmp.eq.s32.totalorder %v7631_v14, 1 }
 0x208   : > { %vm2995_vm7 = vcmp.eq.s32.totalorder %v7637_v43, 1 }
 0x20a   : > { %v7639_v24 = vpop.permute.xlu0 %2921 }
 0x20b   : > { %vm2996_vm11 = vcmp.eq.s32.totalorder %v7639_v24, 1 }
 0x20e   : > { %5081 = vmatmul.mubr.msk.bf16.gmra.mrb[44].mxu1 %vm1625_vm5, %v7152_v1  ;;  %v7643_v1 = vpop.permute.xlu1 %2924 }
 0x20f   : > { %5084 = vmatprep.mubr.msk.bf16.mxu1 %vm1625_vm5, %v7162_v56  ;;  %v7647_v56 = vpop.permute.xlu0 %3701  ;;  %vm2997_vm13 = vcmp.eq.s32.totalorder %v7643_v1, 1 }
 0x212   : > { %v7649_v22 = vpop.permute.xlu1 %3704 }
 0x216   : > { %5085 = vmatmul.mubr.msk.bf16.gmra.mrb[48].mxu1 %vm1625_vm5, %v7182_v61  ;;  %v7651_v61 = vpop.permute.xlu0 %3707 }
 0x217   : > { %5088 = vmatprep.mubr.msk.bf16.mxu1 %vm1625_vm5, %v7194_v55  ;;  %8513 = vst [vmem:[#allocation38_spill] sm:$0xff] %v7651_v61  ;;  %v3955_v55 = vld [vmem:[%s8176_s7] sm:$0x3] }
 0x218   : > { %5372 = vmatprep.subr.msk.bf16.mxu0 %vm1674_vm10, %v3955_v55 }
 0x21a   : > { %v7664_v48 = vpop.permute.xlu0 %2927 }
 0x21b   : > { %vm2998_vm9 = vcmp.eq.s32.totalorder %v7664_v48, 1 }
 0x21e   : > { %5089 = vmatmul.mubr.msk.bf16.gmra.mrb[52].mxu1 %vm1625_vm5, %v7214_v17  ;;  %v4012_v17 = vsel %vm1674_vm10, %v3955_v55, 0  ;;  %v7672_v16 = vpop.permute.xlu0 %2933  ;;  %vm2990_vm10 = vcmp.eq.s32.totalorder %v7603_v62, 1 }
 0x21f   : > { %5092 = vmatprep.mubr.msk.bf16.mxu1 %vm1625_vm5, %v7226_v33  ;;  %5135 = vmatpush3.bf16.msra.mxu0 %v4012_v17  ;;  %v7662_v33 = vpop.permute.xlu1 %3710  ;;  %vm3000_vm15 = vcmp.eq.s32.totalorder %v7672_v16, 1 }
 0x220   : > { %8514 = vst [vmem:[#allocation42_spill] sm:$0xff] %v7662_v33 }
 0x222   : > { %v7680_v23 = vpop.permute.xlu0 %3713 }
 0x223   : > { %8515 = vst [vmem:[#allocation41_spill] sm:$0xff] %v7680_v23 }
 0x226   : > { %5093 = vmatmul.mubr.msk.bf16.gmra.mrb[56].mxu1 %vm1625_vm5, %v7248_v5  ;;  %v7670_v5 = vpop.permute.xlu1 %2930 }
 0x227   : > { %5096 = vmatprep.mubr.msk.bf16.mxu1 %vm1625_vm5, %v7258_v12  ;;  %vm2999_vm12 = vcmp.eq.s32.totalorder %v7670_v5, 1 }
 0x22a   : > { %v7676_v12 = vpop.permute.xlu1 %2936 }
 0x22e   : > { %5097 = vmatmul.mubr.msk.bf16.gmra.mrb[60].mxu1 %vm1625_vm5, %v7278_v21  ;;  %v7682_v55 = vpop.permute.xlu1 %3716  ;;  %v7684_v21 = vpop.permute.xlu0 %3719 }
 0x22f   : > { %5102 = vmatprep.mubr.msk.bf16.mxu1 %vm1625_vm5, %v7288_v20  ;;  %8516 = vst [vmem:[#allocation46_spill] sm:$0xff] %v7682_v55  ;;  %8517 = vst [vmem:[#allocation44_spill] sm:$0xff] %v7684_v21 }
 0x232   : > { %v7690_v20 = vpop.permute.xlu1 %3722 }
 0x233   : > { %8518 = vst [vmem:[#allocation6_spill] sm:$0xff] %v7690_v20 }
 0x236   : > { %5103 = vmatmul.mubr.msk.bf16.vlgmr.msra.gmra.mrb[32].mxu1 %vm1625_vm5, %v7310_v30  ;;  %v7692_v30 = vpop.permute.xlu0 %2939 }
 0x237   : > { %5106 = vmatprep.mubr.msk.bf16.mxu1 %vm1625_vm5, %v7331_v26  ;;  %v7698_v26 = vpop.permute.xlu1 %2942  ;;  %vm3002_vm14 = vcmp.eq.s32.totalorder %v7692_v30, 1 }
 0x23a   : > { %v7700_v21 = vpop.permute.xlu0 %2945 }
 0x23e   : > { %5107 = vmatmul.mubr.msk.bf16.gmra.mrb[36].mxu1 %vm1625_vm5, %v7354_v3 }
 0x23f   : > { %5110 = vmatprep.mubr.msk.bf16.mxu1 %vm1625_vm5, %v7365_v6 }
 0x246   : > { %5111 = vmatmul.mubr.msk.bf16.gmra.mrb[40].mxu1 %vm1625_vm5, %v7378_v25 }
 0x247   : > { %5114 = vmatprep.mubr.msk.bf16.mxu1 %vm1625_vm5, %v7387_v32  ;;  %v7714_v32 = vpop.permute.xlu1 %2948 }
 0x249   : > { %v4900_v17 = vpop.f32.mrb[16].mxu1 }
 0x24a   : > { %v5170_v3 = vadd.f32 %v4900_v17, %v7528_v53  ;;  %v2138_v33 = vpop.f32.mrb[17].mxu1  ;;  %v7718_v53 = vpop.permute.xlu0 %3725 }
 0x24b   : > { %v7704_v6 = vadd.f32 %v2138_v33, %v7530_v13  ;;  %v4901_v20 = vpop.f32.mrb[18].mxu1  ;;  %8519 = vst [vmem:[#allocation7_spill] sm:$0xff] %v7718_v53 }
 0x24c   : > { %v7707_v55 = vadd.f32 %v4901_v20, %v7532_v58  ;;  %v2141_v61 = vpop.f32.mrb[19].mxu1 }
 0x24d   : > { %v7710_v25 = vadd.f32 %v2141_v61, %v7534_v10 }
 0x24e   : > { %5115 = vmatmul.mubr.msk.bf16.gmra.mrb[44].mxu1 %vm1625_vm5, %v7400_v51  ;;  %v7727_v51 = vpop.permute.xlu1 %3728  ;;  %v7730_v29 = vpop.permute.xlu0 %3731 }
 0x24f   : > { %5118 = vmatprep.mubr.msk.bf16.mxu1 %vm1625_vm5, %v7409_v35  ;;  %8520 = vst [vmem:[#allocation9_spill] sm:$0xff] %v7727_v51  ;;  %8521 = vst [vmem:[#allocation45_spill] sm:$0xff] %v7730_v29 }
 0x251   : > { %v4904_v13 = vpop.f32.mrb[20].mxu1 }
 0x252   : > { %v7721_v33 = vadd.f32 %v4904_v13, %v7542_v49  ;;  %v2154_v58 = vpop.f32.mrb[21].mxu1 }
 0x253   : > { %v5175_v20 = vadd.f32 %v2154_v58, %v7544_v8  ;;  %v4905_v17 = vpop.f32.mrb[22].mxu1 }
 0x254   : > { %v7725_v10 = vadd.f32 %v4905_v17, %v7546_v50  ;;  %v2157_v61 = vpop.f32.mrb[23].mxu1  ;;  %v7739_v50 = vpop.permute.xlu1 %3734 }
 0x255   : > { %v5177_v23 = vadd.f32 %v2157_v61, %v7548_v42  ;;  %8522 = vst [vmem:[#allocation47_spill] sm:$0xff] %v7739_v50  ;;  %v7742_v17 = vpop.permute.xlu0 %2951 }
 0x256   : > { %5119 = vmatmul.mubr.msk.bf16.gmra.mrb[48].mxu1 %vm1625_vm5, %v7426_v38 }
 0x257   : > { %5122 = vmatprep.mubr.msk.bf16.mxu1 %vm1625_vm5, %v7437_v4 }
 0x258   : > { %v7752_v4 = vpop.permute.xlu1 %2954 }
 0x259   : > { %v4908_v35 = vpop.f32.mrb[24].mxu1 }
 0x25a   : > { %v7737_v49 = vadd.f32 %v4908_v35, %v7554_v47  ;;  %v2170_v8 = vpop.f32.mrb[25].mxu1  ;;  %v7754_v35 = vpop.permute.xlu0 %2957 }
 0x25b   : > { %v5179_v13 = vadd.f32 %v2170_v8, %v7556_v15  ;;  %v4909_v58 = vpop.f32.mrb[26].mxu1 }
 0x25c   : > { %v7745_v42 = vadd.f32 %v4909_v58, %v7558_v52  ;;  %v2173_v61 = vpop.f32.mrb[27].mxu1 }
 0x25d   : > { %v5181_v38 = vadd.f32 %v2173_v61, %v7560_v31 }
 0x25e   : > { %5123 = vmatmul.mubr.msk.bf16.gmra.mrb[52].mxu1 %vm1625_vm5, %v7450_v45 }
 0x25f   : > { %5126 = vmatprep.mubr.msk.bf16.mxu1 %vm1625_vm5, %v7459_v40  ;;  %v7770_v40 = vpop.permute.xlu1 %2960 }
 0x261   : > { %v4912_v47 = vpop.f32.mrb[28].mxu1 }
 0x262   : > { %v7757_v15 = vadd.f32 %v4912_v47, %v7566_v18  ;;  %v2186_v8 = vpop.f32.mrb[29].mxu1  ;;  %v7772_v18 = vpop.permute.xlu0 %3737 }
 0x263   : > { %v5183_v52 = vadd.f32 %v2186_v8, %v7568_v54  ;;  %v4913_v58 = vpop.f32.mrb[30].mxu1  ;;  %8523 = vst [vmem:[#allocation11_spill] sm:$0xff] %v7772_v18  ;;  %v7797_v28 = vpop.permute.xlu1 %3740 }
 0x264   : > { %v7761_v31 = vadd.f32 %v4913_v58, %v7570_v7  ;;  %v2189_v61 = vpop.f32.mrb[31].mxu1  ;;  %8524 = vst [vmem:[#allocation48_spill] sm:$0xff] %v7797_v28 }
 0x265   : > { %v7764_v45 = vadd.f32 %v2189_v61, %v7574_v39 }
 0x266   : > { %5127 = vmatmul.mubr.msk.bf16.gmra.mrb[56].mxu1 %vm1625_vm5, %v7470_v44 }
 0x267   : > { %5130 = vmatprep.mubr.msk.bf16.mxu1 %vm1625_vm5, %v7479_v60 }
 0x269   : > { %v7775_v54 = vpop.f32.mrb[0].mxu1 }
 0x26a   : > { %v5002_v7 = vpop.f32.mrb[48].mxu0  ;;  %v7778_v39 = vpop.f32.mrb[1].mxu1 }
 0x26b   : > { %v3022_v47 = vsel %vm2990_vm10, %v5002_v7, 0.0  ;;  %v2699_v8 = vpop.f32.mrb[49].mxu0  ;;  %v7783_v58 = vpop.f32.mrb[2].mxu1  ;;  %vm3003_vm10 = vcmp.eq.s32.totalorder %v7698_v26, 1 }
 0x26c   : > { %v7781_v44 = vadd.f32 %v5175_v20, %v3022_v47  ;;  %v3020_v60 = vsel %vm2988_vm0, %v2699_v8, 0.0  ;;  %v5003_v61 = vpop.f32.mrb[50].mxu0  ;;  %v7788_v29 = vpop.f32.mrb[3].mxu1  ;;  %vm3001_vm0 = vcmp.eq.s32.totalorder %v7676_v12, 1 }
 0x26d   : > { %v7786_v62 = vadd.f32 %v5170_v3, %v3020_v60  ;;  %v3023_v50 = vsel %vm2991_vm1, %v5003_v61, 0.0  ;;  %v2702_v41 = vpop.f32.mrb[51].mxu0  ;;  %v7799_v20 = vpop.permute.xlu0 %3743  ;;  %vm3006_vm1 = vcmp.eq.s32.totalorder %v7742_v17, 1 }
 0x26e   : > { %v7790_v7 = vadd.f32 %v5177_v23, %v3023_v50  ;;  %v3021_v18 = vsel %vm2989_vm3, %v2702_v41, 0.0  ;;  %5131 = vmatmul.mubr.msk.bf16.gmra.mrb[60].mxu1 %vm1625_vm5, %v7488_v63  ;;  %8525 = vst [vmem:[#allocation49_spill] sm:$0xff] %v7799_v20  ;;  %vm3004_vm3 = vcmp.eq.s32.totalorder %v7700_v21, 1 }
 0x26f   : > { %v7793_v51 = vadd.f32 %v7707_v55, %v3021_v18 }
 0x271   : > { %v7802_v11 = vpop.f32.mrb[4].mxu1 }
 0x272   : > { %v5006_v3 = vpop.f32.mrb[52].mxu0  ;;  %v7805_v50 = vpop.f32.mrb[5].mxu1 }
 0x273   : > { %v3026_v23 = vsel %vm2994_vm2, %v5006_v3, 0.0  ;;  %v2715_v47 = vpop.f32.mrb[53].mxu0  ;;  %v7810_v18 = vpop.f32.mrb[6].mxu1  ;;  %vm3007_vm2 = vcmp.eq.s32.totalorder %v7752_v4, 1 }
 0x274   : > { %v7808_v55 = vadd.f32 %v5179_v13, %v3026_v23  ;;  %v3024_v63 = vsel %vm2992_vm4, %v2715_v47, 0.0  ;;  %v5007_v8 = vpop.f32.mrb[54].mxu0  ;;  %v7816_v61 = vpop.f32.mrb[7].mxu1  ;;  %vm3005_vm4 = vcmp.eq.s32.totalorder %v7714_v32, 1 }
 0x275   : > { %v7814_v14 = vadd.f32 %v7721_v33, %v3024_v63  ;;  %v3027_v60 = vsel %vm2995_vm7, %v5007_v8, 0.0  ;;  %v2718_v19 = vpop.f32.mrb[55].mxu0  ;;  %v7823_v13 = vpop.permute.xlu1 %3746 }
 0x276   : > { %v7818_v41 = vadd.f32 %v5181_v38, %v3027_v60  ;;  %v3025_v3 = vsel %vm2993_vm8, %v2718_v19, 0.0  ;;  %8526 = vst [vmem:[#allocation14_spill] sm:$0xff] %v7823_v13  ;;  %v7825_v23 = vpop.permute.xlu0 %2963  ;;  %vm3008_vm8 = vcmp.eq.s32.totalorder %v7754_v35, 1 }
 0x277   : > { %v7821_v43 = vadd.f32 %v7725_v10, %v3025_v3  ;;  %vm3010_vm7 = vcmp.eq.s32.totalorder %v7825_v23, 1 }
 0x279   : > { %v7828_v57 = vpop.f32.mrb[8].mxu1 }
 0x27a   : > { %v5010_v33 = vpop.f32.mrb[56].mxu0  ;;  %v7831_v63 = vpop.f32.mrb[9].mxu1 }
 0x27b   : > { %v3030_v47 = vsel %vm2998_vm9, %v5010_v33, 0.0  ;;  %v2731_v38 = vpop.f32.mrb[57].mxu0  ;;  %v7836_v60 = vpop.f32.mrb[10].mxu1 }
 0x27c   : > { %v7834_v8 = vadd.f32 %v5183_v52, %v3030_v47  ;;  %v3028_v10 = vsel %vm2996_vm11, %v2731_v38, 0.0  ;;  %v5011_v19 = vpop.f32.mrb[58].mxu0  ;;  %v2237_v13 = vpop.f32.mrb[11].mxu1  ;;  %vm3009_vm11 = vcmp.eq.s32.totalorder %v7770_v40, 1 }
 0x27d   : > { %v7840_v48 = vadd.f32 %v7737_v49, %v3028_v10  ;;  %v3031_v3 = vsel %vm2999_vm12, %v5011_v19, 0.0  ;;  %v2734_v24 = vpop.f32.mrb[59].mxu0  ;;  %v2967_v52 = vpop.permute.xlu1 %2966 }
 0x27e   : > { %v7843_v33 = vadd.f32 %v7764_v45, %v3031_v3  ;;  %v3029_v20 = vsel %vm2997_vm13, %v2734_v24, 0.0  ;;  %v7848_v47 = vpop.permute.xlu0 %2969  ;;  %vm3011_vm9 = vcmp.eq.s32.totalorder %v2967_v52, 1 }
 0x27f   : > { %v7846_v5 = vadd.f32 %v7745_v42, %v3029_v20  ;;  %vm3012_vm13 = vcmp.eq.s32.totalorder %v7848_v47, 1 }
 0x281   : > { %v7851_v38 = vpop.f32.mrb[12].mxu1  ;;  %v2973_v26 = vpop.permute.xlu1 %2972 }
 0x282   : > { %v5014_v1 = vpop.f32.mrb[60].mxu0  ;;  %v2250_v10 = vpop.f32.mrb[13].mxu1 }
 0x283   : > { %v3034_v49 = vsel %vm3002_vm14, %v5014_v1, 0.0  ;;  %v2747_v19 = vpop.f32.mrb[61].mxu0  ;;  %v7858_v20 = vpop.f32.mrb[14].mxu1 }
 0x284   : > { %v7856_v45 = vadd.f32 %v3034_v49, %v7778_v39  ;;  %v3032_v42 = vsel %vm3000_vm15, %v2747_v19, 0.0  ;;  %v5015_v3 = vpop.f32.mrb[62].mxu0  ;;  %v2253_v28 = vpop.f32.mrb[15].mxu1  ;;  %vm3013_vm15 = vcmp.eq.s32.totalorder %v2973_v26, 1 }
 0x285   : > { %v7862_v30 = vadd.f32 %v7757_v15, %v3032_v42  ;;  %v3035_v24 = vsel %vm3003_vm10, %v5015_v3, 0.0  ;;  %v2750_v16 = vpop.f32.mrb[63].mxu0  ;;  %v7872_v12 = vpop.permute.xlu0 %3749  ;;  %vm2986_vm10 = vcmp.eq.s32.totalorder %v7572_v36, 1 }
 0x286   : > { %v7865_v1 = vadd.f32 %v3035_v24, %v7788_v29  ;;  %v3033_v53 = vsel %vm3001_vm0, %v2750_v16, 0.0 }
 0x287   : > { %v7868_v39 = vadd.f32 %v7761_v31, %v3033_v53  ;;  %v7879_v53 = vpop.permute.xlu1 %3752 }
 0x28a   : > { %v5018_v49 = vpop.f32.mrb[64].mxu0 }
 0x28b   : > { %v3038_v15 = vsel %vm3006_vm1, %v5018_v49, 0.0  ;;  %v2763_v19 = vpop.f32.mrb[65].mxu0  ;;  %v7894_v32 = vpop.permute.xlu1 %3758  ;;  %vm2987_vm1 = vcmp.eq.s32.totalorder %v7580_v27, 1 }
 0x28c   : > { %v7876_v42 = vadd.f32 %v3038_v15, %v7805_v50  ;;  %v3036_v29 = vsel %vm3004_vm3, %v2763_v19, 0.0  ;;  %v5019_v3 = vpop.f32.mrb[66].mxu0  ;;  %v7890_v50 = vpop.permute.xlu0 %3755 }
 0x28d   : > { %v7882_v17 = vadd.f32 %v7775_v54, %v3036_v29  ;;  %v3039_v31 = vsel %vm3007_vm2, %v5019_v3, 0.0  ;;  %v2766_v21 = vpop.f32.mrb[67].mxu0  ;;  %vm3772_vm2 = vcmp.eq.s32.totalorder %v7590_v34, 1 }
 0x28e   : > { %v7885_v24 = vadd.f32 %v3039_v31, %v7816_v61  ;;  %v3037_v16 = vsel %vm3005_vm4, %v2766_v21, 0.0 }
 0x28f   : > { %v7888_v4 = vadd.f32 %v7783_v58, %v3037_v16  ;;  %v2979_v52 = vpop.permute.xlu1 %2978 }
 0x290   : > { %v2976_v21 = vpop.permute.xlu0 %2975  ;;  %vm3015_vm14 = vcmp.eq.s32.totalorder %v2979_v52, 1 }
 0x291   : > { %vm3014_vm12 = vcmp.eq.s32.totalorder %v2976_v21, 1 }
 0x292   : > { %v5022_v49 = vpop.f32.mrb[68].mxu0 }
 0x293   : > { %v3042_v54 = vsel %vm3010_vm7, %v5022_v49, 0.0  ;;  %v2779_v15 = vpop.f32.mrb[69].mxu0  ;;  %vm3773_vm7 = vcmp.eq.s32.totalorder %v7593_v0, 1 }
 0x294   : > { %v7897_v19 = vadd.f32 %v3042_v54, %v7831_v63  ;;  %v3040_v61 = vsel %vm3008_vm8, %v2779_v15, 0.0  ;;  %v5023_v29 = vpop.f32.mrb[70].mxu0  ;;  %v2982_v47 = vpop.permute.xlu0 %2981 }
 0x295   : > { %v7901_v58 = vadd.f32 %v7802_v11, %v3040_v61  ;;  %v3043_v3 = vsel %vm3011_vm9, %v5023_v29, 0.0  ;;  %v2782_v23 = vpop.f32.mrb[71].mxu0  ;;  %vm3016_vm0 = vcmp.eq.s32.totalorder %v2982_v47, 1  ;;  %vm3776_vm9 = vcmp.eq.s32.totalorder %v7619_v46, 1 }
 0x296   : > { %v7903_v31 = vadd.f32 %v3043_v3, %v2237_v13  ;;  %v3041_v35 = vsel %vm3009_vm11, %v2782_v23, 0.0  ;;  %vm3774_vm11 = vcmp.eq.s32.totalorder %v7595_v2, 1 }
 0x297   : > { %v7906_v16 = vadd.f32 %v7810_v18, %v3041_v35  ;;  %v2985_v35 = vpop.permute.xlu1 %2984 }
 0x298   : > { %vm3017_vm3 = vcmp.eq.s32.totalorder %v2985_v35, 1 }
 0x29a   : > { %v5026_v63 = vpop.f32.mrb[72].mxu0 }
 0x29b   : > { %v3046_v49 = vsel %vm3014_vm12, %v5026_v63, 0.0  ;;  %v2795_v54 = vpop.f32.mrb[73].mxu0  ;;  %vm3777_vm12 = vcmp.eq.s32.totalorder %v7621_v59, 1 }
 0x29c   : > { %v7909_v40 = vadd.f32 %v3046_v49, %v2250_v10  ;;  %v3044_v11 = vsel %vm3012_vm13, %v2795_v54, 0.0  ;;  %v5027_v15 = vpop.f32.mrb[74].mxu0  ;;  %vm3775_vm13 = vcmp.eq.s32.totalorder %v7601_v37, 1 }
 0x29d   : > { %v7912_v13 = vadd.f32 %v7828_v57, %v3044_v11  ;;  %v3047_v61 = vsel %vm3015_vm14, %v5027_v15, 0.0  ;;  %v2798_v29 = vpop.f32.mrb[75].mxu0  ;;  %v7925_v15 = vpop.permute.xlu0 %3761  ;;  %vm3780_vm14 = vcmp.eq.s32.totalorder %v7647_v56, 1 }
 0x29e   : > { %v7914_v18 = vadd.f32 %v3047_v61, %v2253_v28  ;;  %v3045_v3 = vsel %vm3013_vm15, %v2798_v29, 0.0  ;;  %v7927_v61 = vpop.permute.xlu1 %3764  ;;  %vm3778_vm15 = vcmp.eq.s32.totalorder %v7623_v9, 1 }
 0x29f   : > { %v7917_v23 = vadd.f32 %v7836_v60, %v3045_v3 }
 0x2a1   : > { %v3768_v29 = vpop.permute.xlu0 %3767 }
 0x2a2   : > { %v5030_v10 = vpop.f32.mrb[76].mxu0  ;;  %v3771_v27 = vpop.permute.xlu1 %3770  ;;  %vm3802_vm4 = vcmp.eq.s32.totalorder %v3768_v29, 1 }
 0x2a3   : > { %v3018_v21 = vsel %vm2986_vm10, %v5030_v10, 0.0  ;;  %v2811_v52 = vpop.f32.mrb[77].mxu0  ;;  %vm3803_vm8 = vcmp.eq.s32.totalorder %v3771_v27, 1  ;;  %vm3781_vm10 = vcmp.eq.s32.totalorder %v7649_v22, 1 }
 0x2a4   : > { %v3050_v57 = vadd.f32 %v7704_v6, %v3018_v21  ;;  %v3048_v26 = vsel %vm3016_vm0, %v2811_v52, 0.0  ;;  %v5031_v63 = vpop.f32.mrb[78].mxu0 }
 0x2a5   : > { %v3080_v28 = vadd.f32 %v7851_v38, %v3048_v26  ;;  %v3019_v49 = vsel %vm2987_vm1, %v5031_v63, 0.0  ;;  %v2814_v60 = vpop.f32.mrb[79].mxu0  ;;  %v7933_v38 = vld [vmem:[%s8175_s6] ss:$0 sm:$0xff] }
 0x2a6   : > { %v3051_v54 = vadd.f32 %v7710_v25, %v3019_v49  ;;  %v3049_v11 = vsel %vm3017_vm3, %v2814_v60, 0.0 }
 0x2a7   : > { %v3081_v36 = vadd.f32 %v7858_v20, %v3049_v11 }
 0x309   : > { %v5104_v6 = vpop.f32.mrb[32].mxu1 }
 0x30a   : > { %v3804_v3 = vsel %vm3772_vm2, %v5104_v6, 0.0  ;;  %v3485_v25 = vpop.f32.mrb[33].mxu1 }
 0x30b   : > { %v3836_v20 = vadd.f32 %v3804_v3, %v3050_v57  ;;  %v3834_v47 = vsel %vm3802_vm4, %v3485_v25, 0.0  ;;  %v5105_v35 = vpop.f32.mrb[34].mxu1 }
 0x30c   : > { %v3866_v10 = vadd.f32 %v3834_v47, %v3080_v28  ;;  %v3805_v21 = vsel %vm3773_vm7, %v5105_v35, 0.0  ;;  %v3488_v52 = vpop.f32.mrb[35].mxu1 }
 0x30d   : > { %v3875_v34 = vadd.f32 %v7933_v38, %v3836_v20  ;;  %v3837_v26 = vadd.f32 %v3805_v21, %v3051_v54  ;;  %v3835_v63 = vsel %vm3803_vm8, %v3488_v52, 0.0 }
 0x30e   : > { %v3905_v49 = vadd.f32 %v7933_v38, %v3866_v10  ;;  %v3867_v60 = vadd.f32 %v3835_v63, %v3081_v36 }
 0x30f   : > { %v3876_v11 = vadd.f32 %v7933_v38, %v3837_v26  ;;  %v3907_v0 = vmax.f32 %v3875_v34, 0.0 }
 0x310   : > { %v3906_v29 = vadd.f32 %v7933_v38, %v3867_v60  ;;  %v3937_v28 = vmax.f32 %v3905_v49, 0.0 }
 0x311   : > { %v3908_v57 = vmax.f32 %v3876_v11, 0.0  ;;  %v5108_v6 = vpop.f32.mrb[36].mxu1 }
 0x312   : > { %v3938_v27 = vmax.f32 %v3906_v29, 0.0  ;;  %v3808_v3 = vsel %vm3776_vm9, %v5108_v6, 0.0  ;;  %v3501_v25 = vpop.f32.mrb[37].mxu1 }
 0x313   : > { %v3939_v54 = vpack.c.bf16 %v3908_v57, %v3907_v0  ;;  %v3840_v36 = vadd.f32 %v3808_v3, %v7781_v44  ;;  %v3806_v20 = vsel %vm3774_vm11, %v3501_v25, 0.0  ;;  %v5109_v47 = vpop.f32.mrb[38].mxu1 }
 0x314   : > { %v7945_v35 = vpack.c.bf16 %v3938_v27, %v3937_v28  ;;  %v3838_v46 = vadd.f32 %v3806_v20, %v7786_v62  ;;  %v3809_v10 = vsel %vm3777_vm12, %v5109_v47, 0.0  ;;  %v3504_v21 = vpop.f32.mrb[39].mxu1  ;;  %v8527_v28 = vld [vmem:[#allocation37_spill] sm:$0xff] }
 0x315   : > { %v3879_v2 = vadd.f32 %v7933_v38, %v3840_v36  ;;  %v3841_v52 = vadd.f32 %v3809_v10, %v7790_v7  ;;  %v3807_v34 = vsel %vm3775_vm13, %v3504_v21, 0.0  ;;  %5136 = vmatprep.mubr.msk.bf16.mxu0 %vm1625_vm5, %v3939_v54  ;;  %vm3779_vm0 = vcmp.eq.s32.totalorder %v8527_v28, 1 }
 0x316   : > { %v3877_v59 = vadd.f32 %v7933_v38, %v3838_v46  ;;  %v3839_v44 = vadd.f32 %v3807_v34, %v7793_v51 }
 0x317   : > { %v3880_v26 = vadd.f32 %v7933_v38, %v3841_v52  ;;  %v3911_v62 = vmax.f32 %v3879_v2, 0.0  ;;  %v8529_v2 = vld [vmem:[#allocation38_spill] sm:$0xff] }
 0x318   : > { %v3878_v37 = vadd.f32 %v7933_v38, %v3839_v44  ;;  %v3909_v60 = vmax.f32 %v3877_v59, 0.0  ;;  %vm3782_vm3 = vcmp.eq.s32.totalorder %v8529_v2, 1 }
 0x319   : > { %v3912_v63 = vmax.f32 %v3880_v26, 0.0  ;;  %v5112_v49 = vpop.f32.mrb[40].mxu1 }
 0x31a   : > { %v3910_v7 = vmax.f32 %v3878_v37, 0.0  ;;  %v3812_v11 = vsel %vm3780_vm14, %v5112_v49, 0.0  ;;  %v3517_v29 = vpop.f32.mrb[41].mxu1 }
 0x31b   : > { %v3941_v0 = vpack.c.bf16 %v3912_v63, %v3911_v62  ;;  %v3844_v51 = vadd.f32 %v3812_v11, %v7808_v55  ;;  %v3810_v57 = vsel %vm3778_vm15, %v3517_v29, 0.0  ;;  %v5113_v6 = vpop.f32.mrb[42].mxu1  ;;  %v8531_v63 = vld [vmem:[#allocation42_spill] sm:$0xff] }
 0x31c   : > { %v3940_v27 = vpack.c.bf16 %v3910_v7, %v3909_v60  ;;  %v3842_v56 = vadd.f32 %v3810_v57, %v7814_v14  ;;  %v3813_v3 = vsel %vm3781_vm10, %v5113_v6, 0.0  ;;  %v3520_v25 = vpop.f32.mrb[43].mxu1  ;;  %v8528_v14 = vld [vmem:[#allocation41_spill] sm:$0xff]  ;;  %vm3783_vm4 = vcmp.eq.s32.totalorder %v8531_v63, 1 }
 0x31d   : > { %v3883_v9 = vadd.f32 %v7933_v38, %v3844_v51  ;;  %v3845_v54 = vadd.f32 %v3813_v3, %v7818_v41  ;;  %v3811_v36 = vsel %vm3779_vm0, %v3520_v25, 0.0  ;;  %vm3784_vm1 = vcmp.eq.s32.totalorder %v8528_v14, 1  ;;  %v8533_v25 = vld [vmem:[#allocation44_spill] sm:$0xff]  ;;  %v8535_v14 = vld [vmem:[#allocation6_spill] sm:$0xff]  ;;  %v8537_v63 = vld [vmem:[#allocation45_spill] sm:$0xff] }
 0x31e   : > { %v3881_v20 = vadd.f32 %v7933_v38, %v3842_v56  ;;  %v3843_v22 = vadd.f32 %v3811_v36, %v7821_v43  ;;  %5137 = vmatmul.mubr.msk.bf16.vlgmr.msra.gmra.mrb[80].mxu0 %vm1625_vm5, %v3940_v27  ;;  %v8530_v43 = vld [vmem:[#allocation46_spill] sm:$0xff]  ;;  %vm3786_vm8 = vcmp.eq.s32.totalorder %v8533_v25, 1  ;;  %vm3787_vm11 = vcmp.eq.s32.totalorder %v8535_v14, 1 }
 0x31f   : > { %v3884_v55 = vadd.f32 %v7933_v38, %v3845_v54  ;;  %5140 = vmatprep.mubr.msk.bf16.mxu0 %vm1625_vm5, %v3941_v0  ;;  %v3915_v46 = vmax.f32 %v3883_v9, 0.0  ;;  %vm3785_vm2 = vcmp.eq.s32.totalorder %v8530_v43, 1  ;;  %vm3790_vm13 = vcmp.eq.s32.totalorder %v8537_v63, 1 }
 0x320   : > { %v3882_v47 = vadd.f32 %v7933_v38, %v3843_v22  ;;  %v3913_v41 = vmax.f32 %v3881_v20, 0.0  ;;  %vm3796_vm10 = vcmp.eq.s32.totalorder %v7872_v12, 1 }
 0x321   : > { %v3916_v10 = vmax.f32 %v3884_v55, 0.0  ;;  %v5116_v21 = vpop.f32.mrb[44].mxu1 }
 0x322   : > { %v3914_v52 = vmax.f32 %v3882_v47, 0.0  ;;  %v3816_v34 = vsel %vm3784_vm1, %v5116_v21, 0.0  ;;  %v3533_v59 = vpop.f32.mrb[45].mxu1  ;;  %vm3797_vm1 = vcmp.eq.s32.totalorder %v7879_v53, 1 }
 0x323   : > { %v3943_v44 = vpack.c.bf16 %v3916_v10, %v3915_v46  ;;  %v3848_v26 = vadd.f32 %v3816_v34, %v7834_v8  ;;  %v3814_v37 = vsel %vm3782_vm3, %v3533_v59, 0.0  ;;  %v5117_v62 = vpop.f32.mrb[46].mxu1 }
 0x324   : > { %v3942_v49 = vpack.c.bf16 %v3914_v52, %v3913_v41  ;;  %v3846_v60 = vadd.f32 %v3814_v37, %v7840_v48  ;;  %v3817_v7 = vsel %vm3785_vm2, %v5117_v62, 0.0  ;;  %v3536_v11 = vpop.f32.mrb[47].mxu1  ;;  %v8532_v48 = vld [vmem:[#allocation7_spill] sm:$0xff]  ;;  %vm3800_vm2 = vcmp.eq.s32.totalorder %v7925_v15, 1 }
 0x325   : > { %v3887_v29 = vadd.f32 %v7933_v38, %v3848_v26  ;;  %v3849_v0 = vadd.f32 %v3817_v7, %v7843_v33  ;;  %v3815_v51 = vsel %vm3783_vm4, %v3536_v11, 0.0  ;;  %vm3788_vm7 = vcmp.eq.s32.totalorder %v8532_v48, 1 }
 0x326   : > { %v3885_v57 = vadd.f32 %v7933_v38, %v3846_v60  ;;  %v3847_v6 = vadd.f32 %v3815_v51, %v7846_v5  ;;  %5141 = vmatmul.mubr.msk.bf16.gmra.mrb[84].mxu0 %vm1625_vm5, %v3942_v49  ;;  %v8534_v5 = vld [vmem:[#allocation9_spill] sm:$0xff]  ;;  %vm3798_vm4 = vcmp.eq.s32.totalorder %v7890_v50, 1 }
 0x327   : > { %v3888_v8 = vadd.f32 %v7933_v38, %v3849_v0  ;;  %5144 = vmatprep.mubr.msk.bf16.mxu0 %vm1625_vm5, %v3943_v44  ;;  %v3919_v27 = vmax.f32 %v3887_v29, 0.0  ;;  %vm3789_vm9 = vcmp.eq.s32.totalorder %v8534_v5, 1  ;;  %v8540_v5 = vld [vmem:[#allocation49_spill] sm:$0xff] }
 0x328   : > { %v3886_v28 = vadd.f32 %v7933_v38, %v3847_v6  ;;  %v3917_v33 = vmax.f32 %v3885_v57, 0.0  ;;  %v8539_v57 = vld [vmem:[#allocation47_spill] sm:$0xff]  ;;  %vm3794_vm0 = vcmp.eq.s32.totalorder %v8540_v5, 1 }
 0x329   : > { %v3920_v56 = vmax.f32 %v3888_v8, 0.0  ;;  %v5120_v3 = vpop.f32.mrb[48].mxu1  ;;  %vm3791_vm15 = vcmp.eq.s32.totalorder %v8539_v57, 1 }
 0x32a   : > { %v3918_v9 = vmax.f32 %v3886_v28, 0.0  ;;  %v3820_v54 = vsel %vm3788_vm7, %v5120_v3, 0.0  ;;  %v3549_v36 = vpop.f32.mrb[49].mxu1  ;;  %vm3801_vm7 = vcmp.eq.s32.totalorder %v7927_v61, 1 }
 0x32b   : > { %v3945_v20 = vpack.c.bf16 %v3920_v56, %v3919_v27  ;;  %v3852_v22 = vadd.f32 %v3820_v54, %v7856_v45  ;;  %v3818_v55 = vsel %vm3786_vm8, %v3549_v36, 0.0  ;;  %v5121_v47 = vpop.f32.mrb[50].mxu1  ;;  %vm3799_vm8 = vcmp.eq.s32.totalorder %v7894_v32, 1 }
 0x32c   : > { %v3944_v46 = vpack.c.bf16 %v3918_v9, %v3917_v33  ;;  %v3850_v10 = vadd.f32 %v3818_v55, %v7862_v30  ;;  %v3821_v21 = vsel %vm3789_vm9, %v5121_v47, 0.0  ;;  %v3552_v2 = vpop.f32.mrb[51].mxu1  ;;  %v8536_v30 = vld [vmem:[#allocation11_spill] sm:$0xff] }
 0x32d   : > { %v3891_v41 = vadd.f32 %v7933_v38, %v3852_v22  ;;  %v3853_v52 = vadd.f32 %v3821_v21, %v7865_v1  ;;  %v3819_v34 = vsel %vm3787_vm11, %v3552_v2, 0.0  ;;  %vm3792_vm12 = vcmp.eq.s32.totalorder %v8536_v30, 1 }
 0x32e   : > { %v3889_v59 = vadd.f32 %v7933_v38, %v3850_v10  ;;  %v3851_v43 = vadd.f32 %v3819_v34, %v7868_v39  ;;  %5145 = vmatmul.mubr.msk.bf16.gmra.mrb[88].mxu0 %vm1625_vm5, %v3944_v46  ;;  %v8538_v39 = vld [vmem:[#allocation48_spill] sm:$0xff]  ;;  %v8541_v10 = vld [vmem:[#allocation14_spill] sm:$0xff] }
 0x32f   : > { %v3892_v45 = vadd.f32 %v7933_v38, %v3853_v52  ;;  %5148 = vmatprep.mubr.msk.bf16.mxu0 %vm1625_vm5, %v3945_v20  ;;  %v3923_v26 = vmax.f32 %v3891_v41, 0.0  ;;  %vm3793_vm14 = vcmp.eq.s32.totalorder %v8538_v39, 1  ;;  %vm3795_vm3 = vcmp.eq.s32.totalorder %v8541_v10, 1 }
 0x330   : > { %v3890_v44 = vadd.f32 %v7933_v38, %v3851_v43  ;;  %v3921_v1 = vmax.f32 %v3889_v59, 0.0 }
 0x331   : > { %v3924_v37 = vmax.f32 %v3892_v45, 0.0  ;;  %v5124_v62 = vpop.f32.mrb[52].mxu1 }
 0x332   : > { %v3922_v49 = vmax.f32 %v3890_v44, 0.0  ;;  %v3824_v60 = vsel %vm3792_vm12, %v5124_v62, 0.0  ;;  %v3565_v7 = vpop.f32.mrb[53].mxu1 }
 0x333   : > { %v3947_v11 = vpack.c.bf16 %v3924_v37, %v3923_v26  ;;  %v3856_v29 = vadd.f32 %v3824_v60, %v7876_v42  ;;  %v3822_v0 = vsel %vm3790_vm13, %v3565_v7, 0.0  ;;  %v5125_v51 = vpop.f32.mrb[54].mxu1 }
 0x334   : > { %v3946_v6 = vpack.c.bf16 %v3922_v49, %v3921_v1  ;;  %v3854_v8 = vadd.f32 %v3822_v0, %v7882_v17  ;;  %v3825_v28 = vsel %vm3793_vm14, %v5125_v51, 0.0  ;;  %v3568_v48 = vpop.f32.mrb[55].mxu1 }
 0x335   : > { %v3895_v27 = vadd.f32 %v7933_v38, %v3856_v29  ;;  %v3857_v56 = vadd.f32 %v3825_v28, %v7885_v24  ;;  %v3823_v3 = vsel %vm3791_vm15, %v3568_v48, 0.0  ;;  %v5418_v48 = vld [vmem:[%s5549_s28] sm:$0xff]  }
 0x336   : > { %v3893_v25 = vadd.f32 %v7933_v38, %v3854_v8  ;;  %v3855_v33 = vadd.f32 %v3823_v3, %v7888_v4  ;;  %5149 = vmatmul.mubr.msk.bf16.gmra.mrb[92].mxu0 %vm1625_vm5, %v3946_v6 }
 0x337   : > { %v3896_v42 = vadd.f32 %v7933_v38, %v3857_v56  ;;  %5152 = vmatprep.mubr.msk.bf16.mxu0 %vm1625_vm5, %v3947_v11  ;;  %v3927_v17 = vmax.f32 %v3895_v27, 0.0  ;;  %v4175_v27 = vunpack.c.l.bf16 %v5418_v48 }
 0x338   : > { %v3894_v9 = vadd.f32 %v7933_v38, %v3855_v33  ;;  %v3925_v24 = vmax.f32 %v3893_v25, 0.0 }
 0x339   : > { %v3928_v54 = vmax.f32 %v3896_v42, 0.0  ;;  %v5128_v36 = vpop.f32.mrb[56].mxu1  ;;  %v4176_v42 = vunpack.c.h.bf16 %v5418_v48  ;;  %v5423_v48 = vld [vmem:[%s5549_s28 + $0x38] sm:$0xff]  }
 0x33a   : > { %v3926_v20 = vmax.f32 %v3894_v9, 0.0  ;;  %v3828_v22 = vsel %vm3796_vm10, %v5128_v36, 0.0  ;;  %v3581_v55 = vpop.f32.mrb[57].mxu1 }
 0x33b   : > { %v3949_v4 = vpack.c.bf16 %v3928_v54, %v3927_v17  ;;  %v3860_v47 = vadd.f32 %v3828_v22, %v7897_v19  ;;  %v3826_v14 = vsel %vm3794_vm0, %v3581_v55, 0.0  ;;  %v5129_v46 = vpop.f32.mrb[58].mxu1 }
 0x33c   : > { %v3948_v21 = vpack.c.bf16 %v3926_v20, %v3925_v24  ;;  %v3858_v12 = vadd.f32 %v3826_v14, %v7901_v58  ;;  %v3829_v2 = vsel %vm3797_vm1, %v5129_v46, 0.0  ;;  %v3584_v41 = vpop.f32.mrb[59].mxu1  ;;  %v5419_v14 = vld [vmem:[%s5549_s28 + $0x18] sm:$0xff]  }
 0x33d   : > { %v3899_v52 = vadd.f32 %v7933_v38, %v3860_v47  ;;  %v3861_v34 = vadd.f32 %v3829_v2, %v7903_v31  ;;  %v3827_v59 = vsel %vm3795_vm3, %v3584_v41, 0.0  ;;  %v4181_v46 = vunpack.c.l.bf16 %v5419_v14 }
 0x33e   : > { %v3897_v43 = vadd.f32 %v7933_v38, %v3858_v12  ;;  %v3859_v53 = vadd.f32 %v3827_v59, %v7906_v16  ;;  %5153 = vmatmul.mubr.msk.bf16.gmra.mrb[96].mxu0 %vm1625_vm5, %v3948_v21  ;;  %v5420_v12 = vld [vmem:[%s5549_s28 + $0x10] sm:$0xff]  }
 0x33f   : > { %v3900_v19 = vadd.f32 %v7933_v38, %v3861_v34  ;;  %5156 = vmatprep.mubr.msk.bf16.mxu0 %vm1625_vm5, %v3949_v4  ;;  %v3931_v58 = vmax.f32 %v3899_v52, 0.0  ;;  %v4179_v2 = vunpack.c.l.bf16 %v5420_v12  ;;  %v4182_v34 = vunpack.c.h.bf16 %v5419_v14 }
 0x340   : > { %v3898_v45 = vadd.f32 %v7933_v38, %v3859_v53  ;;  %v3929_v31 = vmax.f32 %v3897_v43, 0.0  ;;  %v4180_v53 = vunpack.c.h.bf16 %v5420_v12 }
 0x341   : > { %v3932_v44 = vmax.f32 %v3900_v19, 0.0  ;;  %v5132_v30 = vpop.f32.mrb[60].mxu1 }
 0x342   : > { %v3930_v26 = vmax.f32 %v3898_v45, 0.0  ;;  %v3832_v37 = vsel %vm3800_vm2, %v5132_v30, 0.0  ;;  %v3597_v62 = vpop.f32.mrb[61].mxu1 }
 0x343   : > { %v3951_v16 = vpack.c.bf16 %v3932_v44, %v3931_v58  ;;  %v3864_v63 = vadd.f32 %v3832_v37, %v7909_v40  ;;  %v3830_v1 = vsel %vm3798_vm4, %v3597_v62, 0.0  ;;  %v5133_v49 = vpop.f32.mrb[62].mxu1 }
 0x344   : > { %v3950_v60 = vpack.c.bf16 %v3930_v26, %v3929_v31  ;;  %v3862_v15 = vadd.f32 %v3830_v1, %v7912_v13  ;;  %v3833_v7 = vsel %vm3801_vm7, %v5133_v49, 0.0  ;;  %v3600_v39 = vpop.f32.mrb[63].mxu1 }
 0x345   : > { %v3903_v50 = vadd.f32 %v7933_v38, %v3864_v63  ;;  %v3865_v11 = vadd.f32 %v3833_v7, %v7914_v18  ;;  %v3831_v29 = vsel %vm3799_vm8, %v3600_v39, 0.0  ;;  %v5421_v63 = vld [vmem:[%s5549_s28 + $0x28] sm:$0xff]  }
 0x346   : > { %v3901_v0 = vadd.f32 %v7933_v38, %v3862_v15  ;;  %v3863_v61 = vadd.f32 %v3831_v29, %v7917_v23  ;;  %5157 = vmatmul.mubr.msk.bf16.gmra.mrb[100].mxu0 %vm1625_vm5, %v3950_v60  ;;  %v8046_v23 = vld [vmem:[%s8177_s8] ss:$0 sm:$0xff]  ;;  %v4185_v1 = vunpack.c.l.bf16 %v5421_v63 }
 0x347   : > { %v3904_v32 = vadd.f32 %v7933_v38, %v3865_v11  ;;  %5160 = vmatprep.mubr.msk.bf16.mxu0 %vm1625_vm5, %v3951_v16  ;;  %v3935_v13 = vmax.f32 %v3903_v50, 0.0  ;;  %v5422_v15 = vld [vmem:[%s5549_s28 + $0x20] sm:$0xff]   ;;  %v4186_v11 = vunpack.c.h.bf16 %v5421_v63 }
 0x348   : > { %v3902_v40 = vadd.f32 %v7933_v38, %v3863_v61  ;;  %v3933_v57 = vmax.f32 %v3901_v0, 0.0  ;;  %v5417_v38 = vld [vmem:[%s5549_s28 + $0x8] sm:$0xff]   ;;  %v4183_v7 = vunpack.c.l.bf16 %v5422_v15  ;;  %v4184_v61 = vunpack.c.h.bf16 %v5422_v15 }
 0x349   : > { %v3936_v51 = vmax.f32 %v3904_v32, 0.0  ;;  %v4177_v28 = vunpack.c.l.bf16 %v5417_v38  ;;  %v4178_v33 = vunpack.c.h.bf16 %v5417_v38 }
 0x34a   : > { %v3934_v18 = vmax.f32 %v3902_v40, 0.0 }
 0x34b   : > { %v3953_v6 = vpack.c.bf16 %v3936_v51, %v3935_v13 }
 0x34c   : > { %v3952_v8 = vpack.c.bf16 %v3934_v18, %v3933_v57 }
 0x34e   : > { %5161 = vmatmul.mubr.msk.bf16.gmra.mrb[104].mxu0 %vm1625_vm5, %v3952_v8 }
 0x34f   : > { %5164 = vmatprep.mubr.msk.bf16.mxu0 %vm1625_vm5, %v3953_v6 }
 0x356   : > { %5165 = vmatmul.mubr.msk.bf16.gmra.mrb[108].mxu0 %vm1625_vm5, %v7945_v35 }
 0x3f1   : > { %v5138_v56 = vpop.f32.mrb[80].mxu0 }
 0x3f2   : > { %v4057_v3 = vadd.f32 %v5138_v56, %v8046_v23  ;;  %v4048_v25 = vpop.f32.mrb[81].mxu0 }
 0x3f3   : > { %v4049_v9 = vadd.f32 %v8046_v23, %v4048_v25  ;;  %v5139_v35 = vpop.f32.mrb[82].mxu0  ;;  %v5424_v25 = vld [vmem:[%s5549_s28 + $0x30] sm:$0xff]  }
 0x3f4   : > { %v4209_v17 = vadd.f32 %v4177_v28, %v4057_v3  ;;  %v4060_v54 = vadd.f32 %v5139_v35, %v8046_v23  ;;  %v4051_v36 = vpop.f32.mrb[83].mxu0  ;;  %v4190_v35 = vunpack.c.h.bf16 %v5423_v48 }
 0x3f5   : > { %v4207_v5 = vadd.f32 %v4175_v27, %v4049_v9  ;;  %v4052_v24 = vadd.f32 %v8046_v23, %v4051_v36  ;;  %v4189_v27 = vunpack.c.l.bf16 %v5423_v48  ;;  %v4188_v36 = vunpack.c.h.bf16 %v5424_v25 }
 0x3f6   : > { %v4241_v20 = vmax.f32 %v4209_v17, 0.0  ;;  %v4210_v22 = vadd.f32 %v4178_v33, %v4060_v54  ;;  %v4187_v33 = vunpack.c.l.bf16 %v5424_v25 }
 0x3f7   : > { %v4239_v55 = vmax.f32 %v4207_v5, 0.0  ;;  %v4208_v4 = vadd.f32 %v4176_v42, %v4052_v24 }
 0x3f8   : > { %4273 = vst.msk [vmem:[%s8057_s11 + $0x10] sm:$0xff] %vm463_vm6, %v4241_v20  ;;  %v4242_v47 = vmax.f32 %v4210_v22, 0.0 }
 0x3f9   : > { %4271 = vst.msk [vmem:[%s8057_s11] sm:$0xff] %vm463_vm6, %v4239_v55  ;;  %v4240_v10 = vmax.f32 %v4208_v4, 0.0  ;;  %v5142_v21 = vpop.f32.mrb[84].mxu0 }
 0x3fa   : > { %4274 = vst.msk [vmem:[%s8057_s11 + $0x18] sm:$0xff] %vm463_vm6, %v4242_v47  ;;  %v4073_v41 = vadd.f32 %v5142_v21, %v8046_v23  ;;  %v4064_v52 = vpop.f32.mrb[85].mxu0  ;;  %v5425_v21 = vld [vmem:[%s5549_s28 + $0x48] sm:$0xff]  }
 0x3fb   : > { %4272 = vst.msk [vmem:[%s8057_s11 + $0x8] sm:$0xff] %vm463_vm6, %v4240_v10  ;;  %v4065_v59 = vadd.f32 %v8046_v23, %v4064_v52  ;;  %v5143_v43 = vpop.f32.mrb[86].mxu0  ;;  %v4193_v12 = vunpack.c.l.bf16 %v5425_v21  ;;  %v5426_v52 = vld [vmem:[%s5549_s28 + $0x40] sm:$0xff]  }
 0x3fc   : > { %v4213_v19 = vadd.f32 %v4181_v46, %v4073_v41  ;;  %v4076_v45 = vadd.f32 %v5143_v43, %v8046_v23  ;;  %v4067_v58 = vpop.f32.mrb[87].mxu0 }
 0x3fd   : > { %v4211_v44 = vadd.f32 %v4179_v2, %v4065_v59  ;;  %v4068_v30 = vadd.f32 %v8046_v23, %v4067_v58  ;;  %v4192_v58 = vunpack.c.h.bf16 %v5426_v52 }
 0x3fe   : > { %v4245_v31 = vmax.f32 %v4213_v19, 0.0  ;;  %v4214_v26 = vadd.f32 %v4182_v34, %v4076_v45  ;;  %v4191_v34 = vunpack.c.l.bf16 %v5426_v52 }
 0x3ff   : > { %v4243_v37 = vmax.f32 %v4211_v44, 0.0  ;;  %v4212_v62 = vadd.f32 %v4180_v53, %v4068_v30  ;;  %v4194_v53 = vunpack.c.h.bf16 %v5425_v21 }
 0x400   : > { %4277 = vst.msk [vmem:[%s8057_s11 + $0x30] sm:$0xff] %vm463_vm6, %v4245_v31  ;;  %v4246_v16 = vmax.f32 %v4214_v26, 0.0 }
 0x401   : > { %4275 = vst.msk [vmem:[%s8057_s11 + $0x20] sm:$0xff] %vm463_vm6, %v4243_v37  ;;  %v4244_v49 = vmax.f32 %v4212_v62, 0.0  ;;  %v5146_v60 = vpop.f32.mrb[88].mxu0 }
 0x402   : > { %4278 = vst.msk [vmem:[%s8057_s11 + $0x38] sm:$0xff] %vm463_vm6, %v4246_v16  ;;  %v4089_v39 = vadd.f32 %v5146_v60, %v8046_v23  ;;  %v4080_v50 = vpop.f32.mrb[89].mxu0  ;;  %v5427_v60 = vld [vmem:[%s5549_s28 + $0x58] sm:$0xff]  }
 0x403   : > { %4276 = vst.msk [vmem:[%s8057_s11 + $0x28] sm:$0xff] %vm463_vm6, %v4244_v49  ;;  %v4081_v29 = vadd.f32 %v8046_v23, %v4080_v50  ;;  %v5147_v0 = vpop.f32.mrb[90].mxu0  ;;  %v4197_v15 = vunpack.c.l.bf16 %v5427_v60  ;;  %v5428_v50 = vld [vmem:[%s5549_s28 + $0x50] sm:$0xff]  }
 0x404   : > { %v4217_v32 = vadd.f32 %v4185_v1, %v4089_v39  ;;  %v4092_v40 = vadd.f32 %v5147_v0, %v8046_v23  ;;  %v4083_v13 = vpop.f32.mrb[91].mxu0 }
 0x405   : > { %v4215_v51 = vadd.f32 %v4183_v7, %v4081_v29  ;;  %v4084_v57 = vadd.f32 %v8046_v23, %v4083_v13  ;;  %v4196_v13 = vunpack.c.h.bf16 %v5428_v50 }
 0x406   : > { %v4249_v18 = vmax.f32 %v4217_v32, 0.0  ;;  %v4218_v6 = vadd.f32 %v4186_v11, %v4092_v40  ;;  %v4195_v11 = vunpack.c.l.bf16 %v5428_v50 }
 0x407   : > { %v4247_v8 = vmax.f32 %v4215_v51, 0.0  ;;  %v4216_v38 = vadd.f32 %v4184_v61, %v4084_v57  ;;  %v4198_v61 = vunpack.c.h.bf16 %v5427_v60 }
 0x408   : > { %4281 = vst.msk [vmem:[%s8057_s11 + $0x50] sm:$0xff] %vm463_vm6, %v4249_v18  ;;  %v4250_v28 = vmax.f32 %v4218_v6, 0.0 }
 0x409   : > { %4279 = vst.msk [vmem:[%s8057_s11 + $0x40] sm:$0xff] %vm463_vm6, %v4247_v8  ;;  %v4248_v56 = vmax.f32 %v4216_v38, 0.0  ;;  %v5150_v3 = vpop.f32.mrb[92].mxu0 }
 0x40a   : > { %4282 = vst.msk [vmem:[%s8057_s11 + $0x58] sm:$0xff] %vm463_vm6, %v4250_v28  ;;  %v4105_v42 = vadd.f32 %v5150_v3, %v8046_v23  ;;  %v4096_v9 = vpop.f32.mrb[93].mxu0  ;;  %v5429_v3 = vld [vmem:[%s5549_s28 + $0x68] sm:$0xff]  }
 0x40b   : > { %4280 = vst.msk [vmem:[%s8057_s11 + $0x48] sm:$0xff] %vm463_vm6, %v4248_v56  ;;  %v4097_v17 = vadd.f32 %v8046_v23, %v4096_v9  ;;  %v5151_v54 = vpop.f32.mrb[94].mxu0  ;;  %v4201_v25 = vunpack.c.l.bf16 %v5429_v3  ;;  %v5430_v9 = vld [vmem:[%s5549_s28 + $0x60] sm:$0xff]  }
 0x40c   : > { %v4221_v5 = vadd.f32 %v4189_v27, %v4105_v42  ;;  %v4108_v24 = vadd.f32 %v5151_v54, %v8046_v23  ;;  %v4099_v20 = vpop.f32.mrb[95].mxu0 }
 0x40d   : > { %v4219_v22 = vadd.f32 %v4187_v33, %v4097_v17  ;;  %v4100_v55 = vadd.f32 %v8046_v23, %v4099_v20  ;;  %v4200_v20 = vunpack.c.h.bf16 %v5430_v9 }
 0x40e   : > { %v4253_v4 = vmax.f32 %v4221_v5, 0.0  ;;  %v4222_v47 = vadd.f32 %v4190_v35, %v4108_v24  ;;  %v4199_v35 = vunpack.c.l.bf16 %v5430_v9 }
 0x40f   : > { %v4251_v14 = vmax.f32 %v4219_v22, 0.0  ;;  %v4220_v46 = vadd.f32 %v4188_v36, %v4100_v55  ;;  %v4202_v36 = vunpack.c.h.bf16 %v5429_v3 }
 0x410   : > { %4285 = vst.msk [vmem:[%s8057_s11 + $0x70] sm:$0xff] %vm463_vm6, %v4253_v4  ;;  %v4254_v10 = vmax.f32 %v4222_v47, 0.0 }
 0x411   : > { %4283 = vst.msk [vmem:[%s8057_s11 + $0x60] sm:$0xff] %vm463_vm6, %v4251_v14  ;;  %v4252_v2 = vmax.f32 %v4220_v46, 0.0  ;;  %v5154_v41 = vpop.f32.mrb[96].mxu0 }
 0x412   : > { %4286 = vst.msk [vmem:[%s8057_s11 + $0x78] sm:$0xff] %vm463_vm6, %v4254_v10  ;;  %v4121_v59 = vadd.f32 %v5154_v41, %v8046_v23  ;;  %v4112_v43 = vpop.f32.mrb[97].mxu0  ;;  %v5431_v41 = vld [vmem:[%s5549_s28 + $0x78] sm:$0xff]  }
 0x413   : > { %4284 = vst.msk [vmem:[%s8057_s11 + $0x68] sm:$0xff] %vm463_vm6, %v4252_v2  ;;  %v4113_v19 = vadd.f32 %v8046_v23, %v4112_v43  ;;  %v5155_v45 = vpop.f32.mrb[98].mxu0  ;;  %v4205_v52 = vunpack.c.l.bf16 %v5431_v41  ;;  %v5432_v43 = vld [vmem:[%s5549_s28 + $0x70] sm:$0xff]  }
 0x414   : > { %v4225_v44 = vadd.f32 %v4193_v12, %v4121_v59  ;;  %v4124_v30 = vadd.f32 %v5155_v45, %v8046_v23  ;;  %v4115_v31 = vpop.f32.mrb[99].mxu0 }
 0x415   : > { %v4223_v26 = vadd.f32 %v4191_v34, %v4113_v19  ;;  %v4116_v37 = vadd.f32 %v8046_v23, %v4115_v31  ;;  %v4204_v31 = vunpack.c.h.bf16 %v5432_v43 }
 0x416   : > { %v4257_v62 = vmax.f32 %v4225_v44, 0.0  ;;  %v4226_v16 = vadd.f32 %v4194_v53, %v4124_v30  ;;  %v4203_v53 = vunpack.c.l.bf16 %v5432_v43 }
 0x417   : > { %v4255_v63 = vmax.f32 %v4223_v26, 0.0  ;;  %v4224_v1 = vadd.f32 %v4192_v58, %v4116_v37  ;;  %v4206_v58 = vunpack.c.h.bf16 %v5431_v41 }
 0x418   : > { %4289 = vst.msk [vmem:[%s8057_s11 + $0x90] sm:$0xff] %vm463_vm6, %v4257_v62  ;;  %v4258_v49 = vmax.f32 %v4226_v16, 0.0 }
 0x419   : > { %4287 = vst.msk [vmem:[%s8057_s11 + $0x80] sm:$0xff] %vm463_vm6, %v4255_v63  ;;  %v4256_v7 = vmax.f32 %v4224_v1, 0.0  ;;  %v5158_v39 = vpop.f32.mrb[100].mxu0 }
 0x41a   : > { %4290 = vst.msk [vmem:[%s8057_s11 + $0x98] sm:$0xff] %vm463_vm6, %v4258_v49  ;;  %v4137_v29 = vadd.f32 %v5158_v39, %v8046_v23  ;;  %v4128_v0 = vpop.f32.mrb[101].mxu0 }
 0x41b   : > { %4288 = vst.msk [vmem:[%s8057_s11 + $0x88] sm:$0xff] %vm463_vm6, %v4256_v7  ;;  %v4129_v32 = vadd.f32 %v8046_v23, %v4128_v0  ;;  %v5159_v40 = vpop.f32.mrb[102].mxu0 }
 0x41c   : > { %v4229_v51 = vadd.f32 %v4197_v15, %v4137_v29  ;;  %v4140_v57 = vadd.f32 %v5159_v40, %v8046_v23  ;;  %v4131_v18 = vpop.f32.mrb[103].mxu0 }
 0x41d   : > { %v4227_v6 = vadd.f32 %v4195_v11, %v4129_v32  ;;  %v4132_v8 = vadd.f32 %v8046_v23, %v4131_v18 }
 0x41e   : > { %v4261_v38 = vmax.f32 %v4229_v51, 0.0  ;;  %v4230_v28 = vadd.f32 %v4198_v61, %v4140_v57 }
 0x41f   : > { %v4259_v48 = vmax.f32 %v4227_v6, 0.0  ;;  %v4228_v27 = vadd.f32 %v4196_v13, %v4132_v8 }
 0x420   : > { %4293 = vst.msk [vmem:[%s8057_s11 + $0xb0] sm:$0xff] %vm463_vm6, %v4261_v38  ;;  %v4262_v56 = vmax.f32 %v4230_v28, 0.0 }
 0x421   : > { %4291 = vst.msk [vmem:[%s8057_s11 + $0xa0] sm:$0xff] %vm463_vm6, %v4259_v48  ;;  %v4260_v33 = vmax.f32 %v4228_v27, 0.0  ;;  %v5162_v42 = vpop.f32.mrb[104].mxu0 }
 0x422   : > { %4294 = vst.msk [vmem:[%s8057_s11 + $0xb8] sm:$0xff] %vm463_vm6, %v4262_v56  ;;  %v4153_v17 = vadd.f32 %v5162_v42, %v8046_v23  ;;  %v4144_v54 = vpop.f32.mrb[105].mxu0 }
 0x423   : > { %4292 = vst.msk [vmem:[%s8057_s11 + $0xa8] sm:$0xff] %vm463_vm6, %v4260_v33  ;;  %v4145_v5 = vadd.f32 %v8046_v23, %v4144_v54  ;;  %v5163_v24 = vpop.f32.mrb[106].mxu0 }
 0x424   : > { %v4233_v22 = vadd.f32 %v4201_v25, %v4153_v17  ;;  %v4156_v55 = vadd.f32 %v5163_v24, %v8046_v23  ;;  %v4147_v4 = vpop.f32.mrb[107].mxu0 }
 0x425   : > { %v4231_v47 = vadd.f32 %v4199_v35, %v4145_v5  ;;  %v4148_v14 = vadd.f32 %v8046_v23, %v4147_v4 }
 0x426   : > { %v4265_v46 = vmax.f32 %v4233_v22, 0.0  ;;  %v4234_v10 = vadd.f32 %v4202_v36, %v4156_v55 }
 0x427   : > { %v4263_v21 = vmax.f32 %v4231_v47, 0.0  ;;  %v4232_v12 = vadd.f32 %v4200_v20, %v4148_v14 }
 0x428   : > { %4297 = vst.msk [vmem:[%s8057_s11 + $0xd0] sm:$0xff] %vm463_vm6, %v4265_v46  ;;  %v4266_v2 = vmax.f32 %v4234_v10, 0.0 }
 0x429   : > { %4295 = vst.msk [vmem:[%s8057_s11 + $0xc0] sm:$0xff] %vm463_vm6, %v4263_v21  ;;  %v4264_v34 = vmax.f32 %v4232_v12, 0.0  ;;  %v5166_v59 = vpop.f32.mrb[108].mxu0 }
 0x42a   : > { %4298 = vst.msk [vmem:[%s8057_s11 + $0xd8] sm:$0xff] %vm463_vm6, %v4266_v2  ;;  %v4169_v19 = vadd.f32 %v5166_v59, %v8046_v23  ;;  %v4160_v45 = vpop.f32.mrb[109].mxu0 }
 0x42b   : > { %4296 = vst.msk [vmem:[%s8057_s11 + $0xc8] sm:$0xff] %vm463_vm6, %v4264_v34  ;;  %v4161_v44 = vadd.f32 %v8046_v23, %v4160_v45  ;;  %v5167_v30 = vpop.f32.mrb[110].mxu0 }
 0x42c   : > { %v4237_v26 = vadd.f32 %v4205_v52, %v4169_v19  ;;  %v4172_v37 = vadd.f32 %v5167_v30, %v8046_v23  ;;  %v4163_v62 = vpop.f32.mrb[111].mxu0 }
 0x42d   : > { %v4235_v16 = vadd.f32 %v4203_v53, %v4161_v44  ;;  %v4164_v63 = vadd.f32 %v8046_v23, %v4163_v62 }
 0x42e   : > { %v4269_v1 = vmax.f32 %v4237_v26, 0.0  ;;  %v4238_v49 = vadd.f32 %v4206_v58, %v4172_v37 }
 0x42f   : > { %v4267_v60 = vmax.f32 %v4235_v16, 0.0  ;;  %v4236_v15 = vadd.f32 %v4204_v31, %v4164_v63 }
 0x430   : > { %4301 = vst.msk [vmem:[%s8057_s11 + $0xf0] sm:$0xff] %vm463_vm6, %v4269_v1  ;;  %v4270_v7 = vmax.f32 %v4238_v49, 0.0 }
 0x431   : > { %4299 = vst.msk [vmem:[%s8057_s11 + $0xe0] sm:$0xff] %vm463_vm6, %v4267_v60  ;;  %v4268_v39 = vmax.f32 %v4236_v15, 0.0 }
 0x432   : > { %4302 = vst.msk [vmem:[%s8057_s11 + $0xf8] sm:$0xff] %vm463_vm6, %v4270_v7 }
 0x433   : > { %4300 = vst.msk [vmem:[%s8057_s11 + $0xe8] sm:$0xff] %vm463_vm6, %v4268_v39 }
 0x434 PF: > { %s19_s30 = sadd.s32 1, %s5439_s30  }
 0x435   : > { %p16_p4 = scmp.ge.s32.totalorder %s19_s30, 4  }
 0x437   :  { %18 = sbr.rel (!%p16_p4) target bundleno = 1 (0x1), region = 94 }

</bundles_post_ra>
